<compile_context>
chip_gen: v6e
topology: v6e:2x2x1
jax: 0.10.0
libtpu: 0.0.40
codegen_flags: <defaults>
</compile_context>

<pallas_src>
import functools
import math

import jax
import jax.numpy as jnp
from jax.experimental import pallas as pl
from jax.experimental.pallas import tpu as pltpu


# ---------------------------------------------------------------------------
# Pallas kernel: modulated channel attention + bias/leaky-relu/clamp + ToRGB
# ---------------------------------------------------------------------------

def encoder_block_kernel(x_ref, styles_ref, qkv_wt_ref, wu_wt_ref, dsq_wt_ref,
                         rgb_wt_ref, bias_ref, out_ref, *,
                         bt, seq_len, num_heads, h_dim, out_dim, img_channels,
                         act_clamp):
    L, H, O, C = seq_len, h_dim, out_dim, img_channels
    N = bt * L
    depth = H // num_heads
    attn_scale = jnp.float32(depth ** -0.5)
    mm_dt = qkv_wt_ref.dtype            # f32 (module semantics) or bf16 (fast MXU path)

    styles = styles_ref[...].astype(jnp.float32)          # (bt, 2H + O)
    s1 = styles[:, :H]                                    # (bt, H)
    s2 = styles[:, H:2 * H]                               # (bt, H)
    srgb = styles[:, 2 * H:]                              # (bt, O)
    b_all = bias_ref[...].astype(jnp.float32)             # (1, O + C)

    # --- all demodulation coefficients with ONE small MXU push ---------------
    # dsq_wt is block-diagonal, pre-squared, pre-transposed (built in wrapper):
    #   styles^2 @ dsq_wt == [s1^2 @ (q|k|v)^2, s2^2 @ (w|u)^2, srgb^2 @ rgb^2]
    dsq = jnp.dot(styles * styles, dsq_wt_ref[...],
                  preferred_element_type=jnp.float32)     # (bt, 3H + 2O + C)
    dco = jax.lax.rsqrt(dsq + 1e-8)
    q_d = dco[:, :H]
    k_d = dco[:, H:2 * H]
    v_d = dco[:, 2 * H:3 * H]
    w_d = dco[:, 3 * H:3 * H + O]
    u_d = dco[:, 3 * H + O:3 * H + 2 * O]
    rgb_d = dco[:, 3 * H + 2 * O:]

    # --- modulation + InstanceNorm1d(seq_len) (normalizes over hidden axis) ---
    x = x_ref[...].astype(jnp.float32).reshape(bt, L, H) * s1[:, None, :]
    mean = jnp.mean(x, axis=-1, keepdims=True)
    xc = x - mean
    var = jnp.mean(xc * xc, axis=-1, keepdims=True)
    x = (xc * jax.lax.rsqrt(var + 1e-5)).reshape(N, H)

    # --- fused Q/K/V projection: one (N, H) @ (H, 3H) push --------------------
    qkv = jnp.dot(x.astype(mm_dt), qkv_wt_ref[...],
                  preferred_element_type=jnp.float32)               # (N, 3H)
    qkv_sc = jnp.concatenate([q_d, k_d, v_d * s2], axis=-1)          # (bt, 3H)
    qkv = qkv.reshape(bt, L, 3 * H) * qkv_sc[:, None, :]
    q = qkv[..., :H]                                                 # (bt, L, H)
    k = qkv[..., H:2 * H].astype(mm_dt)
    v = qkv[..., 2 * H:]                                             # == v_value
    skip = v.reshape(N, H)

    # --- multi-head attention via per-head column masks ------------------------
    # Masking q alone already zeroes cross-head contributions along the contracted
    # axis of the score matmul; v is masked so each head lands in its own columns.
    col = jax.lax.broadcasted_iota(jnp.int32, (1, 1, H), 2)
    attn_out = None
    for h in range(num_heads):
        m = ((col >= h * depth) & (col < (h + 1) * depth)).astype(jnp.float32)
        s = jnp.einsum('bld,bmd->blm', (q * m).astype(mm_dt), k,
                       preferred_element_type=jnp.float32) * attn_scale
        s = s - jnp.max(s, axis=-1, keepdims=True)
        e = jnp.exp(s)
        p = e * pl.reciprocal(jnp.sum(e, axis=-1, keepdims=True), approx=True)
        o_h = jnp.einsum('blm,bmd->bld', p.astype(mm_dt), (v * m).astype(mm_dt),
                         preferred_element_type=jnp.float32)
        attn_out = o_h if attn_out is None else attn_out + o_h
    attn_out = attn_out.reshape(N, H)

    # --- fused out (W) + skip (U) projection: one (N, 2H) @ (2H, 2O) push ------
    ws_in = jnp.concatenate([attn_out, skip], axis=-1).astype(mm_dt)   # (N, 2H)
    xo2 = jnp.dot(ws_in, wu_wt_ref[...], preferred_element_type=jnp.float32)
    wu_sc = jnp.concatenate([w_d, u_d], axis=-1)                       # (bt, 2O)
    xo2 = xo2.reshape(bt, L, 2 * O) * wu_sc[:, None, :]
    xo = xo2[..., :O] + xo2[..., O:]                                   # (bt, L, O)

    # noise_strength is a zero-initialized parameter -> the random-noise term is exactly 0.
    # TODO(synk): add the noise term for trained checkpoints where noise_strength != 0.
    xo = xo + b_all[:, :O]
    xo = jnp.where(xo >= 0, xo, 0.2 * xo)                 # leaky_relu(0.2)
    xo = jnp.clip(xo, -act_clamp, act_clamp)

    # --- ToRGB (modulated style MLP), no clamp ---------------------------------
    rgb_in = (xo * srgb[:, None, :]).reshape(N, O).astype(mm_dt)
    y = jnp.dot(rgb_in, rgb_wt_ref[...], preferred_element_type=jnp.float32)
    y = y.reshape(bt, L, C) * rgb_d[:, None, :] + b_all[:, O:]

    # Single packed store: [x_out || rgb] in one (N, O+C) slab.
    out_ref[...] = jnp.concatenate([xo, y], axis=-1).reshape(N, O + C).astype(out_ref.dtype)


# ---------------------------------------------------------------------------
# Wrapper (glue: affine style FCs, weight prep, pallas_call, NCHW reshape)
# ---------------------------------------------------------------------------

def _pick_batch_tile(batch, seq):
    """Batch elements per grid step.

    Targets >=128 MXU rows (bt*seq) per step while keeping the per-step working
    set tiny relative to VMEM (safe on v7x's 64 MiB physical / 32 MiB default
    scoped VMEM as well as v5e/v6e).  Keeps >=2 'parallel' grid steps when the
    batch allows (v7x has 2 TensorCores).  bt is either the full batch or a
    multiple of 8 so block shapes satisfy the (8,128) tiling rule.
    """
    max_rows = 2048
    candidates = [d for d in range(1, batch + 1)
                  if batch % d == 0 and (d == batch or d % 8 == 0)
                  and d * seq <= max_rows]
    if not candidates:
        return 1
    bt = max(candidates)
    two_step = [d for d in candidates if batch // d >= 2 and d * seq >= 128]
    if two_step:
        bt = max(two_step)
    return bt


@functools.partial(jax.jit, static_argnames=(
    "num_heads", "resolution", "img_channels", "conv_clamp", "gain", "use_bf16_matmul"))
def encoder_block_forward(x, ws, p, *, num_heads, resolution, img_channels,
                          conv_clamp, gain=1.0, use_bf16_matmul=False):
    B, L, H = x.shape
    O = p["w_weight"].shape[0]
    C = img_channels
    w_dim = p["affine1_w"].shape[1]
    fc_gain = 1.0 / math.sqrt(w_dim)

    # FullyConnectedLayer affines (glue, plain JAX).
    styles_enc = ws[:, 0, :] @ (p["affine1_w"] * fc_gain).T + p["affine1_b"]        # (B, 2H)
    styles_rgb = ws[:, 1, :] @ (p["rgb_affine_w"] * fc_gain).T + p["rgb_affine_b"]  # (B, O)
    styles = jnp.concatenate([styles_enc, styles_rgb], axis=-1).astype(jnp.float32)

    # Weight prep: pre-transposed to (in, out), fused, and squared copies for demod.
    mm_dtype = jnp.bfloat16 if use_bf16_matmul else jnp.float32
    qkv_wt = jnp.concatenate([p["q_weight"], p["k_weight"], p["v_weight"]], axis=0).T  # (H, 3H)
    wu_wt = jnp.zeros((2 * H, 2 * O), jnp.float32)
    wu_wt = wu_wt.at[:H, :O].set(p["w_weight"].T)          # attn_out @ W^T in cols [:O]
    wu_wt = wu_wt.at[H:, O:].set(p["u_weight"].T)          # skip @ U^T in cols [O:]
    rgb_wt = p["rgb_weight"].T                             # (O, C)

    dsq_wt = jnp.zeros((2 * H + O, 3 * H + 2 * O + C), jnp.float32)
    dsq_wt = dsq_wt.at[:H, :3 * H].set(jnp.square(qkv_wt))
    dsq_wt = dsq_wt.at[H:2 * H, 3 * H:3 * H + O].set(jnp.square(p["w_weight"].T))
    dsq_wt = dsq_wt.at[H:2 * H, 3 * H + O:3 * H + 2 * O].set(jnp.square(p["u_weight"].T))
    dsq_wt = dsq_wt.at[2 * H:, 3 * H + 2 * O:].set(jnp.square(rgb_wt))

    bias = jnp.concatenate([p["enc_bias"], p["rgb_bias"]]).reshape(1, O + C).astype(jnp.float32)

    bt = _pick_batch_tile(B, L)
    grid = (B // bt,)
    act_clamp = float(conv_clamp * gain)

    kernel = functools.partial(
        encoder_block_kernel, bt=bt, seq_len=L, num_heads=num_heads, h_dim=H,
        out_dim=O, img_channels=C, act_clamp=act_clamp)

    packed = pl.pallas_call(
        kernel,
        out_shape=jax.ShapeDtypeStruct((B * L, O + C), jnp.float32),
        grid_spec=pltpu.PrefetchScalarGridSpec(
            num_scalar_prefetch=0,
            grid=grid,
            in_specs=[
                pl.BlockSpec((bt * L, H), lambda g: (g, 0)),                      # x rows
                pl.BlockSpec((bt, 2 * H + O), lambda g: (g, 0)),                  # styles
                pl.BlockSpec((H, 3 * H), lambda g: (0, 0)),                       # fused (q|k|v)^T
                pl.BlockSpec((2 * H, 2 * O), lambda g: (0, 0)),                   # blockdiag W^T/U^T
                pl.BlockSpec((2 * H + O, 3 * H + 2 * O + C), lambda g: (0, 0)),   # squared weights
                pl.BlockSpec((O, C), lambda g: (0, 0)),                           # rgb^T
                pl.BlockSpec((1, O + C), lambda g: (0, 0)),                       # biases
            ],
            out_specs=pl.BlockSpec((bt * L, O + C), lambda g: (g, 0)),
        ),
        compiler_params=pltpu.CompilerParams(dimension_semantics=("parallel",)),
    )(x.reshape(B * L, H).astype(jnp.float32),
      styles,
      qkv_wt.astype(mm_dtype),
      wu_wt.astype(mm_dtype),
      dsq_wt,
      rgb_wt.astype(mm_dtype),
      bias)

    x_out = packed[:, :O].reshape(B, L, O)
    img = packed[:, O:].reshape(B, L, C).transpose(0, 2, 1).reshape(
        B, C, resolution, resolution)
    return x_out, img


# ---------------------------------------------------------------------------
# Pure-JAX reference (mirrors the PyTorch forward) for correctness checking
# ---------------------------------------------------------------------------

def reference_forward(x, ws, p, *, num_heads, resolution, img_channels, conv_clamp, gain=1.0):
    B, L, H = x.shape
    w_dim = p["affine1_w"].shape[1]
    fc_gain = 1.0 / math.sqrt(w_dim)
    styles = ws[:, 0] @ (p["affine1_w"] * fc_gain).T + p["affine1_b"]
    s1 = styles[:, :H][:, None, :]
    s2 = styles[:, H:][:, None, :]
    xm = x * s1
    mean = xm.mean(-1, keepdims=True)
    var = ((xm - mean) ** 2).mean(-1, keepdims=True)
    xn = (xm - mean) / jnp.sqrt(var + 1e-5)

    def dco(w, s):
        q = w[None] * s
        return jax.lax.rsqrt((q ** 2).sum(-1) + 1e-8)

    q_d, k_d, v_d = dco(p["q_weight"], s1), dco(p["k_weight"], s1), dco(p["v_weight"], s1)
    w_d, u_d = dco(p["w_weight"], s2), dco(p["u_weight"], s2)
    depth = H // num_heads
    qv = (xn @ p["q_weight"].T) * q_d[:, None, :]
    kv = (xn @ p["k_weight"].T) * k_d[:, None, :]
    vv = (xn @ p["v_weight"].T) * v_d[:, None, :] * s2
    skip = vv
    q4 = qv.reshape(B, L, num_heads, depth).transpose(0, 2, 1, 3)
    k4 = kv.reshape(B, L, num_heads, depth).transpose(0, 2, 1, 3)
    v4 = vv.reshape(B, L, num_heads, depth).transpose(0, 2, 1, 3)
    attn = jnp.einsum("bhld,bhmd->bhlm", q4, k4) * (depth ** -0.5)
    attn = jax.nn.softmax(attn, axis=-1)
    o = jnp.einsum("bhlm,bhmd->bhld", attn, v4).transpose(0, 2, 1, 3).reshape(B, L, H)
    xo = (o @ p["w_weight"].T) * w_d[:, None, :] + (skip @ p["u_weight"].T) * u_d[:, None, :]
    xo = xo + p["enc_bias"][None, None, :]
    xo = jnp.where(xo >= 0, xo, 0.2 * xo)
    act_clamp = conv_clamp * gain
    xo = jnp.clip(xo, -act_clamp, act_clamp)
    srgb = ws[:, 1] @ (p["rgb_affine_w"] * fc_gain).T + p["rgb_affine_b"]
    rd = dco(p["rgb_weight"], srgb[:, None, :])
    y = ((xo * srgb[:, None, :]) @ p["rgb_weight"].T) * rd[:, None, :] + p["rgb_bias"][None, None, :]
    img = y.transpose(0, 2, 1).reshape(B, img_channels, resolution, resolution)
    return xo, img


# ---------------------------------------------------------------------------
# Main
# ---------------------------------------------------------------------------

if __name__ == "__main__":
    # module hyper-parameters
    h_dim, w_dim, out_dim = 32, 32, 32
    depth, minimum_head = 16, 1
    resolution, img_resolution, img_channels = 8, 8, 3
    conv_clamp = 256.0
    seq_length = resolution * resolution
    num_heads = max(minimum_head, h_dim // depth)
    B = 2

    key = jax.random.PRNGKey(0)
    k = jax.random.split(key, 12)
    bound = 1.0 / math.sqrt(h_dim)
    rgb_bound = 1.0 / math.sqrt(out_dim)

    params = {
        # Encoderlayer
        "affine1_w": jax.random.normal(k[0], (2 * h_dim, w_dim), jnp.float32),
        "affine1_b": jnp.ones((2 * h_dim,), jnp.float32),                       # bias_init=1
        "q_weight": jax.random.uniform(k[1], (h_dim, h_dim), jnp.float32, -bound, bound),
        "k_weight": jax.random.uniform(k[2], (h_dim, h_dim), jnp.float32, -bound, bound),
        "v_weight": jax.random.uniform(k[3], (h_dim, h_dim), jnp.float32, -bound, bound),
        "w_weight": jax.random.uniform(k[4], (out_dim, h_dim), jnp.float32, -bound, bound),
        "u_weight": jax.random.uniform(k[5], (out_dim, h_dim), jnp.float32, -bound, bound),
        "enc_bias": jnp.zeros((out_dim,), jnp.float32),
        # ToRGBLayer
        "rgb_affine_w": jax.random.normal(k[6], (out_dim, w_dim), jnp.float32),
        "rgb_affine_b": jnp.ones((out_dim,), jnp.float32),                      # bias_init=1
        "rgb_weight": jax.random.uniform(k[7], (img_channels, out_dim), jnp.float32,
                                         -rgb_bound, rgb_bound),
        "rgb_bias": jnp.zeros((img_channels,), jnp.float32),
    }

    # inputs: x is [B, seq_length, h_dim] (is_first=False), ws is [B, num_attention+num_torgb, w_dim]
    x = jax.random.normal(k[8], (B, seq_length, h_dim), jnp.float32)
    ws = jax.random.normal(k[9], (B, 2, w_dim), jnp.float32)

    x_out, img = encoder_block_forward(
        x, ws, params, num_heads=num_heads, resolution=resolution,
        img_channels=img_channels, conv_clamp=conv_clamp, gain=1.0)
    jax.block_until_ready((x_out, img))

    x_ref, img_ref = reference_forward(
        x, ws, params, num_heads=num_heads, resolution=resolution,
        img_channels=img_channels, conv_clamp=conv_clamp, gain=1.0)

    assert x_out.shape == (B, seq_length, out_dim) and x_out.dtype == jnp.float32
    assert img.shape == (B, img_channels, resolution, resolution) and img.dtype == jnp.float32
    assert jnp.allclose(x_out, x_ref, atol=2e-3, rtol=2e-3)
    assert jnp.allclose(img, img_ref, atol=2e-3, rtol=2e-3)

    print("KERNEL_OK")
</pallas_src>

<mosaic_0001>
module attributes {stable_mosaic.version = 11 : i64} {
  func.func @encoder_block_kernel(%arg0: i32, %arg1: memref<128x32xf32, #tpu.memory_space<vmem>>, %arg2: memref<2x96xf32, #tpu.memory_space<vmem>>, %arg3: memref<32x96xf32, #tpu.memory_space<vmem>>, %arg4: memref<64x64xf32, #tpu.memory_space<vmem>>, %arg5: memref<96x163xf32, #tpu.memory_space<vmem>>, %arg6: memref<32x3xf32, #tpu.memory_space<vmem>>, %arg7: memref<1x35xf32, #tpu.memory_space<vmem>>, %arg8: memref<128x35xf32, #tpu.memory_space<vmem>>) attributes {dimension_semantics = [#tpu.dimension_semantics<parallel>], iteration_bounds = array<i64: 1>, scalar_prefetch = 0 : i64, scratch_operands = 0 : i64, tpu.core_type = #tpu.core_type<tc>, window_params = [{transform_indices = @transform_0, window_bounds = array<i64: 128, 32>}, {transform_indices = @transform_1, window_bounds = array<i64: 2, 96>}, {pipeline_mode = #tpu.pipeline_mode<synchronous>, transform_indices = @transform_2, window_bounds = array<i64: 32, 96>}, {pipeline_mode = #tpu.pipeline_mode<synchronous>, transform_indices = @transform_3, window_bounds = array<i64: 64, 64>}, {pipeline_mode = #tpu.pipeline_mode<synchronous>, transform_indices = @transform_4, window_bounds = array<i64: 96, 163>}, {pipeline_mode = #tpu.pipeline_mode<synchronous>, transform_indices = @transform_5, window_bounds = array<i64: 32, 3>}, {pipeline_mode = #tpu.pipeline_mode<synchronous>, transform_indices = @transform_6, window_bounds = array<i64: 1, 35>}, {transform_indices = @transform_7, window_bounds = array<i64: 128, 35>}]} {
    %c0 = arith.constant 0 : index
    %c0_0 = arith.constant 0 : index
    %0 = vector.load %arg2[%c0, %c0_0] : memref<2x96xf32, #tpu.memory_space<vmem>>, vector<2x96xf32>
    %1 = vector.extract_strided_slice %0 {offsets = [0, 0], sizes = [2, 32], strides = [1, 1]} : vector<2x96xf32> to vector<2x32xf32>
    %2 = vector.extract_strided_slice %0 {offsets = [0, 32], sizes = [2, 32], strides = [1, 1]} : vector<2x96xf32> to vector<2x32xf32>
    %3 = vector.extract_strided_slice %0 {offsets = [0, 64], sizes = [2, 32], strides = [1, 1]} : vector<2x96xf32> to vector<2x32xf32>
    %c0_1 = arith.constant 0 : index
    %c0_2 = arith.constant 0 : index
    %4 = vector.load %arg7[%c0_1, %c0_2] : memref<1x35xf32, #tpu.memory_space<vmem>>, vector<1x35xf32>
    %5 = arith.mulf %0, %0 : vector<2x96xf32>
    %c0_3 = arith.constant 0 : index
    %c0_4 = arith.constant 0 : index
    %6 = vector.load %arg5[%c0_3, %c0_4] : memref<96x163xf32, #tpu.memory_space<vmem>>, vector<96x163xf32>
    %cst = arith.constant dense<0.000000e+00> : vector<2x163xf32>
    %7 = tpu.matmul %5, %6, %cst {dimension_numbers = #tpu.dot_dimension_numbers<[1], [0], [0], [1], [0, 0, 1, 1], [], []>} : vector<2x96xf32>, vector<96x163xf32>, vector<2x163xf32> -> vector<2x163xf32>
    %cst_5 = arith.constant 9.99999993E-9 : f32
    %8 = vector.broadcast %cst_5 : f32 to vector<2x163xf32>
    %9 = arith.addf %7, %8 : vector<2x163xf32>
    %10 = math.rsqrt %9 : vector<2x163xf32>
    %11 = vector.extract_strided_slice %10 {offsets = [0, 0], sizes = [2, 32], strides = [1, 1]} : vector<2x163xf32> to vector<2x32xf32>
    %12 = vector.extract_strided_slice %10 {offsets = [0, 32], sizes = [2, 32], strides = [1, 1]} : vector<2x163xf32> to vector<2x32xf32>
    %13 = vector.extract_strided_slice %10 {offsets = [0, 64], sizes = [2, 32], strides = [1, 1]} : vector<2x163xf32> to vector<2x32xf32>
    %14 = vector.extract_strided_slice %10 {offsets = [0, 96], sizes = [2, 32], strides = [1, 1]} : vector<2x163xf32> to vector<2x32xf32>
    %15 = vector.extract_strided_slice %10 {offsets = [0, 128], sizes = [2, 32], strides = [1, 1]} : vector<2x163xf32> to vector<2x32xf32>
    %16 = vector.extract_strided_slice %10 {offsets = [0, 160], sizes = [2, 3], strides = [1, 1]} : vector<2x163xf32> to vector<2x3xf32>
    %c0_6 = arith.constant 0 : index
    %c0_7 = arith.constant 0 : index
    %17 = vector.load %arg1[%c0_6, %c0_7] : memref<128x32xf32, #tpu.memory_space<vmem>>, vector<128x32xf32>
    %18 = vector.shape_cast %17 : vector<128x32xf32> to vector<2x64x32xf32>
    %19 = vector.shape_cast %1 : vector<2x32xf32> to vector<2x1x32xf32>
    %20 = vector.broadcast %19 : vector<2x1x32xf32> to vector<2x64x32xf32>
    %21 = arith.mulf %18, %20 : vector<2x64x32xf32>
    %cst_8 = arith.constant dense<0.000000e+00> : vector<2x64xf32>
    %22 = vector.multi_reduction <add>, %21, %cst_8 [2] : vector<2x64x32xf32> to vector<2x64xf32>
    %23 = vector.shape_cast %22 : vector<2x64xf32> to vector<2x64x1xf32>
    %cst_9 = arith.constant 3.200000e+01 : f32
    %24 = vector.broadcast %cst_9 : f32 to vector<2x64x1xf32>
    %25 = arith.divf %23, %24 : vector<2x64x1xf32>
    %26 = vector.broadcast %25 : vector<2x64x1xf32> to vector<2x64x32xf32>
    %27 = arith.subf %21, %26 : vector<2x64x32xf32>
    %28 = arith.mulf %27, %27 : vector<2x64x32xf32>
    %cst_10 = arith.constant dense<0.000000e+00> : vector<2x64xf32>
    %29 = vector.multi_reduction <add>, %28, %cst_10 [2] : vector<2x64x32xf32> to vector<2x64xf32>
    %30 = vector.shape_cast %29 : vector<2x64xf32> to vector<2x64x1xf32>
    %cst_11 = arith.constant 3.200000e+01 : f32
    %31 = vector.broadcast %cst_11 : f32 to vector<2x64x1xf32>
    %32 = arith.divf %30, %31 : vector<2x64x1xf32>
    %cst_12 = arith.constant 9.99999974E-6 : f32
    %33 = vector.broadcast %cst_12 : f32 to vector<2x64x1xf32>
    %34 = arith.addf %32, %33 : vector<2x64x1xf32>
    %35 = math.rsqrt %34 : vector<2x64x1xf32>
    %36 = vector.broadcast %35 : vector<2x64x1xf32> to vector<2x64x32xf32>
    %37 = arith.mulf %27, %36 : vector<2x64x32xf32>
    %38 = vector.shape_cast %37 : vector<2x64x32xf32> to vector<128x32xf32>
    %c0_13 = arith.constant 0 : index
    %c0_14 = arith.constant 0 : index
    %39 = vector.load %arg3[%c0_13, %c0_14] : memref<32x96xf32, #tpu.memory_space<vmem>>, vector<32x96xf32>
    %cst_15 = arith.constant dense<0.000000e+00> : vector<128x96xf32>
    %40 = tpu.matmul %38, %39, %cst_15 {dimension_numbers = #tpu.dot_dimension_numbers<[1], [0], [0], [1], [0, 0, 1, 1], [], []>} : vector<128x32xf32>, vector<32x96xf32>, vector<128x96xf32> -> vector<128x96xf32>
    %41 = arith.mulf %13, %2 : vector<2x32xf32>
    %42 = tpu.concatenate %11, %12, %41 in 1 : vector<2x32xf32>, vector<2x32xf32>, vector<2x32xf32> -> vector<2x96xf32>
    %43 = vector.shape_cast %40 : vector<128x96xf32> to vector<2x64x96xf32>
    %44 = vector.shape_cast %42 : vector<2x96xf32> to vector<2x1x96xf32>
    %45 = vector.broadcast %44 : vector<2x1x96xf32> to vector<2x64x96xf32>
    %46 = arith.mulf %43, %45 : vector<2x64x96xf32>
    %47 = vector.extract_strided_slice %46 {offsets = [0, 0, 0], sizes = [2, 64, 32], strides = [1, 1, 1]} : vector<2x64x96xf32> to vector<2x64x32xf32>
    %48 = vector.extract_strided_slice %46 {offsets = [0, 0, 32], sizes = [2, 64, 32], strides = [1, 1, 1]} : vector<2x64x96xf32> to vector<2x64x32xf32>
    %49 = vector.extract_strided_slice %46 {offsets = [0, 0, 64], sizes = [2, 64, 32], strides = [1, 1, 1]} : vector<2x64x96xf32> to vector<2x64x32xf32>
    %50 = vector.shape_cast %49 : vector<2x64x32xf32> to vector<128x32xf32>
    %51 = tpu.iota {dimensions = array<i32: 2>} : vector<1x1x32xi32>
    %c0_i32 = arith.constant 0 : i32
    %52 = vector.broadcast %c0_i32 : i32 to vector<1x1x32xi32>
    %53 = arith.cmpi sge, %51, %52 : vector<1x1x32xi32>
    %c16_i32 = arith.constant 16 : i32
    %54 = vector.broadcast %c16_i32 : i32 to vector<1x1x32xi32>
    %55 = arith.cmpi slt, %51, %54 : vector<1x1x32xi32>
    %56 = arith.andi %53, %55 : vector<1x1x32xi1>
    %57 = arith.extui %56 : vector<1x1x32xi1> to vector<1x1x32xi32>
    %58 = arith.sitofp %57 : vector<1x1x32xi32> to vector<1x1x32xf32>
    %59 = vector.broadcast %58 : vector<1x1x32xf32> to vector<2x64x32xf32>
    %60 = arith.mulf %47, %59 : vector<2x64x32xf32>
    "tpu.trace_start"() <{level = 10 : i32, message = "bld,bmd->blm"}> : () -> ()
    %cst_16 = arith.constant dense<0.000000e+00> : vector<2x64x64xf32>
    %61 = tpu.matmul %60, %48, %cst_16 {dimension_numbers = #tpu.dot_dimension_numbers<[2], [2], [1], [1], [0, 0, 0, 1, 1, 1], [0], [0]>} : vector<2x64x32xf32>, vector<2x64x32xf32>, vector<2x64x64xf32> -> vector<2x64x64xf32>
    "tpu.trace_stop"() : () -> ()
    %cst_17 = arith.constant 2.500000e-01 : f32
    %62 = vector.broadcast %cst_17 : f32 to vector<2x64x64xf32>
    %63 = arith.mulf %61, %62 : vector<2x64x64xf32>
    %cst_18 = arith.constant dense<0xFF800000> : vector<2x64xf32>
    %64 = vector.multi_reduction <maximumf>, %63, %cst_18 [2] : vector<2x64x64xf32> to vector<2x64xf32>
    %65 = vector.shape_cast %64 : vector<2x64xf32> to vector<2x64x1xf32>
    %66 = vector.broadcast %65 : vector<2x64x1xf32> to vector<2x64x64xf32>
    %67 = arith.subf %63, %66 : vector<2x64x64xf32>
    %68 = math.exp %67 : vector<2x64x64xf32>
    %cst_19 = arith.constant dense<0.000000e+00> : vector<2x64xf32>
    %69 = vector.multi_reduction <add>, %68, %cst_19 [2] : vector<2x64x64xf32> to vector<2x64xf32>
    %70 = vector.shape_cast %69 : vector<2x64xf32> to vector<2x64x1xf32>
    %71 = tpu.reciprocal %70 {approx = true} : vector<2x64x1xf32> -> vector<2x64x1xf32>
    %72 = vector.broadcast %71 : vector<2x64x1xf32> to vector<2x64x64xf32>
    %73 = arith.mulf %68, %72 : vector<2x64x64xf32>
    %74 = vector.broadcast %58 : vector<1x1x32xf32> to vector<2x64x32xf32>
    %75 = arith.mulf %49, %74 : vector<2x64x32xf32>
    "tpu.trace_start"() <{level = 10 : i32, message = "blm,bmd->bld"}> : () -> ()
    %cst_20 = arith.constant dense<0.000000e+00> : vector<2x64x32xf32>
    %76 = tpu.matmul %73, %75, %cst_20 {dimension_numbers = #tpu.dot_dimension_numbers<[2], [1], [1], [2], [0, 0, 0, 1, 1, 2], [0], [0]>} : vector<2x64x64xf32>, vector<2x64x32xf32>, vector<2x64x32xf32> -> vector<2x64x32xf32>
    %c16_i32_21 = arith.constant 16 : i32
    "tpu.trace_stop"() : () -> ()
    %77 = vector.broadcast %c16_i32_21 : i32 to vector<1x1x32xi32>
    %78 = arith.cmpi sge, %51, %77 : vector<1x1x32xi32>
    %c32_i32 = arith.constant 32 : i32
    %79 = vector.broadcast %c32_i32 : i32 to vector<1x1x32xi32>
    %80 = arith.cmpi slt, %51, %79 : vector<1x1x32xi32>
    %81 = arith.andi %78, %80 : vector<1x1x32xi1>
    %82 = arith.extui %81 : vector<1x1x32xi1> to vector<1x1x32xi32>
    %83 = arith.sitofp %82 : vector<1x1x32xi32> to vector<1x1x32xf32>
    %84 = vector.broadcast %83 : vector<1x1x32xf32> to vector<2x64x32xf32>
    %85 = arith.mulf %47, %84 : vector<2x64x32xf32>
    "tpu.trace_start"() <{level = 10 : i32, message = "bld,bmd->blm"}> : () -> ()
    %cst_22 = arith.constant dense<0.000000e+00> : vector<2x64x64xf32>
    %86 = tpu.matmul %85, %48, %cst_22 {dimension_numbers = #tpu.dot_dimension_numbers<[2], [2], [1], [1], [0, 0, 0, 1, 1, 1], [0], [0]>} : vector<2x64x32xf32>, vector<2x64x32xf32>, vector<2x64x64xf32> -> vector<2x64x64xf32>
    "tpu.trace_stop"() : () -> ()
    %cst_23 = arith.constant 2.500000e-01 : f32
    %87 = vector.broadcast %cst_23 : f32 to vector<2x64x64xf32>
    %88 = arith.mulf %86, %87 : vector<2x64x64xf32>
    %cst_24 = arith.constant dense<0xFF800000> : vector<2x64xf32>
    %89 = vector.multi_reduction <maximumf>, %88, %cst_24 [2] : vector<2x64x64xf32> to vector<2x64xf32>
    %90 = vector.shape_cast %89 : vector<2x64xf32> to vector<2x64x1xf32>
    %91 = vector.broadcast %90 : vector<2x64x1xf32> to vector<2x64x64xf32>
    %92 = arith.subf %88, %91 : vector<2x64x64xf32>
    %93 = math.exp %92 : vector<2x64x64xf32>
    %cst_25 = arith.constant dense<0.000000e+00> : vector<2x64xf32>
    %94 = vector.multi_reduction <add>, %93, %cst_25 [2] : vector<2x64x64xf32> to vector<2x64xf32>
    %95 = vector.shape_cast %94 : vector<2x64xf32> to vector<2x64x1xf32>
    %96 = tpu.reciprocal %95 {approx = true} : vector<2x64x1xf32> -> vector<2x64x1xf32>
    %97 = vector.broadcast %96 : vector<2x64x1xf32> to vector<2x64x64xf32>
    %98 = arith.mulf %93, %97 : vector<2x64x64xf32>
    %99 = vector.broadcast %83 : vector<1x1x32xf32> to vector<2x64x32xf32>
    %100 = arith.mulf %49, %99 : vector<2x64x32xf32>
    "tpu.trace_start"() <{level = 10 : i32, message = "blm,bmd->bld"}> : () -> ()
    %cst_26 = arith.constant dense<0.000000e+00> : vector<2x64x32xf32>
    %101 = tpu.matmul %98, %100, %cst_26 {dimension_numbers = #tpu.dot_dimension_numbers<[2], [1], [1], [2], [0, 0, 0, 1, 1, 2], [0], [0]>} : vector<2x64x64xf32>, vector<2x64x32xf32>, vector<2x64x32xf32> -> vector<2x64x32xf32>
    "tpu.trace_stop"() : () -> ()
    %102 = arith.addf %76, %101 : vector<2x64x32xf32>
    %103 = vector.shape_cast %102 : vector<2x64x32xf32> to vector<128x32xf32>
    %104 = tpu.concatenate %103, %50 in 1 : vector<128x32xf32>, vector<128x32xf32> -> vector<128x64xf32>
    %c0_27 = arith.constant 0 : index
    %c0_28 = arith.constant 0 : index
    %105 = vector.load %arg4[%c0_27, %c0_28] : memref<64x64xf32, #tpu.memory_space<vmem>>, vector<64x64xf32>
    %cst_29 = arith.constant dense<0.000000e+00> : vector<128x64xf32>
    %106 = tpu.matmul %104, %105, %cst_29 {dimension_numbers = #tpu.dot_dimension_numbers<[1], [0], [0], [1], [0, 0, 1, 1], [], []>} : vector<128x64xf32>, vector<64x64xf32>, vector<128x64xf32> -> vector<128x64xf32>
    %107 = tpu.concatenate %14, %15 in 1 : vector<2x32xf32>, vector<2x32xf32> -> vector<2x64xf32>
    %108 = vector.shape_cast %106 : vector<128x64xf32> to vector<2x64x64xf32>
    %109 = vector.shape_cast %107 : vector<2x64xf32> to vector<2x1x64xf32>
    %110 = vector.broadcast %109 : vector<2x1x64xf32> to vector<2x64x64xf32>
    %111 = arith.mulf %108, %110 : vector<2x64x64xf32>
    %112 = vector.extract_strided_slice %111 {offsets = [0, 0, 0], sizes = [2, 64, 32], strides = [1, 1, 1]} : vector<2x64x64xf32> to vector<2x64x32xf32>
    %113 = vector.extract_strided_slice %111 {offsets = [0, 0, 32], sizes = [2, 64, 32], strides = [1, 1, 1]} : vector<2x64x64xf32> to vector<2x64x32xf32>
    %114 = arith.addf %112, %113 : vector<2x64x32xf32>
    %115 = vector.extract_strided_slice %4 {offsets = [0, 0], sizes = [1, 32], strides = [1, 1]} : vector<1x35xf32> to vector<1x32xf32>
    %116 = vector.shape_cast %115 : vector<1x32xf32> to vector<1x1x32xf32>
    %117 = vector.broadcast %116 : vector<1x1x32xf32> to vector<2x64x32xf32>
    %118 = arith.addf %114, %117 : vector<2x64x32xf32>
    %cst_30 = arith.constant 0.000000e+00 : f32
    %119 = vector.broadcast %cst_30 : f32 to vector<2x64x32xf32>
    %120 = arith.cmpf oge, %118, %119 : vector<2x64x32xf32>
    %cst_31 = arith.constant 2.000000e-01 : f32
    %121 = vector.broadcast %cst_31 : f32 to vector<2x64x32xf32>
    %122 = arith.mulf %121, %118 : vector<2x64x32xf32>
    %123 = arith.select %120, %118, %122 : vector<2x64x32xi1>, vector<2x64x32xf32>
    %cst_32 = arith.constant -2.560000e+02 : f32
    %cst_33 = arith.constant 2.560000e+02 : f32
    %124 = vector.broadcast %cst_32 : f32 to vector<2x64x32xf32>
    %125 = arith.maximumf %124, %123 : vector<2x64x32xf32>
    %126 = vector.broadcast %cst_33 : f32 to vector<2x64x32xf32>
    %127 = arith.minimumf %126, %125 : vector<2x64x32xf32>
    %128 = vector.shape_cast %3 : vector<2x32xf32> to vector<2x1x32xf32>
    %129 = vector.broadcast %128 : vector<2x1x32xf32> to vector<2x64x32xf32>
    %130 = arith.mulf %127, %129 : vector<2x64x32xf32>
    %131 = vector.shape_cast %130 : vector<2x64x32xf32> to vector<128x32xf32>
    %c0_34 = arith.constant 0 : index
    %c0_35 = arith.constant 0 : index
    %132 = vector.load %arg6[%c0_34, %c0_35] : memref<32x3xf32, #tpu.memory_space<vmem>>, vector<32x3xf32>
    %cst_36 = arith.constant dense<0.000000e+00> : vector<128x3xf32>
    %133 = tpu.matmul %131, %132, %cst_36 {dimension_numbers = #tpu.dot_dimension_numbers<[1], [0], [0], [1], [0, 0, 1, 1], [], []>} : vector<128x32xf32>, vector<32x3xf32>, vector<128x3xf32> -> vector<128x3xf32>
    %134 = vector.shape_cast %133 : vector<128x3xf32> to vector<2x64x3xf32>
    %135 = vector.shape_cast %16 : vector<2x3xf32> to vector<2x1x3xf32>
    %136 = vector.broadcast %135 : vector<2x1x3xf32> to vector<2x64x3xf32>
    %137 = arith.mulf %134, %136 : vector<2x64x3xf32>
    %138 = vector.extract_strided_slice %4 {offsets = [0, 32], sizes = [1, 3], strides = [1, 1]} : vector<1x35xf32> to vector<1x3xf32>
    %139 = vector.shape_cast %138 : vector<1x3xf32> to vector<1x1x3xf32>
    %140 = vector.broadcast %139 : vector<1x1x3xf32> to vector<2x64x3xf32>
    %141 = arith.addf %137, %140 : vector<2x64x3xf32>
    %142 = tpu.concatenate %127, %141 in 2 : vector<2x64x32xf32>, vector<2x64x3xf32> -> vector<2x64x35xf32>
    %143 = vector.shape_cast %142 : vector<2x64x35xf32> to vector<128x35xf32>
    %c0_37 = arith.constant 0 : index
    %c0_38 = arith.constant 0 : index
    %144 = vector.load %arg8[%c0_37, %c0_38] : memref<128x35xf32, #tpu.memory_space<vmem>>, vector<128x35xf32>
    tpu.vector_store %arg8[%c0_37, %c0_38], %143 {strides = array<i32>} : memref<128x35xf32, #tpu.memory_space<vmem>>, vector<128x35xf32>,
    return
  }
  func.func @transform_0(%arg0: i32) -> (i32, i32) {
    %c0_i32 = arith.constant 0 : i32
    %c0_i32_0 = arith.constant 0 : i32
    return %arg0, %c0_i32 : i32, i32
  }
  func.func @transform_1(%arg0: i32) -> (i32, i32) {
    %c0_i32 = arith.constant 0 : i32
    %c0_i32_0 = arith.constant 0 : i32
    return %arg0, %c0_i32 : i32, i32
  }
  func.func @transform_2(%arg0: i32) -> (i32, i32) {
    %c0_i32 = arith.constant 0 : i32
    %c0_i32_0 = arith.constant 0 : i32
    %c0_i32_1 = arith.constant 0 : i32
    return %c0_i32, %c0_i32_0 : i32, i32
  }
  func.func @transform_3(%arg0: i32) -> (i32, i32) {
    %c0_i32 = arith.constant 0 : i32
    %c0_i32_0 = arith.constant 0 : i32
    %c0_i32_1 = arith.constant 0 : i32
    return %c0_i32, %c0_i32_0 : i32, i32
  }
  func.func @transform_4(%arg0: i32) -> (i32, i32) {
    %c0_i32 = arith.constant 0 : i32
    %c0_i32_0 = arith.constant 0 : i32
    %c0_i32_1 = arith.constant 0 : i32
    return %c0_i32, %c0_i32_0 : i32, i32
  }
  func.func @transform_5(%arg0: i32) -> (i32, i32) {
    %c0_i32 = arith.constant 0 : i32
    %c0_i32_0 = arith.constant 0 : i32
    %c0_i32_1 = arith.constant 0 : i32
    return %c0_i32, %c0_i32_0 : i32, i32
  }
  func.func @transform_6(%arg0: i32) -> (i32, i32) {
    %c0_i32 = arith.constant 0 : i32
    %c0_i32_0 = arith.constant 0 : i32
    %c0_i32_1 = arith.constant 0 : i32
    return %c0_i32, %c0_i32_0 : i32, i32
  }
  func.func @transform_7(%arg0: i32) -> (i32, i32) {
    %c0_i32 = arith.constant 0 : i32
    %c0_i32_0 = arith.constant 0 : i32
    return %arg0, %c0_i32 : i32, i32
  }
}

</mosaic_0001>

<bundles_post_ra>
// kernel: encoder_block_forward.1
= control target key start
LH: loop header
LB: loop body
LE: loop exit
PB: predicated region body
PF: predicated region fallthrough
CT: control target
= control target key end

     0   :  { %v150_v0 = vlaneseq  ;;  %v4095_v1 = vmov 1966171168   ;;  %vm195_vm0 = vcmask 261120   ;;  %vm53_vm5 = vcmask 785408   ;;  %s4097_s14 = smov 32   ;;  %s4099_s15 = smov 64   ;;  %s5839_s1 = inlined_call_operand.vmem [shape: f32[2,96], index: 1, kind: input, shape index: {}]   ;;  %s5840_s0 = inlined_call_operand.vmem [shape: f32[128,32], index: 0, kind: input, shape index: {}]   ;;  %s5841_s4 = inlined_call_operand.vmem [shape: f32[96,163], index: 4, kind: input, shape index: {}]   ;;  %s5842_s2 = inlined_call_operand.vmem [shape: f32[32,96], index: 2, kind: input, shape index: {}]   ;;  %s5843_s3 = inlined_call_operand.vmem [shape: f32[64,64], index: 3, kind: input, shape index: {}]   ;;  %s5844_s5 = inlined_call_operand.vmem [shape: f32[32,3], index: 5, kind: input, shape index: {}]   ;;  %s5845_s6 = inlined_call_operand.vmem [shape: f32[1,35], index: 6, kind: input, shape index: {}]   ;;  %s5846_s7 = inlined_call_operand.vmem [shape: f32[128,35], index: 7, kind: output, shape index: {}]  }
   0x1   :  { %v148_v2 = vunpack.c.l.s4 %v4095_v1  ;;  %v4144_v5 = vld [vmem:[%s5839_s1] sm:$0x3]  ;;  %v132_v11 = vld [vmem:[%s5840_s0 + $0x10] sm:$0xff]  ;;  %v131_v12 = vld [vmem:[%s5840_s0 + $0x8] sm:$0xff]  ;;  %vm606_vm6 = vcmask 523264  }
   0x2   :  { %v151_v3 = vshrl.u32 %v150_v0, 7  ;;  %v130_v9 = vld [vmem:[%s5840_s0] sm:$0xff]  ;;  %v133_v13 = vld [vmem:[%s5840_s0 + $0x18] sm:$0xff]  ;;  %v135_v21 = vld [vmem:[%s5840_s0 + $0x28] sm:$0xff]  ;;  %v658_v62 = vand.u32 127, %v150_v0 }
   0x3   :  { %v149_v4 = vunpack.c.0.s8 %v148_v2  ;;  %v134_v20 = vld [vmem:[%s5840_s0 + $0x20] sm:$0xff]  ;;  %v136_v29 = vld [vmem:[%s5840_s0 + $0x30] sm:$0xff]  ;;  %v137_v30 = vld [vmem:[%s5840_s0 + $0x38] sm:$0xff] }
   0x4   :  { %v4150_v8 = vsub.s32 0, %v151_v3  ;;  %v138_v36 = vld [vmem:[%s5840_s0 + $0x40] sm:$0xff]  ;;  %v139_v37 = vld [vmem:[%s5840_s0 + $0x48] sm:$0xff]  ;;  %v140_v42 = vld [vmem:[%s5840_s0 + $0x50] sm:$0xff]  ;;  %vm660_vm1 = vcmp.lt.s32.totalorder %v658_v62, 16  ;;  %vm1230_vm2 = vcmp.ge.s32.totalorder %v658_v62, 16 }
   0x5   :  { %v4146_v6 = vsub.s32 %v149_v4, %v151_v3  ;;  %v141_v43 = vld [vmem:[%s5840_s0 + $0x58] sm:$0xff]  ;;  %v142_v48 = vld [vmem:[%s5840_s0 + $0x60] sm:$0xff]  ;;  %v143_v49 = vld [vmem:[%s5840_s0 + $0x68] sm:$0xff]  ;;  %v4096_v3 = vmov 0.0   ;;  %vm1231_vm3 = vcmp.lt.s32.totalorder %v658_v62, 32 }
   0x6   :  { %5876 = vst [vmem:[#allocation3_spill] sm:$0xff] %v4150_v8  ;;  %v144_v54 = vld [vmem:[%s5840_s0 + $0x70] sm:$0xff]  ;;  %v145_v55 = vld [vmem:[%s5840_s0 + $0x78] sm:$0xff]  ;;  %v50_v2 = vld [vmem:[%s5841_s4 + $0xa8] sm:$0xff]  ;;  %121 = vmatprep.mubr.f32.mxu0 %v4096_v3 }
   0x7   :  { %5875 = vst [vmem:[#allocation2_spill] sm:$0xff] %v4146_v6  ;;  %v153_v7 = vrot.slane %v4144_v5, %v4146_v6  ;;  %v52_v63 = vld [vmem:[%s5841_s4 + $0xb8] sm:$0xff]  ;;  %v51_v1 = vld [vmem:[%s5841_s4 + $0xb0] sm:$0xff]  ;;  %v49_v4 = vld [vmem:[%s5841_s4 + $0xa0] sm:$0xff] }
   0x8   :  { %65 = vmatprep.subr.mxu0 %v52_v63  ;;  %v48_v0 = vld [vmem:[%s5841_s4 + $0x98] sm:$0xff]  ;;  %vm1232_vm4 = vmand %vm1230_vm2, %vm1231_vm3 }
   0x9   :  { %v161_v10 = vrot.slane %v153_v7, %v4146_v6  ;;  %v154_v15 = vcombine.high %v153_v7, %v153_v7  ;;  %66 = vmatpush1.msra.mxu0 %v51_v1  ;;  %v4304_v7 = vsel %vm660_vm1, 1.0, %v4096_v3 }
   0xa   :  { %67 = vmatprep.subr.mxu0 %v50_v2 }
   0xb   :  { %v4166_v14 = vrot.slane %v161_v10, %v4150_v8  ;;  %v168_v24 = vrot.slane %v154_v15, %v4146_v6  ;;  %68 = vmatpush1.msra.mxu0 %v49_v4  ;;  %v46_v10 = vld [vmem:[%s5841_s4 + $0x88] sm:$0xff] }
   0xc   :  { %69 = vmatprep.subr.mxu0 %v48_v0  ;;  %v42_v15 = vld [vmem:[%s5841_s4 + $0x68] sm:$0xff] }
   0xd   :  { %v4169_v16 = vmul.f32 %v4166_v14, %v130_v9  ;;  %v4172_v17 = vmul.f32 %v4166_v14, %v132_v11  ;;  %v4175_v18 = vmul.f32 %v4166_v14, %v131_v12  ;;  %v4178_v19 = vmul.f32 %v4166_v14, %v133_v13  ;;  %v47_v9 = vld [vmem:[%s5841_s4 + $0x90] sm:$0xff]  ;;  %v45_v11 = vld [vmem:[%s5841_s4 + $0x80] sm:$0xff]  ;;  %v44_v12 = vld [vmem:[%s5841_s4 + $0x78] sm:$0xff] }
   0xe   :  { %v4196_v27 = vmul.f32 %v4166_v14, %v134_v20  ;;  %v4199_v28 = vmul.f32 %v4166_v14, %v135_v21  ;;  %v4208_v31 = vmul.f32 %v4166_v14, %v136_v29  ;;  %v4215_v34 = vmul.f32 %v4166_v14, %v137_v30  ;;  %70 = vmatpush1.msra.mxu0 %v47_v9  ;;  %v43_v13 = vld [vmem:[%s5841_s4 + $0x70] sm:$0xff]  ;;  %v41_v20 = vld [vmem:[%s5841_s4 + $0x60] sm:$0xff]  ;;  %v34_v30 = vld [vmem:[%s5841_s4 + $0x28] sm:$0xff] }
   0xf   :  { %v196_v22 = vsel %vm195_vm0, %v4169_v16, 0.0  ;;  %v202_v23 = vsel %vm195_vm0, %v4172_v17, 0.0  ;;  %v199_v25 = vsel %vm195_vm0, %v4175_v18, 0.0  ;;  %v205_v26 = vsel %vm195_vm0, %v4178_v19, 0.0  ;;  %71 = vmatprep.subr.mxu0 %v46_v10  ;;  %v35_v29 = vld [vmem:[%s5841_s4 + $0x30] sm:$0xff] }
  0x10   :  { %197 = vadd.xlane.f32.xlu0 %v196_v22  ;;  %203 = vadd.xlane.f32.xlu1 %v202_v23  ;;  %v208_v32 = vsel %vm195_vm0, %v4196_v27, 0.0  ;;  %v211_v33 = vsel %vm195_vm0, %v4199_v28, 0.0  ;;  %v4218_v35 = vrot.slane %v168_v24, %v4150_v8  ;;  %v214_v38 = vsel %vm195_vm0, %v4208_v31, 0.0  ;;  %v40_v22 = vld [vmem:[%s5841_s4 + $0x58] sm:$0xff]  ;;  %v39_v23 = vld [vmem:[%s5841_s4 + $0x50] sm:$0xff]  ;;  %v38_v24 = vld [vmem:[%s5841_s4 + $0x48] sm:$0xff] }
  0x11   :  { %v217_v39 = vsel %vm195_vm0, %v4215_v34, 0.0  ;;  %72 = vmatpush1.msra.mxu0 %v45_v11  ;;  %v4327_v21 = vsel %vm1232_vm4, 1.0, %v4096_v3 }
  0x12   :  { %5877 = vst [vmem:[#allocation4_spill] sm:$0xff] %v4218_v35  ;;  %v4231_v40 = vmul.f32 %v4218_v35, %v138_v36  ;;  %v4234_v41 = vmul.f32 %v4218_v35, %v139_v37  ;;  %v4247_v46 = vmul.f32 %v4218_v35, %v140_v42  ;;  %v4250_v47 = vmul.f32 %v4218_v35, %v141_v43  ;;  %v31_v36 = vld [vmem:[%s5841_s4 + $0x10] sm:$0xff]  ;;  %v30_v37 = vld [vmem:[%s5841_s4 + $0x8] sm:$0xff] }
  0x13   :  { %v4263_v52 = vmul.f32 %v4218_v35, %v142_v48  ;;  %v4266_v53 = vmul.f32 %v4218_v35, %v143_v49  ;;  %v4279_v58 = vmul.f32 %v4218_v35, %v144_v54  ;;  %v4282_v59 = vmul.f32 %v4218_v35, %v145_v55  ;;  %73 = vmatprep.subr.mxu0 %v44_v12 }
  0x14   :  { %200 = vadd.xlane.f32.xlu0 %v199_v25  ;;  %206 = vadd.xlane.f32.xlu1 %v205_v26  ;;  %v220_v44 = vsel %vm195_vm0, %v4231_v40, 0.0  ;;  %v223_v45 = vsel %vm195_vm0, %v4234_v41, 0.0  ;;  %v226_v50 = vsel %vm195_vm0, %v4247_v46, 0.0  ;;  %v229_v51 = vsel %vm195_vm0, %v4250_v47, 0.0  ;;  %v37_v25 = vld [vmem:[%s5841_s4 + $0x40] sm:$0xff]  ;;  %v36_v26 = vld [vmem:[%s5841_s4 + $0x38] sm:$0xff] }
  0x15   :  { %v232_v56 = vsel %vm195_vm0, %v4263_v52, 0.0  ;;  %v235_v57 = vsel %vm195_vm0, %v4266_v53, 0.0  ;;  %v238_v60 = vsel %vm195_vm0, %v4279_v58, 0.0  ;;  %v241_v61 = vsel %vm195_vm0, %v4282_v59, 0.0  ;;  %74 = vmatpush1.msra.mxu0 %v43_v13 }
  0x16   :  { %75 = vmatprep.subr.mxu0 %v42_v15 }
  0x17   :  { %76 = vmatpush1.msra.mxu0 %v41_v20 }
  0x18   :  { %209 = vadd.xlane.f32.xlu0 %v208_v32  ;;  %212 = vadd.xlane.f32.xlu1 %v211_v33  ;;  %v33_v32 = vld [vmem:[%s5841_s4 + $0x20] sm:$0xff]  ;;  %v32_v33 = vld [vmem:[%s5841_s4 + $0x18] sm:$0xff] }
  0x19   :  { %77 = vmatprep.subr.mxu0 %v40_v22 }
  0x1a   :  { %78 = vmatpush1.msra.mxu0 %v39_v23 }
  0x1b   :  { %79 = vmatprep.subr.mxu0 %v38_v24 }
  0x1c   :  { %215 = vadd.xlane.f32.xlu0 %v214_v38  ;;  %218 = vadd.xlane.f32.xlu1 %v217_v39  ;;  %v29_v38 = vld [vmem:[%s5841_s4] sm:$0xff]  ;;  %v28_v39 = vmul.f32 %v4144_v5, %v4144_v5 }
  0x1d   :  { %80 = vmatpush1.msra.mxu0 %v37_v25 }
  0x1e   :  { %81 = vmatprep.subr.mxu0 %v36_v26 }
  0x1f   :  { %82 = vmatpush1.msra.mxu0 %v35_v29 }
  0x20   :  { %221 = vadd.xlane.f32.xlu0 %v220_v44  ;;  %224 = vadd.xlane.f32.xlu1 %v223_v45 }
  0x21   :  { %83 = vmatprep.subr.mxu0 %v34_v30 }
  0x22   :  { %84 = vmatpush1.msra.mxu0 %v33_v32 }
  0x23   :  { %85 = vmatprep.subr.mxu0 %v32_v33 }
  0x24   :  { %227 = vadd.xlane.f32.xlu0 %v226_v50  ;;  %230 = vadd.xlane.f32.xlu1 %v229_v51 }
  0x25   :  { %86 = vmatpush1.msra.mxu0 %v31_v36 }
  0x26   :  { %87 = vmatprep.subr.mxu0 %v30_v37 }
  0x27   :  { %88 = vmatpush1.msra.mxu0 %v29_v38 }
  0x28   :  { %233 = vadd.xlane.f32.xlu0 %v232_v56  ;;  %236 = vadd.xlane.f32.xlu1 %v235_v57 }
  0x29   :  { %3229 = vmatmul.mubr.msk.f32.vlgmr.msra.gmra.mxu0 %vm53_vm5, %v28_v39 }
  0x2c   :  { %239 = vadd.xlane.f32.xlu0 %v238_v60  ;;  %242 = vadd.xlane.f32.xlu1 %v241_v61 }
  0x99   :  { %v198_v42 = vpop.xlane.xlu0 %197  ;;  %v204_v43 = vpop.xlane.xlu1 %203 }
  0x9a   :  { %v245_v44 = vmul.f32 0.03125, %v198_v42  ;;  %v247_v45 = vmul.f32 0.03125, %v204_v43 }
  0x9c   :  { %v4368_v48 = vsub.f32 %v4169_v16, %v245_v44  ;;  %v4371_v49 = vsub.f32 %v4172_v17, %v247_v45 }
  0x9d   :  { %v201_v50 = vpop.xlane.xlu0 %200  ;;  %v207_v51 = vpop.xlane.xlu1 %206 }
  0x9e   :  { %v246_v54 = vmul.f32 0.03125, %v201_v50  ;;  %v248_v55 = vmul.f32 0.03125, %v207_v51  ;;  %v277_v56 = vmul.f32 %v4368_v48, %v4368_v48  ;;  %v279_v57 = vmul.f32 %v4371_v49, %v4371_v49 }
  0xa0   :  { %v4378_v60 = vsub.f32 %v4175_v18, %v246_v54  ;;  %v4381_v61 = vsub.f32 %v4178_v19, %v248_v55  ;;  %v293_v16 = vsel %vm195_vm0, %v277_v56, 0.0  ;;  %v299_v63 = vsel %vm195_vm0, %v279_v57, 0.0 }
  0xa1   :  { %294 = vadd.xlane.f32.xlu0 %v293_v16  ;;  %v210_v17 = vpop.xlane.xlu0 %209  ;;  %v213_v62 = vpop.xlane.xlu1 %212 }
  0xa2   :  { %v249_v1 = vmul.f32 0.03125, %v210_v17  ;;  %v250_v2 = vmul.f32 0.03125, %v213_v62  ;;  %v278_v3 = vmul.f32 %v4378_v60, %v4378_v60  ;;  %v280_v4 = vmul.f32 %v4381_v61, %v4381_v61 }
  0xa4   :  { %v4390_v18 = vsub.f32 %v4196_v27, %v249_v1  ;;  %v4393_v19 = vsub.f32 %v4199_v28, %v250_v2  ;;  %v296_v0 = vsel %vm195_vm0, %v278_v3, 0.0  ;;  %v302_v11 = vsel %vm195_vm0, %v280_v4, 0.0 }
  0xa5   :  { %300 = vadd.xlane.f32.xlu0 %v299_v63  ;;  %297 = vadd.xlane.f32.xlu1 %v296_v0  ;;  %v216_v9 = vpop.xlane.xlu0 %215  ;;  %v219_v10 = vpop.xlane.xlu1 %218 }
  0xa6   :  { %v251_v12 = vmul.f32 0.03125, %v216_v9  ;;  %v252_v13 = vmul.f32 0.03125, %v219_v10  ;;  %v281_v15 = vmul.f32 %v4390_v18, %v4390_v18  ;;  %v282_v27 = vmul.f32 %v4393_v19, %v4393_v19 }
  0xa8   :  { %v4402_v20 = vsub.f32 %v4208_v31, %v251_v12  ;;  %v4405_v28 = vsub.f32 %v4215_v34, %v252_v13  ;;  %v305_v22 = vsel %vm195_vm0, %v281_v15, 0.0  ;;  %v308_v25 = vsel %vm195_vm0, %v282_v27, 0.0  ;;  %v406_v27 = vld [vmem:[%s5842_s2 + $0x8] sm:$0xff] }
  0xa9   :  { %303 = vadd.xlane.f32.xlu1 %v302_v11  ;;  %306 = vadd.xlane.f32.xlu0 %v305_v22  ;;  %v222_v23 = vpop.xlane.xlu0 %221  ;;  %v225_v24 = vpop.xlane.xlu1 %224  ;;  %v405_v22 = vld [vmem:[%s5842_s2] sm:$0xff] }
  0xaa   :  { %v253_v26 = vmul.f32 0.03125, %v222_v23  ;;  %v254_v29 = vmul.f32 0.03125, %v225_v24  ;;  %v283_v30 = vmul.f32 %v4402_v20, %v4402_v20  ;;  %v284_v31 = vmul.f32 %v4405_v28, %v4405_v28 }
  0xac   :  { %v4414_v32 = vsub.f32 %v4231_v40, %v253_v26  ;;  %v4417_v34 = vsub.f32 %v4234_v41, %v254_v29  ;;  %v311_v33 = vsel %vm195_vm0, %v283_v30, 0.0  ;;  %v314_v38 = vsel %vm195_vm0, %v284_v31, 0.0 }
  0xad   :  { %309 = vadd.xlane.f32.xlu1 %v308_v25  ;;  %312 = vadd.xlane.f32.xlu0 %v311_v33  ;;  %v228_v36 = vpop.xlane.xlu0 %227  ;;  %v231_v37 = vpop.xlane.xlu1 %230 }
  0xae   :  { %v255_v39 = vmul.f32 0.03125, %v228_v36  ;;  %v256_v42 = vmul.f32 0.03125, %v231_v37  ;;  %v285_v43 = vmul.f32 %v4414_v32, %v4414_v32  ;;  %v286_v40 = vmul.f32 %v4417_v34, %v4417_v34 }
  0xb0   :  { %v4426_v44 = vsub.f32 %v4247_v46, %v255_v39  ;;  %v4429_v41 = vsub.f32 %v4250_v47, %v256_v42  ;;  %v317_v45 = vsel %vm195_vm0, %v285_v43, 0.0  ;;  %v320_v54 = vsel %vm195_vm0, %v286_v40, 0.0 }
  0xb1   :  { %315 = vadd.xlane.f32.xlu1 %v314_v38  ;;  %318 = vadd.xlane.f32.xlu0 %v317_v45  ;;  %v234_v50 = vpop.xlane.xlu0 %233  ;;  %v237_v51 = vpop.xlane.xlu1 %236 }
  0xb2   :  { %v257_v55 = vmul.f32 0.03125, %v234_v50  ;;  %v258_v56 = vmul.f32 0.03125, %v237_v51  ;;  %v287_v57 = vmul.f32 %v4426_v44, %v4426_v44  ;;  %v288_v46 = vmul.f32 %v4429_v41, %v4429_v41 }
  0xb4   :  { %v4438_v16 = vsub.f32 %v4263_v52, %v257_v55  ;;  %v4441_v47 = vsub.f32 %v4266_v53, %v258_v56  ;;  %v323_v17 = vsel %vm195_vm0, %v287_v57, 0.0  ;;  %v326_v1 = vsel %vm195_vm0, %v288_v46, 0.0 }
  0xb5   :  { %321 = vadd.xlane.f32.xlu1 %v320_v54  ;;  %324 = vadd.xlane.f32.xlu0 %v323_v17  ;;  %v240_v62 = vpop.xlane.xlu0 %239  ;;  %v243_v63 = vpop.xlane.xlu1 %242 }
  0xb6   :  { %v259_v2 = vmul.f32 0.03125, %v240_v62  ;;  %v260_v3 = vmul.f32 0.03125, %v243_v63  ;;  %v289_v4 = vmul.f32 %v4438_v16, %v4438_v16  ;;  %v290_v52 = vmul.f32 %v4441_v47, %v4441_v47 }
  0xb8   :  { %v4450_v0 = vsub.f32 %v4279_v58, %v259_v2  ;;  %v4453_v53 = vsub.f32 %v4282_v59, %v260_v3  ;;  %v329_v9 = vsel %vm195_vm0, %v289_v4, 0.0  ;;  %v332_v10 = vsel %vm195_vm0, %v290_v52, 0.0  ;;  %v408_v58 = vld [vmem:[%s5842_s2 + $0x18] sm:$0xff]  ;;  %v407_v59 = vld [vmem:[%s5842_s2 + $0x10] sm:$0xff]  ;;  %s4098_s2 = smov 96  }
  0xb9   :  { %327 = vadd.xlane.f32.xlu1 %v326_v1  ;;  %330 = vadd.xlane.f32.xlu0 %v329_v9 }
  0xba   :  { %v291_v11 = vmul.f32 %v4450_v0, %v4450_v0  ;;  %v292_v12 = vmul.f32 %v4453_v53, %v4453_v53  ;;  %3585 = vmatprep.subr.mxu1 %v408_v58 }
  0xbb   :  { %3586 = vmatpush3.msra.mxu1 %v408_v58 }
  0xbc   :  { %v335_v13 = vsel %vm195_vm0, %v291_v11, 0.0  ;;  %v338_v15 = vsel %vm195_vm0, %v292_v12, 0.0  ;;  %3587 = vmatprep.subr.mxu1 %v407_v59 }
  0xbd   :  { %333 = vadd.xlane.f32.xlu1 %v332_v10  ;;  %336 = vadd.xlane.f32.xlu0 %v335_v13 }
  0xbe   :  { %3588 = vmatpush3.msra.mxu1 %v407_v59 }
  0xbf   :  { %3589 = vmatprep.subr.mxu1 %v406_v27 }
  0xc0   :  { %3590 = vmatpush3.msra.mxu1 %v406_v27 }
  0xc1   :  { %339 = vadd.xlane.f32.xlu1 %v338_v15  ;;  %3591 = vmatprep.subr.mxu1 %v405_v22 }
  0xc2   :  { %3592 = vmatpush3.msra.mxu1 %v405_v22 }
  0xd3   :  { %602 = vrot.lane.b32.xlu0 %v4144_v5, %s4097_s14 }
 0x12a   :  { %v295_v23 = vpop.xlane.xlu0 %294 }
 0x12b   :  { %v341_v24 = vmul.f32 0.03125, %v295_v23 }
 0x12d   :  { %v357_v25 = vadd.f32 1e-05, %v341_v24 }
 0x12e   :  { %v298_v26 = vpop.xlane.xlu1 %297  ;;  %v301_v29 = vpop.xlane.xlu0 %300 }
 0x12f   :  { %3931 = vrsqrt.f32 %v357_v25  ;;  %v342_v30 = vmul.f32 0.03125, %v298_v26  ;;  %v343_v31 = vmul.f32 0.03125, %v301_v29 }
 0x131   :  { %v358_v33 = vadd.f32 1e-05, %v342_v30  ;;  %v359_v36 = vadd.f32 1e-05, %v343_v31 }
 0x132   :  { %v304_v37 = vpop.xlane.xlu1 %303  ;;  %v307_v38 = vpop.xlane.xlu0 %306 }
 0x133   :  { %3933 = vrsqrt.f32 %v358_v33  ;;  %v344_v39 = vmul.f32 0.03125, %v304_v37  ;;  %v345_v42 = vmul.f32 0.03125, %v307_v38 }
 0x134   :  { %3935 = vrsqrt.f32 %v359_v36 }
 0x135   :  { %v360_v43 = vadd.f32 1e-05, %v344_v39  ;;  %v361_v40 = vadd.f32 1e-05, %v345_v42 }
 0x136   :  { %v310_v45 = vpop.xlane.xlu1 %309  ;;  %v313_v5 = vpop.xlane.xlu0 %312 }
 0x137   :  { %3937 = vrsqrt.f32 %v360_v43  ;;  %v346_v50 = vmul.f32 0.03125, %v310_v45  ;;  %v347_v51 = vmul.f32 0.03125, %v313_v5 }
 0x138   :  { %3939 = vrsqrt.f32 %v361_v40 }
 0x139   :  { %v362_v54 = vadd.f32 1e-05, %v346_v50  ;;  %v363_v55 = vadd.f32 1e-05, %v347_v51 }
 0x13a   :  { %v316_v56 = vpop.xlane.xlu1 %315  ;;  %v319_v57 = vpop.xlane.xlu0 %318 }
 0x13b   :  { %3941 = vrsqrt.f32 %v362_v54  ;;  %v348_v46 = vmul.f32 0.03125, %v316_v56  ;;  %v349_v17 = vmul.f32 0.03125, %v319_v57 }
 0x13c   :  { %v3932_v62 = vpop.eup %3931  ;;  %3943 = vrsqrt.f32 %v363_v55 }
 0x13d   :  { %v364_v63 = vadd.f32 1e-05, %v348_v46  ;;  %v365_v1 = vadd.f32 1e-05, %v349_v17  ;;  %v389_v2 = vmul.f32 %v3932_v62, %v4368_v48 }
 0x13e   :  { %v322_v3 = vpop.xlane.xlu1 %321  ;;  %v325_v4 = vpop.xlane.xlu0 %324 }
 0x13f   :  { %3945 = vrsqrt.f32 %v364_v63  ;;  %v350_v52 = vmul.f32 0.03125, %v322_v3  ;;  %v351_v9 = vmul.f32 0.03125, %v325_v4  ;;  %3593 = vmatprep.mubr.msk.f32.mxu1 %vm195_vm0, %v389_v2 }
 0x140   :  { %v3934_v10 = vpop.eup %3933  ;;  %3947 = vrsqrt.f32 %v365_v1 }
 0x141   :  { %v3936_v11 = vpop.eup %3935  ;;  %v366_v12 = vadd.f32 1e-05, %v350_v52  ;;  %v367_v58 = vadd.f32 1e-05, %v351_v9  ;;  %v390_v13 = vmul.f32 %v3934_v10, %v4378_v60 }
 0x142   :  { %v328_v59 = vpop.xlane.xlu1 %327  ;;  %v331_v15 = vpop.xlane.xlu0 %330  ;;  %v391_v27 = vmul.f32 %v3936_v11, %v4371_v49 }
 0x143   :  { %3949 = vrsqrt.f32 %v366_v12  ;;  %v352_v48 = vmul.f32 0.03125, %v328_v59  ;;  %v353_v22 = vmul.f32 0.03125, %v331_v15  ;;  %3594 = vmatmul.mubr.msk.f32.vlgmr.msra.gmra.mxu1 %vm195_vm0, %v390_v13 }
 0x144   :  { %v3938_v23 = vpop.eup %3937  ;;  %3951 = vrsqrt.f32 %v367_v58  ;;  %3596 = vmatprep.mubr.msk.f32.mxu1 %vm195_vm0, %v391_v27 }
 0x145   :  { %v3940_v24 = vpop.eup %3939  ;;  %v368_v25 = vadd.f32 1e-05, %v352_v48  ;;  %v369_v26 = vadd.f32 1e-05, %v353_v22  ;;  %v392_v29 = vmul.f32 %v3938_v23, %v4381_v61 }
 0x146   :  { %v334_v30 = vpop.xlane.xlu1 %333  ;;  %v337_v60 = vpop.xlane.xlu0 %336  ;;  %v393_v31 = vmul.f32 %v3940_v24, %v4390_v18 }
 0x147   :  { %3953 = vrsqrt.f32 %v368_v25  ;;  %v354_v49 = vmul.f32 0.03125, %v334_v30  ;;  %v355_v33 = vmul.f32 0.03125, %v337_v60  ;;  %3597 = vmatmul.mubr.msk.f32.gmra.mxu1 %vm195_vm0, %v392_v29 }
 0x148   :  { %v3942_v36 = vpop.eup %3941  ;;  %3955 = vrsqrt.f32 %v369_v26  ;;  %3599 = vmatprep.mubr.msk.f32.mxu1 %vm195_vm0, %v393_v31 }
 0x149   :  { %v3944_v37 = vpop.eup %3943  ;;  %v370_v38 = vadd.f32 1e-05, %v354_v49  ;;  %v371_v39 = vadd.f32 1e-05, %v355_v33  ;;  %v394_v42 = vmul.f32 %v3942_v36, %v4393_v19 }
 0x14a   :  { %v340_v43 = vpop.xlane.xlu1 %339  ;;  %v395_v61 = vmul.f32 %v3944_v37, %v4402_v20  ;;  %v603_v2 = vpop.permute.xlu0 %602 }
 0x14b   :  { %3957 = vrsqrt.f32 %v370_v38  ;;  %v356_v40 = vmul.f32 0.03125, %v340_v43  ;;  %3600 = vmatmul.mubr.msk.f32.gmra.mxu1 %vm195_vm0, %v394_v42 }
 0x14c   :  { %v3946_v18 = vpop.eup %3945  ;;  %3959 = vrsqrt.f32 %v371_v39  ;;  %3602 = vmatprep.mubr.msk.f32.mxu1 %vm195_vm0, %v395_v61 }
 0x14d   :  { %v3948_v45 = vpop.eup %3947  ;;  %v372_v5 = vadd.f32 1e-05, %v356_v40  ;;  %v396_v50 = vmul.f32 %v3946_v18, %v4405_v28 }
 0x14e   :  { %v397_v51 = vmul.f32 %v3948_v45, %v4414_v32 }
 0x14f   :  { %3961 = vrsqrt.f32 %v372_v5  ;;  %3603 = vmatmul.mubr.msk.f32.gmra.mxu1 %vm195_vm0, %v396_v50 }
 0x150   :  { %v3950_v19 = vpop.eup %3949  ;;  %3605 = vmatprep.mubr.msk.f32.mxu1 %vm195_vm0, %v397_v51 }
 0x151   :  { %v3952_v20 = vpop.eup %3951  ;;  %v398_v54 = vmul.f32 %v3950_v19, %v4417_v34 }
 0x152   :  { %v399_v55 = vmul.f32 %v3952_v20, %v4426_v44 }
 0x153   :  { %3606 = vmatmul.mubr.msk.f32.gmra.mxu1 %vm195_vm0, %v398_v54  ;;  %v3926_v54 = vpack.i.bf16 %v4304_v7, %v4327_v21 }
 0x154   :  { %v3954_v56 = vpop.eup %3953  ;;  %3608 = vmatprep.mubr.msk.f32.mxu1 %vm195_vm0, %v399_v55 }
 0x155   :  { %v3956_v57 = vpop.eup %3955  ;;  %v400_v28 = vmul.f32 %v3954_v56, %v4429_v41  ;;  %v123_v41 = vpop.f32.mrf.mxu0 }
 0x156   :  { %v401_v32 = vmul.f32 %v3956_v57, %v4438_v16  ;;  %v124_v16 = vadd.f32 1e-08, %v123_v41 }
 0x157   :  { %3609 = vmatmul.mubr.msk.f32.gmra.mxu1 %vm195_vm0, %v400_v28 }
 0x158   :  { %v3958_v46 = vpop.eup %3957  ;;  %3611 = vmatprep.mubr.msk.f32.mxu1 %vm195_vm0, %v401_v32  ;;  %3963 = vrsqrt.f32 %v124_v16 }
 0x159   :  { %v3960_v17 = vpop.eup %3959  ;;  %v402_v34 = vmul.f32 %v3958_v46, %v4441_v47 }
 0x15a   :  { %v403_v44 = vmul.f32 %v3960_v17, %v4450_v0 }
 0x15b   :  { %3612 = vmatmul.mubr.msk.f32.gmra.mxu1 %vm195_vm0, %v402_v34 }
 0x15c   :  { %v3962_v62 = vpop.eup %3961  ;;  %3614 = vmatprep.mubr.msk.f32.mxu1 %vm195_vm0, %v403_v44 }
 0x15d   :  { %v404_v63 = vmul.f32 %v3962_v62, %v4453_v53 }
 0x15f   :  { %3615 = vmatmul.mubr.msk.f32.gmra.mxu1 %vm195_vm0, %v404_v63 }
 0x165   :  { %v4509_v1 = vpop.eup %3963 }
 0x166   :  { %v605_v3 = vmul.f32 %v4509_v1, %v603_v2 }
 0x168   :  { %v607_v47 = vsel %vm606_vm6, %v4509_v1, %v605_v3 }
 0x169   :  { %v615_v0 = vrot.slane %v607_v47, %v4146_v6 }
 0x16b   :  { %v623_v4 = vrot.slane %v615_v0, %v4146_v6  ;;  %v616_v59 = vcombine.high %v615_v0, %v615_v0 }
 0x16d   :  { %v634_v53 = vrot.slane %v623_v4, %v4150_v8  ;;  %v630_v22 = vrot.slane %v616_v59, %v4146_v6 }
 0x16f   :  { %v638_v26 = vrot.slane %v630_v22, %v4150_v8 }
 0x203   :  { %v3595_v52 = vpop.f32.mrf.mxu1 }
 0x204   :  { %v4557_v18 = vmul.f32 %v3595_v52, %v634_v53 }
 0x205   :  { %v523_v9 = vpop.f32.mrf.mxu1 }
 0x206   :  { %v4517_v10 = vmul.f32 %v634_v53, %v523_v9  ;;  %v665_v2 = vmul.f32 %v4304_v7, %v4557_v18 }
 0x207   :  { %v3598_v11 = vpop.f32.mrf.mxu1 }
 0x208   :  { %v664_v12 = vmul.f32 %v4304_v7, %v4517_v10  ;;  %v4545_v38 = vmul.f32 %v3598_v11, %v634_v53 }
 0x209   :  { %v533_v58 = vpop.f32.mrf.mxu1 }
 0x20a   :  { %3633 = vmatprep.mubr.msk.f32.mxu1 %vm195_vm0, %v664_v12  ;;  %v4549_v43 = vmul.f32 %v634_v53, %v533_v58  ;;  %v667_v4 = vmul.f32 %v4304_v7, %v4545_v38 }
 0x20b   :  { %v3601_v13 = vpop.f32.mrf.mxu1 }
 0x20c   :  { %v4538_v49 = vmul.f32 %v3601_v13, %v634_v53  ;;  %v666_v47 = vmul.f32 %v4304_v7, %v4549_v43 }
 0x20d   :  { %v543_v15 = vpop.f32.mrf.mxu1 }
 0x20e   :  { %v4522_v27 = vmul.f32 %v634_v53, %v543_v15  ;;  %v669_v11 = vmul.f32 %v4304_v7, %v4538_v49 }
 0x20f   :  { %v3604_v48 = vpop.f32.mrf.mxu1 }
 0x210   :  { %v4525_v23 = vmul.f32 %v3604_v48, %v634_v53  ;;  %696 = vrot.lane.b32.xlu0 %v4522_v27, %s4098_s2 }
 0x211   :  { %v553_v24 = vpop.f32.mrf.mxu1 }
 0x212   :  { %702 = vrot.lane.b32.xlu1 %v4525_v23, %s4098_s2  ;;  %v4532_v29 = vmul.f32 %v634_v53, %v553_v24  ;;  %v668_v53 = vmul.f32 %v4304_v7, %v4522_v27  ;;  %v671_v15 = vmul.f32 %v4304_v7, %v4525_v23  ;;  %v1235_v24 = vmul.f32 %v4327_v21, %v4517_v10 }
 0x213   :  { %v3607_v25 = vpop.f32.mrf.mxu1 }
 0x214   :  { %v4579_v19 = vmul.f32 %v3607_v25, %v638_v26  ;;  %v670_v13 = vmul.f32 %v4304_v7, %v4532_v29 }
 0x215   :  { %v563_v30 = vpop.f32.mrf.mxu1 }
 0x216   :  { %v4534_v60 = vmul.f32 %v638_v26, %v563_v30  ;;  %700 = vrot.lane.b32.xlu1 %v4532_v29, %s4098_s2  ;;  %v673_v30 = vmul.f32 %v4304_v7, %v4579_v19 }
 0x217   :  { %v3610_v31 = vpop.f32.mrf.mxu1 }
 0x218   :  { %v672_v33 = vmul.f32 %v4304_v7, %v4534_v60  ;;  %v4571_v50 = vmul.f32 %v3610_v31, %v638_v26 }
 0x219   :  { %v573_v36 = vpop.f32.mrf.mxu1 }
 0x21a   :  { %698 = vrot.lane.b32.xlu1 %v4538_v49, %s4098_s2  ;;  %3661 = vmatprep.mubr.msk.f32.mxu0 %vm195_vm0, %v672_v33  ;;  %v4581_v20 = vmul.f32 %v638_v26, %v573_v36 }
 0x21b   :  { %v3613_v37 = vpop.f32.mrf.mxu1 }
 0x21c   :  { %v4565_v5 = vmul.f32 %v3613_v37, %v638_v26  ;;  %v674_v31 = vmul.f32 %v4304_v7, %v4581_v20 }
 0x21d   :  { %v583_v39 = vpop.f32.mrf.mxu1 }
 0x21e   :  { %694 = vrot.lane.b32.xlu1 %v4545_v38, %s4098_s2  ;;  %v4573_v51 = vmul.f32 %v638_v26, %v583_v39  ;;  %v675_v39 = vmul.f32 %v4304_v7, %v4571_v50 }
 0x21f   :  { %v3616_v42 = vpop.f32.mrf.mxu1 }
 0x220   :  { %v4551_v61 = vmul.f32 %v3616_v42, %v638_v26  ;;  %v676_v42 = vmul.f32 %v4304_v7, %v4573_v51 }
 0x221   :  { %v593_v40 = vpop.f32.mrf.mxu1 }
 0x222   :  { %692 = vrot.lane.b32.xlu1 %v4549_v43, %s4098_s2  ;;  %871 = vrot.lane.b32.xlu0 %v4551_v61, %s4098_s2  ;;  %v4559_v45 = vmul.f32 %v638_v26, %v593_v40 }
 0x226   :  { %690 = vrot.lane.b32.xlu1 %v4557_v18, %s4098_s2  ;;  %869 = vrot.lane.b32.xlu0 %v4559_v45, %s4098_s2 }
 0x22a   :  { %688 = vrot.lane.b32.xlu1 %v4517_v10, %s4098_s2  ;;  %867 = vrot.lane.b32.xlu0 %v4565_v5, %s4098_s2 }
 0x22e   :  { %865 = vrot.lane.b32.xlu0 %v4573_v51, %s4098_s2  ;;  %863 = vrot.lane.b32.xlu1 %v4571_v50, %s4098_s2 }
 0x232   :  { %861 = vrot.lane.b32.xlu0 %v4581_v20, %s4098_s2  ;;  %859 = vrot.lane.b32.xlu1 %v4579_v19, %s4098_s2 }
 0x236   :  { %3927 = vrot.lane.b32.xlu1 %v3926_v54, %s4099_s15  ;;  %857 = vrot.lane.b32.xlu0 %v4534_v60, %s4098_s2 }
 0x282   :  { %v4608_v28 = vpop.permute.xlu0 %696 }
 0x283   :  { %5881 = vst [vmem:[#allocation8_spill] sm:$0xff] %v4608_v28 }
 0x284   :  { %v4592_v55 = vpop.permute.xlu1 %702 }
 0x285   :  { %5878 = vst [vmem:[#allocation5_spill] sm:$0xff] %v4592_v55  ;;  %3617 = vmatprep.subr.msk.mxu1 %vm195_vm0, %v4592_v55 }
 0x286   :  { %3618 = vmatpush3.xpose.msk.msra.mxu1 %vm195_vm0, %v4592_v55 }
 0x288   :  { %v4598_v56 = vpop.permute.xlu1 %700 }
 0x289   :  { %5879 = vst [vmem:[#allocation6_spill] sm:$0xff] %v4598_v56  ;;  %3619 = vmatprep.subr.msk.mxu1 %vm195_vm0, %v4598_v56 }
 0x28a   :  { %3620 = vmatpush3.xpose.msk.msra.mxu1 %vm195_vm0, %v4598_v56 }
 0x28c   :  { %v4604_v57 = vpop.permute.xlu1 %698 }
 0x28d   :  { %5880 = vst [vmem:[#allocation7_spill] sm:$0xff] %v4604_v57  ;;  %3621 = vmatprep.subr.msk.mxu1 %vm195_vm0, %v4604_v57 }
 0x28e   :  { %3622 = vmatpush3.xpose.msk.msra.mxu1 %vm195_vm0, %v4604_v57 }
 0x28f   :  { %3623 = vmatprep.subr.msk.mxu1 %vm195_vm0, %v4608_v28 }
 0x290   :  { %v4614_v32 = vpop.permute.xlu1 %694 }
 0x291   :  { %5882 = vst [vmem:[#allocation9_spill] sm:$0xff] %v4614_v32 }
 0x292   :  { %3624 = vmatpush3.xpose.msk.msra.mxu1 %vm195_vm0, %v4608_v28 }
 0x293   :  { %3625 = vmatprep.subr.msk.mxu1 %vm195_vm0, %v4614_v32 }
 0x294   :  { %v4620_v46 = vpop.permute.xlu1 %692  ;;  %v4622_v17 = vpop.permute.xlu0 %871 }
 0x295   :  { %5883 = vst [vmem:[#allocation10_spill] sm:$0xff] %v4620_v46  ;;  %5884 = vst [vmem:[#allocation11_spill] sm:$0xff] %v4622_v17  ;;  %3645 = vmatprep.subr.msk.mxu0 %vm195_vm0, %v4622_v17 }
 0x296   :  { %3626 = vmatpush3.xpose.msk.msra.mxu1 %vm195_vm0, %v4614_v32  ;;  %3646 = vmatpush3.xpose.msk.msra.mxu0 %vm195_vm0, %v4622_v17 }
 0x297   :  { %3627 = vmatprep.subr.msk.mxu1 %vm195_vm0, %v4620_v46 }
 0x298   :  { %v4632_v34 = vpop.permute.xlu1 %690  ;;  %v4634_v44 = vpop.permute.xlu0 %869 }
 0x299   :  { %5885 = vst [vmem:[#allocation12_spill] sm:$0xff] %v4632_v34  ;;  %5886 = vst [vmem:[#allocation13_spill] sm:$0xff] %v4634_v44  ;;  %3647 = vmatprep.subr.msk.mxu0 %vm195_vm0, %v4634_v44 }
 0x29a   :  { %3628 = vmatpush3.xpose.msk.msra.mxu1 %vm195_vm0, %v4620_v46  ;;  %3648 = vmatpush3.xpose.msk.msra.mxu0 %vm195_vm0, %v4634_v44 }
 0x29b   :  { %3629 = vmatprep.subr.msk.mxu1 %vm195_vm0, %v4632_v34 }
 0x29c   :  { %v4644_v62 = vpop.permute.xlu1 %688  ;;  %v4646_v63 = vpop.permute.xlu0 %867 }
 0x29d   :  { %5887 = vst [vmem:[#allocation14_spill] sm:$0xff] %v4644_v62  ;;  %5888 = vst [vmem:[#allocation15_spill] sm:$0xff] %v4646_v63  ;;  %3649 = vmatprep.subr.msk.mxu0 %vm195_vm0, %v4646_v63 }
 0x29e   :  { %3630 = vmatpush3.xpose.msk.msra.mxu1 %vm195_vm0, %v4632_v34  ;;  %3650 = vmatpush3.xpose.msk.msra.mxu0 %vm195_vm0, %v4646_v63 }
 0x29f   :  { %3631 = vmatprep.subr.msk.mxu1 %vm195_vm0, %v4644_v62 }
 0x2a0   :  { %v4656_v41 = vpop.permute.xlu0 %865  ;;  %v4658_v16 = vpop.permute.xlu1 %863 }
 0x2a1   :  { %5889 = vst [vmem:[#allocation16_spill] sm:$0xff] %v4656_v41  ;;  %5890 = vst [vmem:[#allocation17_spill] sm:$0xff] %v4658_v16  ;;  %3651 = vmatprep.subr.msk.mxu0 %vm195_vm0, %v4656_v41 }
 0x2a2   :  { %3632 = vmatpush3.xpose.msk.msra.mxu1 %vm195_vm0, %v4644_v62  ;;  %3652 = vmatpush3.xpose.msk.msra.mxu0 %vm195_vm0, %v4656_v41 }
 0x2a3   :  { %3653 = vmatprep.subr.msk.mxu0 %vm195_vm0, %v4658_v16  ;;  %3673 = vmatprep.subr.msk.mxu1 %vm195_vm0, %v4592_v55 }
 0x2a4   :  { %v4672_v3 = vpop.permute.xlu1 %859  ;;  %v4677_v0 = vpop.permute.xlu0 %861 }
 0x2a5   :  { %5891 = vst [vmem:[#allocation18_spill] sm:$0xff] %v4672_v3  ;;  %3634 = vmatmul.mubr.msk.f32.vlgmr.msra.gmra.mxu1 %vm195_vm0, %v665_v2  ;;  %5892 = vst [vmem:[#allocation19_spill] sm:$0xff] %v4677_v0  ;;  %v677_v2 = vmul.f32 %v4304_v7, %v4565_v5 }
 0x2a6   :  { %3636 = vmatprep.mubr.msk.f32.mxu1 %vm195_vm0, %v666_v47  ;;  %3654 = vmatpush3.xpose.msk.msra.mxu0 %vm195_vm0, %v4658_v16  ;;  %v678_v47 = vmul.f32 %v4304_v7, %v4559_v45 }
 0x2a7   :  { %3674 = vmatpush3.xpose.msk.msra.mxu1 %vm195_vm0, %v4592_v55  ;;  %3655 = vmatprep.subr.msk.mxu0 %vm195_vm0, %v4677_v0 }
 0x2a8   :  { %3675 = vmatprep.subr.msk.mxu1 %vm195_vm0, %v4598_v56  ;;  %v3928_v52 = vpop.permute.xlu1 %3927  ;;  %v4716_v59 = vpop.permute.xlu0 %857 }
 0x2a9   :  { %v4692_v9 = vunpack.i.l.bf16 %v3928_v52  ;;  %3637 = vmatmul.mubr.msk.f32.gmra.mxu1 %vm195_vm0, %v667_v4  ;;  %5893 = vst [vmem:[#allocation20_spill] sm:$0xff] %v4716_v59  ;;  %v4757_v33 = vunpack.i.h.bf16 %v3928_v52 }
 0x2aa   :  { %3639 = vmatprep.mubr.msk.f32.mxu1 %vm195_vm0, %v668_v53  ;;  %3656 = vmatpush3.xpose.msk.msra.mxu0 %vm195_vm0, %v4677_v0  ;;  %v679_v53 = vmul.f32 %v4304_v7, %v4551_v61 }
 0x2ab   :  { %3676 = vmatpush3.xpose.msk.msra.mxu1 %vm195_vm0, %v4598_v56  ;;  %3657 = vmatprep.subr.msk.mxu0 %vm195_vm0, %v4672_v3  ;;  %v1711_v12 = vmul.f32 %v4692_v9, %v4532_v29  ;;  %v1712_v58 = vmul.f32 %v4692_v9, %v4525_v23  ;;  %v1709_v48 = vmul.f32 %v4692_v9, %v4522_v27 }
 0x2ac   :  { %3677 = vmatprep.subr.msk.mxu1 %vm195_vm0, %v4604_v57  ;;  %v1710_v22 = vmul.f32 %v4692_v9, %v4538_v49  ;;  %v1708_v25 = vmul.f32 %v4692_v9, %v4545_v38  ;;  %v1707_v26 = vmul.f32 %v4692_v9, %v4549_v43  ;;  %v1706_v36 = vmul.f32 %v4692_v9, %v4557_v18 }
 0x2ad   :  { %3640 = vmatmul.mubr.msk.f32.gmra.mxu1 %vm195_vm0, %v669_v11  ;;  %1741 = vrot.lane.b32.xlu1 %v1711_v12, %s4099_s15  ;;  %v1705_v37 = vmul.f32 %v4692_v9, %v4517_v10  ;;  %v1220_v40 = vmul.f32 %v4757_v33, %v4532_v29  ;;  %v1221_v54 = vmul.f32 %v4757_v33, %v4525_v23 }
 0x2ae   :  { %1743 = vrot.lane.b32.xlu0 %v1712_v58, %s4099_s15  ;;  %3642 = vmatprep.mubr.msk.f32.mxu1 %vm195_vm0, %v670_v13  ;;  %v1219_v4 = vmul.f32 %v4757_v33, %v4538_v49  ;;  %v1718_v52 = vmul.f32 %v4692_v9, %v4565_v5  ;;  %v1243_v11 = vmul.f32 %v4327_v21, %v4534_v60 }
 0x2af   :  { %3658 = vmatpush3.xpose.msk.msra.mxu0 %vm195_vm0, %v4672_v3  ;;  %3678 = vmatpush3.xpose.msk.msra.mxu1 %vm195_vm0, %v4604_v57  ;;  %v1218_v7 = vmul.f32 %v4757_v33, %v4522_v27  ;;  %v1236_v12 = vmul.f32 %v4327_v21, %v4557_v18  ;;  %v1717_v58 = vmul.f32 %v4692_v9, %v4573_v51 }
 0x2b0   :  { %3659 = vmatprep.subr.msk.mxu0 %vm195_vm0, %v4716_v59  ;;  %3679 = vmatprep.subr.msk.mxu1 %vm195_vm0, %v4608_v28  ;;  %v1237_v13 = vmul.f32 %v4327_v21, %v4549_v43 }
 0x2b1   :  { %3643 = vmatmul.mubr.msk.f32.gmra.mxu1 %vm195_vm0, %v671_v15  ;;  %1737 = vrot.lane.b32.xlu1 %v1709_v48, %s4099_s15  ;;  %v1217_v15 = vmul.f32 %v4757_v33, %v4545_v38  ;;  %v1238_v48 = vmul.f32 %v4327_v21, %v4545_v38  ;;  %v1216_v38 = vmul.f32 %v4757_v33, %v4549_v43 }
 0x2b2   :  { %1739 = vrot.lane.b32.xlu0 %v1710_v22, %s4099_s15  ;;  %3689 = vmatprep.mubr.msk.f32.mxu1 %vm195_vm0, %v1235_v24  ;;  %v1716_v22 = vmul.f32 %v4692_v9, %v4571_v50  ;;  %v1239_v24 = vmul.f32 %v4327_v21, %v4522_v27  ;;  %v1241_v27 = vmul.f32 %v4327_v21, %v4532_v29 }
 0x2b3   :  { %3660 = vmatpush3.xpose.msk.msra.mxu0 %vm195_vm0, %v4716_v59  ;;  %3680 = vmatpush3.xpose.msk.msra.mxu1 %vm195_vm0, %v4608_v28  ;;  %v1242_v43 = vmul.f32 %v4327_v21, %v4525_v23  ;;  %v1214_v29 = vmul.f32 %v4757_v33, %v4517_v10  ;;  %v1713_v23 = vmul.f32 %v4692_v9, %v4534_v60 }
 0x2b4   :  { %3681 = vmatprep.subr.msk.mxu1 %vm195_vm0, %v4614_v32  ;;  %3701 = vmatprep.subr.msk.mxu0 %vm195_vm0, %v4622_v17  ;;  %v1720_v10 = vmul.f32 %v4692_v9, %v4551_v61 }
 0x2b5   :  { %1735 = vrot.lane.b32.xlu1 %v1708_v25, %s4099_s15  ;;  %v1240_v25 = vmul.f32 %v4327_v21, %v4538_v49  ;;  %v1215_v49 = vmul.f32 %v4757_v33, %v4557_v18  ;;  %v1244_v18 = vmul.f32 %v4327_v21, %v4579_v19 }
 0x2b6   :  { %1733 = vrot.lane.b32.xlu0 %v1707_v26, %s4099_s15  ;;  %3662 = vmatmul.mubr.msk.f32.vlgmr.msra.gmra.mxu0 %vm195_vm0, %v673_v30  ;;  %v1715_v26 = vmul.f32 %v4692_v9, %v4581_v20  ;;  %v1714_v30 = vmul.f32 %v4692_v9, %v4579_v19 }
 0x2b7   :  { %3664 = vmatprep.mubr.msk.f32.mxu0 %vm195_vm0, %v674_v31  ;;  %3682 = vmatpush3.xpose.msk.msra.mxu1 %vm195_vm0, %v4614_v32  ;;  %v1245_v31 = vmul.f32 %v4327_v21, %v4581_v20 }
 0x2b8   :  { %3702 = vmatpush3.xpose.msk.msra.mxu0 %vm195_vm0, %v4622_v17  ;;  %3683 = vmatprep.subr.msk.mxu1 %vm195_vm0, %v4620_v46 }
 0x2b9   :  { %3703 = vmatprep.subr.msk.mxu0 %vm195_vm0, %v4634_v44  ;;  %1731 = vrot.lane.b32.xlu1 %v1706_v36, %s4099_s15  ;;  %v1229_v36 = vmul.f32 %v4757_v33, %v4551_v61 }
 0x2ba   :  { %1729 = vrot.lane.b32.xlu0 %v1705_v37, %s4099_s15  ;;  %3665 = vmatmul.mubr.msk.f32.gmra.mxu0 %vm195_vm0, %v675_v39  ;;  %v1246_v37 = vmul.f32 %v4327_v21, %v4571_v50  ;;  %v1247_v39 = vmul.f32 %v4327_v21, %v4573_v51 }
 0x2bb   :  { %3667 = vmatprep.mubr.msk.f32.mxu0 %vm195_vm0, %v676_v42  ;;  %3684 = vmatpush3.xpose.msk.msra.mxu1 %vm195_vm0, %v4620_v46  ;;  %v1719_v42 = vmul.f32 %v4692_v9, %v4559_v45 }
 0x2bc   :  { %3704 = vmatpush3.xpose.msk.msra.mxu0 %vm195_vm0, %v4634_v44  ;;  %3685 = vmatprep.subr.msk.mxu1 %vm195_vm0, %v4632_v34 }
 0x2bd   :  { %3705 = vmatprep.subr.msk.mxu0 %vm195_vm0, %v4646_v63  ;;  %2063 = vrot.lane.b32.xlu1 %v1220_v40, %s4099_s15  ;;  %v1248_v40 = vmul.f32 %v4327_v21, %v4565_v5 }
 0x2be   :  { %2065 = vrot.lane.b32.xlu0 %v1221_v54, %s4099_s15  ;;  %3668 = vmatmul.mubr.msk.f32.gmra.mxu0 %vm195_vm0, %v677_v2  ;;  %v1249_v54 = vmul.f32 %v4327_v21, %v4559_v45  ;;  %v1250_v2 = vmul.f32 %v4327_v21, %v4551_v61 }
 0x2bf   :  { %3670 = vmatprep.mubr.msk.f32.mxu0 %vm195_vm0, %v678_v47  ;;  %3686 = vmatpush3.xpose.msk.msra.mxu1 %vm195_vm0, %v4632_v34 }
 0x2c0   :  { %3706 = vmatpush3.xpose.msk.msra.mxu0 %vm195_vm0, %v4646_v63  ;;  %3687 = vmatprep.subr.msk.mxu1 %vm195_vm0, %v4644_v62 }
 0x2c1   :  { %3707 = vmatprep.subr.msk.mxu0 %vm195_vm0, %v4656_v41  ;;  %2061 = vrot.lane.b32.xlu1 %v1219_v4, %s4099_s15 }
 0x2c2   :  { %1900 = vrot.lane.b32.xlu0 %v1718_v52, %s4099_s15  ;;  %3671 = vmatmul.mubr.msk.f32.gmra.mxu0 %vm195_vm0, %v679_v53 }
 0x2c3   :  { %3688 = vmatpush3.xpose.msk.msra.mxu1 %vm195_vm0, %v4644_v62  ;;  %3717 = vmatprep.mubr.msk.f32.mxu0 %vm195_vm0, %v1243_v11 }
 0x2c4   :  { %3708 = vmatpush3.xpose.msk.msra.mxu0 %vm195_vm0, %v4656_v41 }
 0x2c5   :  { %3709 = vmatprep.subr.msk.mxu0 %vm195_vm0, %v4658_v16  ;;  %2059 = vrot.lane.b32.xlu1 %v1218_v7, %s4099_s15 }
 0x2c6   :  { %3690 = vmatmul.mubr.msk.f32.vlgmr.msra.gmra.mxu1 %vm195_vm0, %v1236_v12  ;;  %1898 = vrot.lane.b32.xlu0 %v1717_v58, %s4099_s15 }
 0x2c7   :  { %3692 = vmatprep.mubr.msk.f32.mxu1 %vm195_vm0, %v1237_v13 }
 0x2c8   :  { %3710 = vmatpush3.xpose.msk.msra.mxu0 %vm195_vm0, %v4658_v16 }
 0x2c9   :  { %3711 = vmatprep.subr.msk.mxu0 %vm195_vm0, %v4677_v0  ;;  %2057 = vrot.lane.b32.xlu1 %v1217_v15, %s4099_s15 }
 0x2ca   :  { %3693 = vmatmul.mubr.msk.f32.gmra.mxu1 %vm195_vm0, %v1238_v48  ;;  %1896 = vrot.lane.b32.xlu0 %v1716_v22, %s4099_s15 }
 0x2cb   :  { %3695 = vmatprep.mubr.msk.f32.mxu1 %vm195_vm0, %v1239_v24 }
 0x2cc   :  { %3712 = vmatpush3.xpose.msk.msra.mxu0 %vm195_vm0, %v4677_v0 }
 0x2cd   :  { %3713 = vmatprep.subr.msk.mxu0 %vm195_vm0, %v4672_v3  ;;  %2055 = vrot.lane.b32.xlu1 %v1216_v38, %s4099_s15 }
 0x2ce   :  { %3696 = vmatmul.mubr.msk.f32.gmra.mxu1 %vm195_vm0, %v1240_v25  ;;  %1894 = vrot.lane.b32.xlu0 %v1715_v26, %s4099_s15 }
 0x2cf   :  { %3698 = vmatprep.mubr.msk.f32.mxu1 %vm195_vm0, %v1241_v27 }
 0x2d0   :  { %3714 = vmatpush3.xpose.msk.msra.mxu0 %vm195_vm0, %v4672_v3 }
 0x2d1   :  { %3715 = vmatprep.subr.msk.mxu0 %vm195_vm0, %v4716_v59  ;;  %2053 = vrot.lane.b32.xlu1 %v1215_v49, %s4099_s15 }
 0x2d2   :  { %3699 = vmatmul.mubr.msk.f32.gmra.mxu1 %vm195_vm0, %v1242_v43  ;;  %1892 = vrot.lane.b32.xlu0 %v1714_v30, %s4099_s15 }
 0x2d4   :  { %3716 = vmatpush3.xpose.msk.msra.mxu0 %vm195_vm0, %v4716_v59 }
 0x2d5   :  { %2051 = vrot.lane.b32.xlu1 %v1214_v29, %s4099_s15 }
 0x2d6   :  { %1890 = vrot.lane.b32.xlu0 %v1713_v23, %s4099_s15 }
 0x2d7   :  { %3718 = vmatmul.mubr.msk.f32.vlgmr.msra.gmra.mxu0 %vm195_vm0, %v1244_v18 }
 0x2d8   :  { %3720 = vmatprep.mubr.msk.f32.mxu0 %vm195_vm0, %v1245_v31 }
 0x2d9   :  { %1904 = vrot.lane.b32.xlu1 %v1720_v10, %s4099_s15 }
 0x2da   :  { %2226 = vrot.lane.b32.xlu0 %v1229_v36, %s4099_s15 }
 0x2db   :  { %3721 = vmatmul.mubr.msk.f32.gmra.mxu0 %vm195_vm0, %v1246_v37 }
 0x2dc   :  { %3723 = vmatprep.mubr.msk.f32.mxu0 %vm195_vm0, %v1247_v39 }
 0x2dd   :  { %1902 = vrot.lane.b32.xlu1 %v1719_v42, %s4099_s15 }
 0x2df   :  { %3724 = vmatmul.mubr.msk.f32.gmra.mxu0 %vm195_vm0, %v1248_v40 }
 0x2e0   :  { %3726 = vmatprep.mubr.msk.f32.mxu0 %vm195_vm0, %v1249_v54 }
 0x2e3   :  { %3727 = vmatmul.mubr.msk.f32.gmra.mxu0 %vm195_vm0, %v1250_v2 }
 0x31f   :  { %v1742_v9 = vpop.permute.xlu1 %1741 }
 0x320   :  { %v1744_v47 = vpop.permute.xlu0 %1743 }
 0x321   :  { %3729 = vmatprep.subr.mxu1 %v1744_v47 }
 0x322   :  { %3730 = vmatpush3.msra.mxu1 %v1744_v47 }
 0x323   :  { %3731 = vmatprep.subr.mxu1 %v1742_v9  ;;  %v1738_v4 = vpop.permute.xlu1 %1737 }
 0x324   :  { %3732 = vmatpush3.msra.mxu1 %v1742_v9  ;;  %v1740_v52 = vpop.permute.xlu0 %1739 }
 0x325   :  { %3733 = vmatprep.subr.mxu1 %v1740_v52 }
 0x326   :  { %3734 = vmatpush3.msra.mxu1 %v1740_v52 }
 0x327   :  { %3735 = vmatprep.subr.mxu1 %v1738_v4  ;;  %v1736_v53 = vpop.permute.xlu1 %1735 }
 0x328   :  { %3736 = vmatpush3.msra.mxu1 %v1738_v4  ;;  %v1734_v11 = vpop.permute.xlu0 %1733  ;;  %v4955_v4 = vpop.f32.mrf.mxu0 }
 0x329   :  { %3737 = vmatprep.subr.mxu1 %v1736_v53 }
 0x32a   :  { %3738 = vmatpush3.msra.mxu1 %v1736_v53 }
 0x32b   :  { %3739 = vmatprep.subr.mxu1 %v1734_v11  ;;  %v1732_v21 = vpop.permute.xlu1 %1731 }
 0x32c   :  { %3740 = vmatpush3.msra.mxu1 %v1734_v11  ;;  %v1730_v61 = vpop.permute.xlu0 %1729 }
 0x32d   :  { %3741 = vmatprep.subr.mxu1 %v1732_v21 }
 0x32e   :  { %3742 = vmatpush3.msra.mxu1 %v1732_v21 }
 0x32f   :  { %3743 = vmatprep.subr.mxu1 %v1730_v61  ;;  %v4921_v7 = vpop.permute.xlu1 %2063 }
 0x330   :  { %3744 = vmatpush3.msra.mxu1 %v1730_v61  ;;  %v4923_v12 = vpop.permute.xlu0 %2065 }
 0x331   :  { %3785 = vmatprep.subr.mxu1 %v4923_v12 }
 0x333   :  { %v4926_v58 = vpop.permute.xlu1 %2061 }
 0x334   :  { %v1901_v15 = vpop.permute.xlu0 %1900 }
 0x337   :  { %v4928_v13 = vpop.permute.xlu1 %2059 }
 0x338   :  { %v1899_v22 = vpop.permute.xlu0 %1898 }
 0x33b   :  { %v4930_v48 = vpop.permute.xlu1 %2057 }
 0x33c   :  { %v1897_v25 = vpop.permute.xlu0 %1896 }
 0x33f   :  { %v4932_v24 = vpop.permute.xlu1 %2055 }
 0x340   :  { %v1895_v27 = vpop.permute.xlu0 %1894 }
 0x343   :  { %v4934_v38 = vpop.permute.xlu1 %2053 }
 0x344   :  { %v1893_v30 = vpop.permute.xlu0 %1892 }
 0x347   :  { %v4936_v26 = vpop.permute.xlu1 %2051 }
 0x348   :  { %v1891_v29 = vpop.permute.xlu0 %1890 }
 0x34b   :  { %v1905_v49 = vpop.permute.xlu1 %1904 }
 0x34c   :  { %3757 = vmatprep.subr.mxu0 %v1905_v49  ;;  %v4938_v23 = vpop.permute.xlu0 %2226 }
 0x34d   :  { %3758 = vmatpush3.msra.mxu0 %v1905_v49 }
 0x34f   :  { %v1903_v43 = vpop.permute.xlu1 %1902 }
 0x350   :  { %3759 = vmatprep.subr.mxu0 %v1903_v43 }
 0x351   :  { %3760 = vmatpush3.msra.mxu0 %v1903_v43 }
 0x352   :  { %3761 = vmatprep.subr.mxu0 %v1901_v15 }
 0x353   :  { %3762 = vmatpush3.msra.mxu0 %v1901_v15 }
 0x354   :  { %3763 = vmatprep.subr.mxu0 %v1899_v22 }
 0x355   :  { %3764 = vmatpush3.msra.mxu0 %v1899_v22 }
 0x356   :  { %3765 = vmatprep.subr.mxu0 %v1897_v25 }
 0x357   :  { %3766 = vmatpush3.msra.mxu0 %v1897_v25 }
 0x358   :  { %3767 = vmatprep.subr.mxu0 %v1895_v27 }
 0x359   :  { %3768 = vmatpush3.msra.mxu0 %v1895_v27 }
 0x35a   :  { %3769 = vmatprep.subr.mxu0 %v1893_v30 }
 0x35b   :  { %3770 = vmatpush3.msra.mxu0 %v1893_v30 }
 0x35c   :  { %3771 = vmatprep.subr.mxu0 %v1891_v29 }
 0x35d   :  { %3772 = vmatpush3.msra.mxu0 %v1891_v29 }
 0x35e   :  { %3813 = vmatprep.subr.mxu0 %v4938_v23 }
 0x365   :  { %v3635_v18 = vpop.f32.mrf.mxu1 }
 0x366   :  { %v4941_v31 = vmul.f32 0.25, %v3635_v18 }
 0x367   :  { %v810_v10 = vpop.f32.mrf.mxu1 }
 0x368   :  { %v4943_v36 = vmul.f32 0.25, %v810_v10  ;;  %v1037_v37 = vsel %vm606_vm6, %v4941_v31, -inf }
 0x369   :  { %v3638_v39 = vpop.f32.mrf.mxu1  ;;  %1038 = vmax.xlane.f32.xlu1 %v1037_v37 }
 0x36a   :  { %v4947_v42 = vmul.f32 0.25, %v3638_v39  ;;  %v1034_v40 = vsel %vm606_vm6, %v4943_v36, -inf }
 0x36b   :  { %v820_v54 = vpop.f32.mrf.mxu1 }
 0x36c   :  { %v4951_v2 = vmul.f32 0.25, %v820_v54  ;;  %v1043_v9 = vsel %vm606_vm6, %v4947_v42, -inf }
 0x36d   :  { %1035 = vmax.xlane.f32.xlu1 %v1034_v40  ;;  %v3641_v47 = vpop.f32.mrf.mxu1 }
 0x36e   :  { %v4957_v52 = vmul.f32 0.25, %v3641_v47  ;;  %v1040_v53 = vsel %vm606_vm6, %v4951_v2, -inf }
 0x36f   :  { %v830_v11 = vpop.f32.mrf.mxu1 }
 0x370   :  { %v4963_v15 = vmul.f32 0.25, %v830_v11  ;;  %v1049_v25 = vsel %vm606_vm6, %v4957_v52, -inf }
 0x371   :  { %1044 = vmax.xlane.f32.xlu1 %v1043_v9  ;;  %v3644_v27 = vpop.f32.mrf.mxu1 }
 0x372   :  { %v4971_v29 = vmul.f32 0.25, %v3644_v27  ;;  %v1046_v10 = vsel %vm606_vm6, %v4963_v15, -inf }
 0x373   :  { %v840_v37 = vpop.f32.mrf.mxu1 }
 0x374   :  { %v4979_v9 = vmul.f32 0.25, %v840_v37 }
 0x375   :  { %1041 = vmax.xlane.f32.xlu1 %v1040_v53  ;;  %v1055_v53 = vsel %vm606_vm6, %v4971_v29, -inf }
 0x376   :  { %v3663_v21 = vpop.f32.mrf.mxu0 }
 0x377   :  { %v4961_v61 = vmul.f32 0.25, %v3663_v21 }
 0x378   :  { %v979_v22 = vpop.f32.mrf.mxu0 }
 0x379   :  { %1050 = vmax.xlane.f32.xlu1 %v1049_v25  ;;  %v1061_v49 = vsel %vm606_vm6, %v4961_v61, -inf  ;;  %v4987_v27 = vmul.f32 0.25, %v979_v22 }
 0x37a   :  { %1062 = vmax.xlane.f32.xlu0 %v1061_v49  ;;  %v3666_v43 = vpop.f32.mrf.mxu0 }
 0x37b   :  { %v4969_v30 = vmul.f32 0.25, %v3666_v43  ;;  %v1052_v43 = vsel %vm606_vm6, %v4979_v9, -inf }
 0x37c   :  { %v989_v18 = vpop.f32.mrf.mxu0 }
 0x37d   :  { %1047 = vmax.xlane.f32.xlu1 %v1046_v10  ;;  %v1067_v39 = vsel %vm606_vm6, %v4969_v30, -inf }
 0x37e   :  { %1068 = vmax.xlane.f32.xlu0 %v1067_v39  ;;  %v3669_v40 = vpop.f32.mrf.mxu0 }
 0x37f   :  { %v4977_v54 = vmul.f32 0.25, %v3669_v40  ;;  %v4995_v40 = vmul.f32 0.25, %v989_v18 }
 0x380   :  { %v999_v47 = vpop.f32.mrf.mxu0 }
 0x381   :  { %1056 = vmax.xlane.f32.xlu1 %v1055_v53  ;;  %v1073_v11 = vsel %vm606_vm6, %v4977_v54, -inf }
 0x382   :  { %1074 = vmax.xlane.f32.xlu0 %v1073_v11  ;;  %v3672_v21 = vpop.f32.mrf.mxu0  ;;  %v1058_v11 = vsel %vm606_vm6, %v4987_v27, -inf }
 0x383   :  { %v4985_v25 = vmul.f32 0.25, %v3672_v21 }
 0x384   :  { %v1009_v49 = vpop.f32.mrf.mxu0 }
 0x385   :  { %v4991_v10 = vmul.f32 0.25, %v1009_v49  ;;  %1053 = vmax.xlane.f32.xlu1 %v1052_v43  ;;  %v1079_v37 = vsel %vm606_vm6, %v4985_v25, -inf  ;;  %v5003_v43 = vmul.f32 0.25, %v999_v47 }
 0x386   :  { %v3691_v39 = vpop.f32.mrf.mxu1  ;;  %1080 = vmax.xlane.f32.xlu0 %v1079_v37  ;;  %v1064_v37 = vsel %vm606_vm6, %v4995_v40, -inf }
 0x387   :  { %v4999_v22 = vmul.f32 0.25, %v3691_v39  ;;  %v1076_v21 = vsel %vm606_vm6, %v4991_v10, -inf }
 0x388   :  { %v1341_v53 = vpop.f32.mrf.mxu1 }
 0x389   :  { %1059 = vmax.xlane.f32.xlu1 %v1058_v11  ;;  %v1528_v8 = vsel %vm606_vm6, %v4999_v22, -inf  ;;  %v5011_v11 = vmul.f32 0.25, %v1341_v53 }
 0x38a   :  { %v3694_v49 = vpop.f32.mrf.mxu1  ;;  %1077 = vmax.xlane.f32.xlu0 %v1076_v21  ;;  %v1070_v21 = vsel %vm606_vm6, %v5003_v43, -inf }
 0x38b   :  { %v5007_v18 = vmul.f32 0.25, %v3694_v49  ;;  %v1525_v44 = vsel %vm606_vm6, %v5011_v11, -inf }
 0x38c   :  { %v1351_v35 = vpop.f32.mrf.mxu1 }
 0x38d   :  { %1065 = vmax.xlane.f32.xlu1 %v1064_v37  ;;  %v5015_v47 = vmul.f32 0.25, %v1351_v35  ;;  %v1534_v17 = vsel %vm606_vm6, %v5007_v18, -inf }
 0x38e   :  { %v3697_v39 = vpop.f32.mrf.mxu1  ;;  %1529 = vmax.xlane.f32.xlu0 %v1528_v8 }
 0x38f   :  { %v5023_v8 = vmul.f32 0.25, %v3697_v39  ;;  %v1531_v63 = vsel %vm606_vm6, %v5015_v47, -inf  ;;  %v1227_v39 = vmul.f32 %v4757_v33, %v4565_v5 }
 0x390   :  { %v1361_v6 = vpop.f32.mrf.mxu1 }
 0x391   :  { %1071 = vmax.xlane.f32.xlu1 %v1070_v21  ;;  %v5019_v37 = vmul.f32 0.25, %v1361_v6  ;;  %v1540_v6 = vsel %vm606_vm6, %v5023_v8, -inf }
 0x392   :  { %v3700_v49 = vpop.f32.mrf.mxu1  ;;  %1535 = vmax.xlane.f32.xlu0 %v1534_v17 }
 0x393   :  { %v1537_v21 = vsel %vm606_vm6, %v5019_v37, -inf  ;;  %v5031_v41 = vmul.f32 0.25, %v3700_v49 }
 0x394   :  { %v1371_v53 = vpop.f32.mrf.mxu1 }
 0x395   :  { %1526 = vmax.xlane.f32.xlu1 %v1525_v44  ;;  %v5027_v35 = vmul.f32 0.25, %v1371_v53  ;;  %v1546_v44 = vsel %vm606_vm6, %v5031_v41, -inf }
 0x396   :  { %1532 = vmax.xlane.f32.xlu0 %v1531_v63  ;;  %v1228_v63 = vmul.f32 %v4757_v33, %v4559_v45 }
 0x397   :  { %v1543_v17 = vsel %vm606_vm6, %v5027_v35, -inf  ;;  %v3719_v49 = vpop.f32.mrf.mxu0 }
 0x398   :  { %v5045_v53 = vmul.f32 0.25, %v3719_v49 }
 0x399   :  { %1538 = vmax.xlane.f32.xlu1 %v1537_v21  ;;  %v1470_v21 = vpop.f32.mrf.mxu0 }
 0x39a   :  { %1541 = vmax.xlane.f32.xlu0 %v1540_v6  ;;  %v5047_v6 = vmul.f32 0.25, %v1470_v21 }
 0x39c   :  { %v1549_v45 = vsel %vm606_vm6, %v5047_v6, -inf }
 0x39d   :  { %1544 = vmax.xlane.f32.xlu1 %v1543_v17  ;;  %v1552_v17 = vsel %vm606_vm6, %v5045_v53, -inf }
 0x39e   :  { %1547 = vmax.xlane.f32.xlu0 %v1546_v44  ;;  %v3722_v44 = vpop.f32.mrf.mxu0 }
 0x39f   :  { %v5051_v16 = vmul.f32 0.25, %v3722_v44 }
 0x3ae   :  { %2224 = vrot.lane.b32.xlu1 %v1228_v63, %s4099_s15  ;;  %v1480_v63 = vpop.f32.mrf.mxu0 }
 0x3af   :  { %v5055_v5 = vmul.f32 0.25, %v1480_v63 }
 0x3b0   :  { %v3725_v49 = vpop.f32.mrf.mxu0 }
 0x3b1   :  { %v5059_v21 = vmul.f32 0.25, %v3725_v49  ;;  %v1555_v0 = vsel %vm606_vm6, %v5055_v5, -inf }
 0x3b3   :  { %v1564_v3 = vsel %vm606_vm6, %v5059_v21, -inf }
 0x3b4   :  { %2222 = vrot.lane.b32.xlu0 %v1227_v39, %s4099_s15  ;;  %v1558_v39 = vsel %vm606_vm6, %v5051_v16, -inf }
 0x3d3   :  { %1553 = vmax.xlane.f32.xlu0 %v1552_v17  ;;  %v1490_v17 = vpop.f32.mrf.mxu0 }
 0x3d4   :  { %v5063_v44 = vmul.f32 0.25, %v1490_v17 }
 0x3d6   :  { %v1561_v59 = vsel %vm606_vm6, %v5063_v44, -inf }
 0x3d7   :  { %1550 = vmax.xlane.f32.xlu0 %v1549_v45  ;;  %v3728_v45 = vpop.f32.mrf.mxu0 }
 0x3d8   :  { %v5067_v63 = vmul.f32 0.25, %v3728_v45 }
 0x3da   :  { %v1570_v55 = vsel %vm606_vm6, %v5067_v63, -inf }
 0x3db   :  { %1559 = vmax.xlane.f32.xlu0 %v1558_v39  ;;  %v1500_v39 = vpop.f32.mrf.mxu0 }
 0x3dc   :  { %v5071_v49 = vmul.f32 0.25, %v1500_v39 }
 0x3df   :  { %1556 = vmax.xlane.f32.xlu0 %v1555_v0  ;;  %v1567_v0 = vsel %vm606_vm6, %v5071_v49, -inf }
 0x3e3   :  { %1565 = vmax.xlane.f32.xlu0 %v1564_v3 }
 0x3e7   :  { %1562 = vmax.xlane.f32.xlu0 %v1561_v59 }
 0x3eb   :  { %1571 = vmax.xlane.f32.xlu0 %v1570_v55 }
 0x3ef   :  { %1568 = vmax.xlane.f32.xlu0 %v1567_v0 }
 0x3f2   :  { %v1039_v17 = vpop.xlane.xlu1 %1038 }
 0x3f3   :  { %v1083_v3 = vsub.f32 %v4941_v31, %v1039_v17 }
 0x3f5   :  { %v1100_v45 = vmul.f32 1.442695, %v1083_v3 }
 0x3f6   :  { %v1036_v56 = vpop.xlane.xlu1 %1035 }
 0x3f7   :  { %3965 = vpow2.f32 %v1100_v45  ;;  %v1082_v57 = vsub.f32 %v4943_v36, %v1036_v56 }
 0x3f9   :  { %v1098_v28 = vmul.f32 1.442695, %v1082_v57 }
 0x3fa   :  { %v1045_v59 = vpop.xlane.xlu1 %1044 }
 0x3fb   :  { %3967 = vpow2.f32 %v1098_v28  ;;  %v1085_v39 = vsub.f32 %v4947_v42, %v1045_v59 }
 0x3fd   :  { %v1104_v32 = vmul.f32 1.442695, %v1085_v39 }
 0x3fe   :  { %v1042_v46 = vpop.xlane.xlu1 %1041 }
 0x3ff   :  { %3969 = vpow2.f32 %v1104_v32  ;;  %v1084_v55 = vsub.f32 %v4951_v2, %v1042_v46 }
 0x401   :  { %v1102_v34 = vmul.f32 1.442695, %v1084_v55 }
 0x402   :  { %v1051_v0 = vpop.xlane.xlu1 %1050 }
 0x403   :  { %3971 = vpow2.f32 %v1102_v34  ;;  %v1087_v31 = vsub.f32 %v4957_v52, %v1051_v0  ;;  %v1063_v17 = vpop.xlane.xlu0 %1062 }
 0x404   :  { %v5082_v3 = vpop.eup %3965  ;;  %v1091_v39 = vsub.f32 %v4961_v61, %v1063_v17 }
 0x405   :  { %v1108_v45 = vmul.f32 1.442695, %v1087_v31  ;;  %v1133_v56 = vsel %vm606_vm6, %v5082_v3, 0.0 }
 0x406   :  { %v1048_v57 = vpop.xlane.xlu1 %1047  ;;  %1134 = vadd.xlane.f32.xlu0 %v1133_v56 }
 0x407   :  { %3973 = vpow2.f32 %v1108_v45  ;;  %v1086_v28 = vsub.f32 %v4963_v15, %v1048_v57  ;;  %v1069_v32 = vpop.xlane.xlu0 %1068  ;;  %v1116_v57 = vmul.f32 1.442695, %v1091_v39 }
 0x408   :  { %v5087_v36 = vpop.eup %3967 }
 0x409   :  { %v1106_v46 = vmul.f32 1.442695, %v1086_v28  ;;  %v1130_v34 = vsel %vm606_vm6, %v5087_v36, 0.0 }
 0x40a   :  { %v1057_v42 = vpop.xlane.xlu1 %1056  ;;  %1131 = vadd.xlane.f32.xlu0 %v1130_v34 }
 0x40b   :  { %3975 = vpow2.f32 %v1106_v46  ;;  %v1089_v2 = vsub.f32 %v4971_v29, %v1057_v42  ;;  %v1075_v52 = vpop.xlane.xlu0 %1074  ;;  %v1093_v29 = vsub.f32 %v4969_v30, %v1069_v32 }
 0x40c   :  { %v5092_v59 = vpop.eup %3969 }
 0x40d   :  { %v1112_v55 = vmul.f32 1.442695, %v1089_v2  ;;  %v1139_v15 = vsel %vm606_vm6, %v5092_v59, 0.0  ;;  %v1095_v2 = vsub.f32 %v4977_v54, %v1075_v52 }
 0x40e   :  { %v1054_v0 = vpop.xlane.xlu1 %1053  ;;  %1140 = vadd.xlane.f32.xlu0 %v1139_v15 }
 0x40f   :  { %3977 = vpow2.f32 %v1112_v55  ;;  %v1088_v31 = vsub.f32 %v4979_v9, %v1054_v0  ;;  %v1081_v45 = vpop.xlane.xlu0 %1080  ;;  %v1120_v9 = vmul.f32 1.442695, %v1093_v29 }
 0x410   :  { %v5098_v56 = vpop.eup %3971 }
 0x411   :  { %v1110_v28 = vmul.f32 1.442695, %v1088_v31  ;;  %v1136_v46 = vsel %vm606_vm6, %v5098_v56, 0.0  ;;  %v1124_v31 = vmul.f32 1.442695, %v1095_v2 }
 0x412   :  { %v1060_v61 = vpop.xlane.xlu1 %1059  ;;  %1137 = vadd.xlane.f32.xlu0 %v1136_v46 }
 0x413   :  { %3979 = vpow2.f32 %v1110_v28  ;;  %v1090_v17 = vsub.f32 %v4987_v27, %v1060_v61  ;;  %v1078_v34 = vpop.xlane.xlu0 %1077  ;;  %v1097_v27 = vsub.f32 %v4985_v25, %v1081_v45 }
 0x414   :  { %v5104_v42 = vpop.eup %3973  ;;  %3981 = vpow2.f32 %v1116_v57  ;;  %v1096_v57 = vsub.f32 %v4991_v10, %v1078_v34 }
 0x415   :  { %v1114_v55 = vmul.f32 1.442695, %v1090_v17  ;;  %v1145_v30 = vsel %vm606_vm6, %v5104_v42, 0.0  ;;  %v1128_v61 = vmul.f32 1.442695, %v1097_v27 }
 0x416   :  { %v1066_v32 = vpop.xlane.xlu1 %1065  ;;  %1146 = vadd.xlane.f32.xlu1 %v1145_v30  ;;  %v1126_v25 = vmul.f32 1.442695, %v1096_v57 }
 0x417   :  { %3983 = vpow2.f32 %v1114_v55  ;;  %v1092_v39 = vsub.f32 %v4995_v40, %v1066_v32  ;;  %v1530_v15 = vpop.xlane.xlu0 %1529 }
 0x418   :  { %v5110_v0 = vpop.eup %3975  ;;  %3985 = vpow2.f32 %v1120_v9  ;;  %v1574_v17 = vsub.f32 %v4999_v22, %v1530_v15 }
 0x419   :  { %v1118_v29 = vmul.f32 1.442695, %v1092_v39  ;;  %v1142_v54 = vsel %vm606_vm6, %v5110_v0, 0.0 }
 0x41a   :  { %1143 = vadd.xlane.f32.xlu1 %v1142_v54  ;;  %v1072_v52 = vpop.xlane.xlu1 %1071 }
 0x41b   :  { %3987 = vpow2.f32 %v1118_v29  ;;  %v1094_v28 = vsub.f32 %v5003_v43, %v1072_v52  ;;  %v1536_v46 = vpop.xlane.xlu0 %1535  ;;  %v1591_v43 = vmul.f32 1.442695, %v1574_v17 }
 0x41c   :  { %v5117_v40 = vpop.eup %3977  ;;  %3989 = vpow2.f32 %v1124_v31 }
 0x41d   :  { %v1122_v45 = vmul.f32 1.442695, %v1094_v28  ;;  %v1151_v10 = vsel %vm606_vm6, %v5117_v40, 0.0 }
 0x41e   :  { %1152 = vadd.xlane.f32.xlu1 %v1151_v10  ;;  %v1527_v34 = vpop.xlane.xlu1 %1526 }
 0x41f   :  { %3991 = vpow2.f32 %v1122_v45  ;;  %v1533_v9 = vpop.xlane.xlu0 %1532  ;;  %v1573_v22 = vsub.f32 %v5011_v11, %v1527_v34 }
 0x420   :  { %v5122_v2 = vpop.eup %3979  ;;  %3993 = vpow2.f32 %v1128_v61  ;;  %v1575_v55 = vsub.f32 %v5015_v47, %v1533_v9  ;;  %v1576_v47 = vsub.f32 %v5007_v18, %v1536_v46 }
 0x421   :  { %v5125_v30 = vpop.eup %3981  ;;  %3995 = vpow2.f32 %v1126_v25  ;;  %v1148_v32 = vsel %vm606_vm6, %v5122_v2, 0.0  ;;  %v1589_v57 = vmul.f32 1.442695, %v1573_v22 }
 0x422   :  { %v1593_v39 = vmul.f32 1.442695, %v1575_v55  ;;  %1149 = vadd.xlane.f32.xlu1 %v1148_v32  ;;  %3997 = vpow2.f32 %v1591_v43  ;;  %v1157_v27 = vsel %vm606_vm6, %v5125_v30, 0.0  ;;  %v1595_v54 = vmul.f32 1.442695, %v1576_v47 }
 0x424   :  { %v5130_v15 = vpop.eup %3983  ;;  %3999 = vpow2.f32 %v1593_v39 }
 0x425   :  { %v5134_v31 = vpop.eup %3985  ;;  %v1154_v11 = vsel %vm606_vm6, %v5130_v15, 0.0  ;;  %4001 = vpow2.f32 %v1589_v57  ;;  %v1226_v57 = vmul.f32 %v4757_v33, %v4573_v51 }
 0x426   :  { %5894 = vst [vmem:[#allocation21_spill] sm:$0xff] %v5134_v31  ;;  %1158 = vadd.xlane.f32.xlu1 %v1157_v27  ;;  %1155 = vadd.xlane.f32.xlu0 %v1154_v11  ;;  %v1163_v52 = vsel %vm606_vm6, %v5134_v31, 0.0  ;;  %4003 = vpow2.f32 %v1595_v54  ;;  %v1542_v11 = vpop.xlane.xlu0 %1541 }
 0x428   :  { %v5139_v29 = vpop.eup %3987 }
 0x429   :  { %5895 = vst [vmem:[#allocation22_spill] sm:$0xff] %v5139_v29  ;;  %v1160_v28 = vsel %vm606_vm6, %v5139_v29, 0.0  ;;  %v5145_v61 = vpop.eup %3989 }
 0x42a   :  { %5896 = vst [vmem:[#allocation23_spill] sm:$0xff] %v5145_v61  ;;  %1164 = vadd.xlane.f32.xlu1 %v1163_v52  ;;  %1161 = vadd.xlane.f32.xlu0 %v1160_v28  ;;  %v1169_v17 = vsel %vm606_vm6, %v5145_v61, 0.0  ;;  %v1548_v54 = vpop.xlane.xlu0 %1547  ;;  %v1225_v52 = vmul.f32 %v4757_v33, %v4571_v50 }
 0x42c   :  { %v5147_v18 = vpop.eup %3991 }
 0x42d   :  { %5897 = vst [vmem:[#allocation24_spill] sm:$0xff] %v5147_v18  ;;  %v5149_v46 = vpop.eup %3993  ;;  %v1166_v25 = vsel %vm606_vm6, %v5147_v18, 0.0 }
 0x42e   :  { %5898 = vst [vmem:[#allocation25_spill] sm:$0xff] %v5149_v46  ;;  %v5155_v45 = vpop.eup %3995  ;;  %1170 = vadd.xlane.f32.xlu1 %v1169_v17  ;;  %1167 = vadd.xlane.f32.xlu0 %v1166_v25  ;;  %v1175_v34 = vsel %vm606_vm6, %v5149_v46, 0.0  ;;  %v5183_v28 = vpop.permute.xlu0 %2222  ;;  %v1578_v17 = vsub.f32 %v5023_v8, %v1542_v11 }
 0x42f   :  { %5899 = vst [vmem:[#allocation26_spill] sm:$0xff] %v5155_v45  ;;  %v5157_v10 = vpop.eup %3997  ;;  %v1172_v9 = vsel %vm606_vm6, %v5155_v45, 0.0  ;;  %v1539_v25 = vpop.xlane.xlu1 %1538 }
 0x430   :  { %v1624_v55 = vsel %vm606_vm6, %v5157_v10, 0.0 }
 0x431   :  { %v5163_v43 = vpop.eup %3999 }
 0x432   :  { %1176 = vadd.xlane.f32.xlu1 %v1175_v34  ;;  %1173 = vadd.xlane.f32.xlu0 %v1172_v9  ;;  %v1627_v22 = vsel %vm606_vm6, %v5163_v43, 0.0  ;;  %v5169_v32 = vpop.eup %4001  ;;  %v1577_v9 = vsub.f32 %v5019_v37, %v1539_v25 }
 0x433   :  { %v1621_v39 = vsel %vm606_vm6, %v5169_v32, 0.0  ;;  %v5173_v27 = vpop.eup %4003 }
 0x434   :  { %v1630_v47 = vsel %vm606_vm6, %v5173_v27, 0.0 }
 0x436   :  { %1625 = vadd.xlane.f32.xlu0 %v1624_v55  ;;  %1628 = vadd.xlane.f32.xlu1 %v1627_v22  ;;  %v1599_v55 = vmul.f32 1.442695, %v1578_v17 }
 0x438   :  { %4005 = vpow2.f32 %v1599_v55 }
 0x43a   :  { %1622 = vadd.xlane.f32.xlu0 %v1621_v39  ;;  %v1597_v39 = vmul.f32 1.442695, %v1577_v9 }
 0x43e   :  { %1631 = vadd.xlane.f32.xlu0 %v1630_v47  ;;  %v1580_v47 = vsub.f32 %v5031_v41, %v1548_v54 }
 0x440   :  { %v1603_v8 = vmul.f32 1.442695, %v1580_v47 }
 0x445   :  { %v5193_v9 = vpop.eup %4005 }
 0x447   :  { %2220 = vrot.lane.b32.xlu1 %v1226_v57, %s4099_s15  ;;  %v1545_v57 = vpop.xlane.xlu1 %1544 }
 0x454   :  { %2218 = vrot.lane.b32.xlu0 %v1225_v52, %s4099_s15  ;;  %v1579_v52 = vsub.f32 %v5027_v35, %v1545_v57 }
 0x456   :  { %v1601_v37 = vmul.f32 1.442695, %v1579_v52 }
 0x45c   :  { %v1554_v34 = vpop.xlane.xlu0 %1553 }
 0x45d   :  { %v1582_v17 = vsub.f32 %v5045_v53, %v1554_v34 }
 0x45f   :  { %v1607_v41 = vmul.f32 1.442695, %v1582_v17 }
 0x460   :  { %v1551_v22 = vpop.xlane.xlu0 %1550 }
 0x461   :  { %v1581_v51 = vsub.f32 %v5047_v6, %v1551_v22 }
 0x463   :  { %v1605_v50 = vmul.f32 1.442695, %v1581_v51  ;;  %v1636_v51 = vsel %vm606_vm6, %v5193_v9, 0.0 }
 0x464   :  { %v1560_v62 = vpop.xlane.xlu0 %1559 }
 0x465   :  { %4007 = vpow2.f32 %v1605_v50  ;;  %v1584_v54 = vsub.f32 %v5051_v16, %v1560_v62 }
 0x466   :  { %4009 = vpow2.f32 %v1597_v39 }
 0x467   :  { %4011 = vpow2.f32 %v1603_v8  ;;  %v1611_v35 = vmul.f32 1.442695, %v1584_v54 }
 0x468   :  { %v1557_v11 = vpop.xlane.xlu0 %1556 }
 0x469   :  { %v1583_v46 = vsub.f32 %v5055_v5, %v1557_v11 }
 0x46b   :  { %v1609_v6 = vmul.f32 1.442695, %v1583_v46 }
 0x46c   :  { %v1566_v25 = vpop.xlane.xlu0 %1565 }
 0x46d   :  { %4013 = vpow2.f32 %v1609_v6  ;;  %v1586_v5 = vsub.f32 %v5059_v21, %v1566_v25 }
 0x46e   :  { %4015 = vpow2.f32 %v1601_v37 }
 0x46f   :  { %4017 = vpow2.f32 %v1607_v41  ;;  %v1615_v16 = vmul.f32 1.442695, %v1586_v5 }
 0x470   :  { %v1563_v55 = vpop.xlane.xlu0 %1562  ;;  %4019 = vpow2.f32 %v1611_v35 }
 0x471   :  { %v1585_v34 = vsub.f32 %v5063_v44, %v1563_v55  ;;  %4021 = vpow2.f32 %v1615_v16  ;;  %v126_v55 = vadd.f32 1e-08, %v4955_v4  ;;  %v1222_v16 = vmul.f32 %v4757_v33, %v4534_v60  ;;  %v5258_v60 = vpop.permute.xlu1 %2224 }
 0x472   :  { %v5195_v22 = vpop.eup %4007 }
 0x473   :  { %v5200_v53 = vpop.eup %4009  ;;  %1637 = vadd.xlane.f32.xlu0 %v1636_v51  ;;  %v1645_v46 = vsel %vm606_vm6, %v5195_v22, 0.0  ;;  %v1613_v57 = vmul.f32 1.442695, %v1585_v34 }
 0x474   :  { %1646 = vadd.xlane.f32.xlu1 %v1645_v46  ;;  %v1572_v62 = vpop.xlane.xlu0 %1571  ;;  %v1633_v39 = vsel %vm606_vm6, %v5200_v53, 0.0  ;;  %v5207_v47 = vpop.eup %4011  ;;  %v1224_v46 = vmul.f32 %v4757_v33, %v4581_v20 }
 0x475   :  { %v1588_v50 = vsub.f32 %v5067_v63, %v1572_v62  ;;  %v1642_v52 = vsel %vm606_vm6, %v5207_v47, 0.0  ;;  %4023 = vpow2.f32 %v1613_v57 }
 0x477   :  { %1634 = vadd.xlane.f32.xlu0 %v1633_v39  ;;  %v1619_v37 = vmul.f32 1.442695, %v1588_v50 }
 0x478   :  { %v1569_v11 = vpop.xlane.xlu0 %1568 }
 0x479   :  { %v1587_v17 = vsub.f32 %v5071_v49, %v1569_v11  ;;  %4025 = vpow2.f32 %v1619_v37 }
 0x47a   :  { %v5209_v21 = vpop.eup %4013 }
 0x47b   :  { %v5214_v8 = vpop.eup %4015  ;;  %1643 = vadd.xlane.f32.xlu0 %v1642_v52  ;;  %v1651_v44 = vsel %vm606_vm6, %v5209_v21, 0.0  ;;  %v1617_v63 = vmul.f32 1.442695, %v1587_v17 }
 0x47c   :  { %1652 = vadd.xlane.f32.xlu1 %v1651_v44  ;;  %v1639_v6 = vsel %vm606_vm6, %v5214_v8, 0.0  ;;  %v5221_v25 = vpop.eup %4017 }
 0x47d   :  { %v1648_v41 = vsel %vm606_vm6, %v5221_v25, 0.0  ;;  %v5225_v54 = vpop.eup %4019  ;;  %4027 = vpow2.f32 %v1617_v63 }
 0x47e   :  { %v1654_v49 = vsel %vm606_vm6, %v5225_v54, 0.0  ;;  %v5230_v35 = vpop.eup %4021  ;;  %4029 = vrsqrt.f32 %v126_v55 }
 0x47f   :  { %1640 = vadd.xlane.f32.xlu0 %v1639_v6  ;;  %v1660_v5 = vsel %vm606_vm6, %v5230_v35, 0.0 }
 0x482   :  { %v5234_v51 = vpop.eup %4023 }
 0x483   :  { %1649 = vadd.xlane.f32.xlu0 %v1648_v41  ;;  %v1657_v4 = vsel %vm606_vm6, %v5234_v51, 0.0  ;;  %v1223_v41 = vmul.f32 %v4757_v33, %v4579_v19 }
 0x486   :  { %v5241_v62 = vpop.eup %4025 }
 0x487   :  { %1655 = vadd.xlane.f32.xlu0 %v1654_v49  ;;  %v1666_v34 = vsel %vm606_vm6, %v5241_v62, 0.0 }
 0x48a   :  { %v5248_v39 = vpop.eup %4027 }
 0x48b   :  { %1661 = vadd.xlane.f32.xlu0 %v1660_v5  ;;  %v5250_v20 = vpop.eup %4029  ;;  %v1663_v57 = vsel %vm606_vm6, %v5248_v39, 0.0 }
 0x48c   :  { %5900 = vst [vmem:[#allocation27_spill] sm:$0xff] %v5250_v20 }
 0x48d   :  { %2216 = vrot.lane.b32.xlu1 %v1224_v46, %s4099_s15 }
 0x48f   :  { %1658 = vadd.xlane.f32.xlu0 %v1657_v4  ;;  %v5256_v50 = vpop.xlane.xlu0 %1134 }
 0x491   :  { %2212 = vrot.lane.b32.xlu1 %v1222_v16, %s4099_s15 }
 0x493   :  { %1667 = vadd.xlane.f32.xlu0 %v1666_v34  ;;  %v1132_v52 = vpop.xlane.xlu0 %1131 }
 0x495   :  { %2603 = vrot.lane.b32.xlu1 %v5250_v20, %s4097_s14 }
 0x497   :  { %1664 = vadd.xlane.f32.xlu0 %v1663_v57  ;;  %v5264_v37 = vpop.xlane.xlu0 %1140 }
 0x49b   :  { %v5268_v6 = vpop.xlane.xlu0 %1137 }
 0x49f   :  { %v5260_v11 = vpop.xlane.xlu1 %1146 }
 0x4a3   :  { %v5262_v44 = vpop.xlane.xlu1 %1143 }
 0x4a7   :  { %v5266_v17 = vpop.xlane.xlu1 %1152 }
 0x4ab   :  { %v5270_v63 = vpop.xlane.xlu1 %1149 }
 0x4ad   :  { %2214 = vrot.lane.b32.xlu0 %v1223_v41, %s4099_s15 }
 0x4af   :  { %v5275_v55 = vpop.xlane.xlu1 %1158  ;;  %v5277_v49 = vpop.xlane.xlu0 %1155 }
 0x4b1   :  { %2599 = vrot.lane.b32.xlu0 %v4509_v1, %s4097_s14 }
 0x4b3   :  { %v5281_v5 = vpop.xlane.xlu1 %1164  ;;  %v5283_v46 = vpop.xlane.xlu0 %1161 }
 0x4b5   :  { %2838 = vrot.lane.b32.xlu0 %v4166_v14, %s4099_s15 }
 0x4b7   :  { %v5287_v4 = vpop.xlane.xlu1 %1170  ;;  %v5289_v16 = vpop.xlane.xlu0 %1167 }
 0x4bb   :  { %v5291_v19 = vpop.xlane.xlu1 %1176  ;;  %v5293_v33 = vpop.xlane.xlu0 %1173 }
 0x4bf   :  { %v1629_v34 = vpop.xlane.xlu1 %1628  ;;  %v1626_v57 = vpop.xlane.xlu0 %1625 }
 0x4c0   :  { %4031 = vrcp.f32 %v1629_v34 }
 0x4c1   :  { %4033 = vrcp.f32 %v1626_v57 }
 0x4c3   :  { %v1623_v1 = vpop.xlane.xlu0 %1622 }
 0x4c4   :  { %4035 = vrcp.f32 %v1623_v1 }
 0x4c7   :  { %v1632_v41 = vpop.xlane.xlu0 %1631 }
 0x4c8   :  { %4037 = vrcp.f32 %v1632_v41 }
 0x4cd   :  { %v4032_v20 = vpop.eup %4031 }
 0x4ce   :  { %v4034_v45 = vpop.eup %4033  ;;  %v1687_v31 = vmul.f32 %v4032_v20, %v5163_v43 }
 0x4cf   :  { %v1686_v18 = vmul.f32 %v4034_v45, %v5157_v10 }
 0x4d1   :  { %v4036_v61 = vpop.eup %4035 }
 0x4d2   :  { %v1685_v14 = vmul.f32 %v4036_v61, %v5169_v32 }
 0x4d4   :  { %3745 = vmatprep.mubr.msk.f32.mxu1 %vm606_vm6, %v1685_v14 }
 0x4d5   :  { %v4038_v29 = vpop.eup %4037  ;;  %3746 = vmatmul.mubr.msk.f32.vlgmr.msra.gmra.mxu1 %vm606_vm6, %v1686_v18 }
 0x4d6   :  { %3786 = vmatpush3.msra.mxu1 %v4923_v12  ;;  %3748 = vmatprep.mubr.msk.f32.mxu1 %vm606_vm6, %v1687_v31  ;;  %v1688_v34 = vmul.f32 %v4038_v29, %v5173_v27  ;;  %v5320_v12 = vpop.permute.xlu1 %2220 }
 0x4d7   :  { %3787 = vmatprep.subr.mxu1 %v4921_v7 }
 0x4d8   :  { %3788 = vmatpush3.msra.mxu1 %v4921_v7  ;;  %v5318_v7 = vpop.permute.xlu0 %2218 }
 0x4d9   :  { %3789 = vmatprep.subr.mxu1 %v4926_v58  ;;  %3749 = vmatmul.mubr.msk.f32.gmra.mxu1 %vm606_vm6, %v1688_v34 }
 0x4da   :  { %3790 = vmatpush3.msra.mxu1 %v4926_v58 }
 0x4db   :  { %3791 = vmatprep.subr.mxu1 %v4928_v13 }
 0x4dc   :  { %3792 = vmatpush3.msra.mxu1 %v4928_v13 }
 0x4dd   :  { %3793 = vmatprep.subr.mxu1 %v4930_v48 }
 0x4de   :  { %3794 = vmatpush3.msra.mxu1 %v4930_v48 }
 0x4df   :  { %3795 = vmatprep.subr.mxu1 %v4932_v24 }
 0x4e0   :  { %3796 = vmatpush3.msra.mxu1 %v4932_v24 }
 0x4e1   :  { %3797 = vmatprep.subr.mxu1 %v4934_v38 }
 0x4e2   :  { %3798 = vmatpush3.msra.mxu1 %v4934_v38 }
 0x4e3   :  { %3799 = vmatprep.subr.mxu1 %v4936_v26 }
 0x4e4   :  { %3800 = vmatpush3.msra.mxu1 %v4936_v26 }
 0x4fc   :  { %v1638_v58 = vpop.xlane.xlu0 %1637 }
 0x4fd   :  { %v1647_v13 = vpop.xlane.xlu1 %1646 }
 0x4fe   :  { %4039 = vrcp.f32 %v1647_v13 }
 0x4ff   :  { %4041 = vrcp.f32 %v1638_v58 }
 0x500   :  { %v1635_v48 = vpop.xlane.xlu0 %1634 }
 0x501   :  { %4043 = vrcp.f32 %v1635_v48  ;;  %v5901_v48 = vld [vmem:[#allocation22_spill] sm:$0xff] }
 0x502   :  { %4045 = vrcp.f32 %v1132_v52 }
 0x504   :  { %v1644_v31 = vpop.xlane.xlu0 %1643 }
 0x505   :  { %4047 = vrcp.f32 %v1644_v31  ;;  %v1653_v29 = vpop.xlane.xlu1 %1652 }
 0x508   :  { %v1641_v24 = vpop.xlane.xlu0 %1640 }
 0x509   :  { %4049 = vrcp.f32 %v1641_v24 }
 0x50a   :  { %4051 = vrcp.f32 %v5256_v50 }
 0x50b   :  { %v4040_v38 = vpop.eup %4039  ;;  %4053 = vrcp.f32 %v1653_v29  ;;  %v5903_v29 = vld [vmem:[#allocation24_spill] sm:$0xff] }
 0x50c   :  { %v1650_v26 = vpop.xlane.xlu0 %1649  ;;  %v1693_v61 = vmul.f32 %v4040_v38, %v5195_v22  ;;  %v4042_v18 = vpop.eup %4041 }
 0x50d   :  { %4055 = vrcp.f32 %v1650_v26  ;;  %v1690_v32 = vmul.f32 %v4042_v18, %v5193_v9  ;;  %v5904_v26 = vld [vmem:[#allocation23_spill] sm:$0xff]  ;;  %v5905_v18 = vld [vmem:[#allocation26_spill] sm:$0xff] }
 0x50e   :  { %v4044_v45 = vpop.eup %4043  ;;  %4057 = vrcp.f32 %v5268_v6  ;;  %3773 = vmatprep.mubr.msk.f32.mxu0 %vm606_vm6, %v1693_v61 }
 0x50f   :  { %v1689_v10 = vmul.f32 %v4044_v45, %v5200_v53  ;;  %4059 = vrcp.f32 %v5264_v37  ;;  %v4046_v27 = vpop.eup %4045 }
 0x510   :  { %v1656_v43 = vpop.xlane.xlu0 %1655  ;;  %v1194_v6 = vmul.f32 %v4046_v27, %v5087_v36  ;;  %v2403_v27 = vld [vmem:[%s5843_s3 + $0x30] sm:$0xff] }
 0x511   :  { %4061 = vrcp.f32 %v1656_v43  ;;  %3751 = vmatprep.mubr.msk.f32.mxu1 %vm606_vm6, %v1689_v10  ;;  %v5906_v10 = vld [vmem:[#allocation25_spill] sm:$0xff] }
 0x512   :  { %4063 = vrcp.f32 %v5262_v44  ;;  %3752 = vmatmul.mubr.msk.f32.gmra.mxu1 %vm606_vm6, %v1690_v32  ;;  %v4048_v20 = vpop.eup %4047  ;;  %v2404_v32 = vld [vmem:[%s5843_s3 + $0x38] sm:$0xff] }
 0x513   :  { %4065 = vrcp.f32 %v5260_v11  ;;  %v1692_v37 = vmul.f32 %v4048_v20, %v5207_v47  ;;  %3841 = vmatprep.subr.mxu1 %v2404_v32  ;;  %v2401_v20 = vld [vmem:[%s5843_s3 + $0x20] sm:$0xff] }
 0x514   :  { %v1662_v22 = vpop.xlane.xlu0 %1661  ;;  %4067 = vrcp.f32 %v5270_v63 }
 0x515   :  { %4069 = vrcp.f32 %v5266_v17 }
 0x516   :  { %v4050_v50 = vpop.eup %4049  ;;  %4071 = vrcp.f32 %v1662_v22  ;;  %v2402_v22 = vld [vmem:[%s5843_s3 + $0x28] sm:$0xff] }
 0x517   :  { %v1691_v53 = vmul.f32 %v4050_v50, %v5214_v8  ;;  %v4052_v9 = vpop.eup %4051  ;;  %v2400_v50 = vld [vmem:[%s5843_s3 + $0x18] sm:$0xff] }
 0x518   :  { %v1659_v52 = vpop.xlane.xlu0 %1658  ;;  %v4054_v44 = vpop.eup %4053  ;;  %v1195_v47 = vmul.f32 %v4052_v9, %v5082_v3  ;;  %v2398_v9 = vld [vmem:[%s5843_s3 + $0x8] sm:$0xff] }
 0x519   :  { %4073 = vrcp.f32 %v1659_v52  ;;  %3754 = vmatprep.mubr.msk.f32.mxu1 %vm606_vm6, %v1691_v53  ;;  %v1695_v17 = vmul.f32 %v4054_v44, %v5209_v21  ;;  %v2399_v53 = vld [vmem:[%s5843_s3 + $0x10] sm:$0xff]  ;;  %v2397_v52 = vld [vmem:[%s5843_s3] sm:$0xff] }
 0x51a   :  { %v4056_v57 = vpop.eup %4055  ;;  %3755 = vmatmul.mubr.msk.f32.gmra.mxu1 %vm606_vm6, %v1692_v37  ;;  %4075 = vrcp.f32 %v5277_v49 }
 0x51b   :  { %v4058_v11 = vpop.eup %4057  ;;  %v1694_v63 = vmul.f32 %v4056_v57, %v5221_v25  ;;  %3801 = vmatprep.mubr.msk.f32.mxu1 %vm606_vm6, %v1194_v6 }
 0x51c   :  { %v1668_v8 = vpop.xlane.xlu0 %1667  ;;  %v4060_v1 = vpop.eup %4059  ;;  %v1196_v36 = vmul.f32 %v4058_v11, %v5098_v56 }
 0x51d   :  { %3774 = vmatmul.mubr.msk.f32.vlgmr.msra.gmra.mxu0 %vm606_vm6, %v1694_v63  ;;  %4077 = vrcp.f32 %v1668_v8 }
 0x51e   :  { %v4062_v41 = vpop.eup %4061  ;;  %3814 = vmatpush3.msra.mxu0 %v4938_v23  ;;  %3776 = vmatprep.mubr.msk.f32.mxu0 %vm606_vm6, %v1695_v17  ;;  %v1197_v23 = vmul.f32 %v4060_v1, %v5092_v59  ;;  %v2217_v59 = vpop.permute.xlu1 %2216 }
 0x51f   :  { %v4064_v14 = vpop.eup %4063  ;;  %3802 = vmatmul.mubr.msk.f32.vlgmr.msra.gmra.mxu1 %vm606_vm6, %v1195_v47  ;;  %3815 = vmatprep.subr.mxu0 %v5258_v60  ;;  %v1696_v21 = vmul.f32 %v4062_v41, %v5225_v54 }
 0x520   :  { %3804 = vmatprep.mubr.msk.f32.mxu1 %vm606_vm6, %v1196_v36  ;;  %3816 = vmatpush3.msra.mxu0 %v5258_v60  ;;  %v1665_v3 = vpop.xlane.xlu0 %1664  ;;  %v4066_v56 = vpop.eup %4065  ;;  %v1198_v25 = vmul.f32 %v4064_v14, %v5110_v0 }
 0x521   :  { %3817 = vmatprep.subr.mxu0 %v5183_v28  ;;  %4079 = vrcp.f32 %v1665_v3  ;;  %3777 = vmatmul.mubr.msk.f32.gmra.mxu0 %vm606_vm6, %v1696_v21  ;;  %v4068_v49 = vpop.eup %4067  ;;  %v1199_v0 = vmul.f32 %v4066_v56, %v5104_v42 }
 0x522   :  { %3818 = vmatpush3.msra.mxu0 %v5183_v28  ;;  %v4070_v54 = vpop.eup %4069  ;;  %4081 = vrcp.f32 %v5275_v55  ;;  %v1200_v34 = vmul.f32 %v4068_v49, %v5122_v2  ;;  %3842 = vmatpush3.msra.mxu1 %v2404_v32 }
 0x523   :  { %3805 = vmatmul.mubr.msk.f32.gmra.mxu1 %vm606_vm6, %v1197_v23  ;;  %3819 = vmatprep.subr.mxu0 %v5320_v12  ;;  %v4072_v60 = vpop.eup %4071  ;;  %4083 = vrcp.f32 %v5283_v46  ;;  %v1201_v2 = vmul.f32 %v4070_v54, %v5117_v40  ;;  %v2213_v46 = vpop.permute.xlu1 %2212  ;;  %v5907_v23 = vld [vmem:[#allocation14_spill] sm:$0xff] }
 0x524   :  { %3807 = vmatprep.mubr.msk.f32.mxu1 %vm606_vm6, %v1198_v25  ;;  %3820 = vmatpush3.msra.mxu0 %v5320_v12  ;;  %4085 = vrcp.f32 %v5281_v5  ;;  %v2215_v12 = vpop.permute.xlu0 %2214  ;;  %v1698_v42 = vmul.f32 %v4072_v60, %v5230_v35  ;;  %v5908_v25 = vld [vmem:[#allocation12_spill] sm:$0xff] }
 0x525   :  { %3821 = vmatprep.subr.mxu0 %v5318_v7  ;;  %4087 = vrcp.f32 %v5289_v16  ;;  %3843 = vmatprep.subr.mxu1 %v2403_v27 }
 0x526   :  { %v4074_v28 = vpop.eup %4073  ;;  %3822 = vmatpush3.msra.mxu0 %v5318_v7  ;;  %4089 = vrcp.f32 %v5287_v4  ;;  %3844 = vmatpush3.msra.mxu1 %v2403_v27  ;;  %v5916_v27 = vld [vmem:[#allocation18_spill] sm:$0xff] }
 0x527   :  { %3808 = vmatmul.mubr.msk.f32.gmra.mxu1 %vm606_vm6, %v1199_v0  ;;  %3823 = vmatprep.subr.mxu0 %v2217_v59  ;;  %v1697_v55 = vmul.f32 %v4074_v28, %v5234_v51  ;;  %v4076_v51 = vpop.eup %4075  ;;  %4091 = vrcp.f32 %v5293_v33 }
 0x528   :  { %3810 = vmatprep.mubr.msk.f32.mxu1 %vm606_vm6, %v1200_v34  ;;  %3824 = vmatpush3.msra.mxu0 %v2217_v59  ;;  %4093 = vrcp.f32 %v5291_v19  ;;  %v1202_v58 = vmul.f32 %v4076_v51, %v5130_v15  ;;  %v5909_v34 = vld [vmem:[#allocation10_spill] sm:$0xff] }
 0x529   :  { %3825 = vmatprep.subr.mxu0 %v2215_v12  ;;  %3779 = vmatprep.mubr.msk.f32.mxu0 %vm606_vm6, %v1697_v55 }
 0x52a   :  { %3826 = vmatpush3.msra.mxu0 %v2215_v12  ;;  %v4078_v5 = vpop.eup %4077  ;;  %3845 = vmatprep.subr.mxu1 %v2402_v22 }
 0x52b   :  { %3780 = vmatmul.mubr.msk.f32.gmra.mxu0 %vm606_vm6, %v1698_v42  ;;  %3811 = vmatmul.mubr.msk.f32.gmra.mxu1 %vm606_vm6, %v1201_v2  ;;  %v1700_v40 = vmul.f32 %v4078_v5, %v5241_v62  ;;  %v5902_v62 = vld [vmem:[#allocation21_spill] sm:$0xff] }
 0x52c   :  { %3827 = vmatprep.subr.mxu0 %v2213_v46  ;;  %3846 = vmatpush3.msra.mxu1 %v2402_v22  ;;  %v5910_v2 = vld [vmem:[#allocation9_spill] sm:$0xff] }
 0x52d   :  { %3828 = vmatpush3.msra.mxu0 %v2213_v46  ;;  %3847 = vmatprep.subr.mxu1 %v2401_v20 }
 0x52e   :  { %v4080_v16 = vpop.eup %4079  ;;  %3848 = vmatpush3.msra.mxu1 %v2401_v20 }
 0x52f   :  { %v1699_v7 = vmul.f32 %v4080_v16, %v5248_v39  ;;  %v4082_v35 = vpop.eup %4081  ;;  %3849 = vmatprep.subr.mxu1 %v2400_v50 }
 0x530   :  { %v4084_v13 = vpop.eup %4083  ;;  %v1203_v4 = vmul.f32 %v4082_v35, %v5125_v30  ;;  %3850 = vmatpush3.msra.mxu1 %v2400_v50 }
 0x531   :  { %3782 = vmatprep.mubr.msk.f32.mxu0 %vm606_vm6, %v1699_v7  ;;  %v4086_v33 = vpop.eup %4085  ;;  %v1204_v31 = vmul.f32 %v4084_v13, %v5901_v48  ;;  %3851 = vmatprep.subr.mxu1 %v2399_v53 }
 0x532   :  { %3783 = vmatmul.mubr.msk.f32.gmra.mxu0 %vm606_vm6, %v1700_v40  ;;  %v4088_v39 = vpop.eup %4087  ;;  %v1205_v19 = vmul.f32 %v4086_v33, %v5902_v62  ;;  %3852 = vmatpush3.msra.mxu1 %v2399_v53  ;;  %v5911_v40 = vld [vmem:[#allocation8_spill] sm:$0xff]  ;;  %v5917_v53 = vld [vmem:[#allocation19_spill] sm:$0xff] }
 0x533   :  { %3829 = vmatprep.mubr.msk.f32.mxu0 %vm606_vm6, %v1202_v58  ;;  %v4090_v24 = vpop.eup %4089  ;;  %v1206_v15 = vmul.f32 %v4088_v39, %v5903_v29  ;;  %3853 = vmatprep.subr.mxu1 %v2398_v9  ;;  %v5913_v39 = vld [vmem:[#allocation6_spill] sm:$0xff] }
 0x534   :  { %v4092_v38 = vpop.eup %4091  ;;  %v1207_v30 = vmul.f32 %v4090_v24, %v5904_v26  ;;  %3854 = vmatpush3.msra.mxu1 %v2398_v9 }
 0x535   :  { %v4094_v61 = vpop.eup %4093  ;;  %v1208_v45 = vmul.f32 %v4092_v38, %v5905_v18  ;;  %3855 = vmatprep.subr.mxu1 %v2397_v52 }
 0x536   :  { %3830 = vmatmul.mubr.msk.f32.vlgmr.msra.gmra.mxu0 %vm606_vm6, %v1203_v4  ;;  %v1209_v43 = vmul.f32 %v4094_v61, %v5906_v10  ;;  %3856 = vmatpush3.msra.mxu1 %v2397_v52  ;;  %v5912_v4 = vld [vmem:[#allocation7_spill] sm:$0xff] }
 0x537   :  { %3832 = vmatprep.mubr.msk.f32.mxu0 %vm606_vm6, %v1204_v31 }
 0x53a   :  { %3833 = vmatmul.mubr.msk.f32.gmra.mxu0 %vm606_vm6, %v1205_v19  ;;  %v5914_v19 = vld [vmem:[#allocation5_spill] sm:$0xff] }
 0x53b   :  { %3835 = vmatprep.mubr.msk.f32.mxu0 %vm606_vm6, %v1206_v15 }
 0x53e   :  { %3836 = vmatmul.mubr.msk.f32.gmra.mxu0 %vm606_vm6, %v1207_v30 }
 0x53f   :  { %3838 = vmatprep.mubr.msk.f32.mxu0 %vm606_vm6, %v1208_v45  ;;  %v5915_v45 = vld [vmem:[#allocation20_spill] sm:$0xff] }
 0x542   :  { %3839 = vmatmul.mubr.msk.f32.gmra.mxu0 %vm606_vm6, %v1209_v43 }
 0x595   :  { %v3747_v37 = vpop.f32.mrf.mxu1 }
 0x597   :  { %v1843_v44 = vpop.f32.mrf.mxu1 }
 0x599   :  { %v3750_v6 = vpop.f32.mrf.mxu1 }
 0x59b   :  { %v1853_v57 = vpop.f32.mrf.mxu1 }
 0x5d2   :  { %v3753_v11 = vpop.f32.mrf.mxu1 }
 0x5d4   :  { %v1863_v63 = vpop.f32.mrf.mxu1 }
 0x5da   :  { %v3756_v8 = vpop.f32.mrf.mxu1 }
 0x5dc   :  { %v1873_v17 = vpop.f32.mrf.mxu1 }
 0x5dd   :  { %v3775_v1 = vpop.f32.mrf.mxu0 }
 0x5df   :  { %v3803_v47 = vpop.f32.mrf.mxu1  ;;  %v2004_v14 = vpop.f32.mrf.mxu0 }
 0x5e0   :  { %v2171_v41 = vadd.f32 %v3803_v47, %v3747_v37  ;;  %v5920_v47 = vld [vmem:[#allocation15_spill] sm:$0xff] }
 0x5e1   :  { %v2165_v36 = vpop.f32.mrf.mxu1  ;;  %v3778_v59 = vpop.f32.mrf.mxu0 }
 0x5e2   :  { %v2166_v21 = vadd.f32 %v2165_v36, %v1843_v44  ;;  %v2382_v49 = vsel %vm195_vm0, %v2171_v41, %v5908_v25  ;;  %v5918_v44 = vld [vmem:[#allocation17_spill] sm:$0xff]  ;;  %v2604_v25 = vpop.permute.xlu1 %2603 }
 0x5e3   :  { %v3806_v3 = vpop.f32.mrf.mxu1  ;;  %v2014_v51 = vpop.f32.mrf.mxu0 }
 0x5e4   :  { %v2381_v56 = vsel %vm195_vm0, %v2166_v21, %v5907_v23  ;;  %v2181_v54 = vadd.f32 %v3806_v3, %v3750_v6  ;;  %v5922_v3 = vld [vmem:[#allocation11_spill] sm:$0xff] }
 0x5e5   :  { %v2175_v60 = vpop.f32.mrf.mxu1  ;;  %3857 = vmatprep.mubr.msk.f32.mxu1 %vm606_vm6, %v2381_v56  ;;  %v2600_v56 = vpop.permute.xlu0 %2599 }
 0x5e6   :  { %v2176_v0 = vadd.f32 %v2175_v60, %v1853_v57  ;;  %3858 = vmatmul.mubr.msk.f32.vlgmr.msra.gmra.mxu1 %vm606_vm6, %v2382_v49  ;;  %v2384_v46 = vsel %vm195_vm0, %v2181_v54, %v5910_v2  ;;  %v2606_v49 = vsel %vm195_vm0, %v2600_v56, %v2604_v25  ;;  %v5923_v54 = vld [vmem:[#allocation2_spill] sm:$0xff] }
 0x5e7   :  { %v3809_v28 = vpop.f32.mrf.mxu1  ;;  %v2614_v60 = vrot.slane %v2606_v49, %v5923_v54 }
 0x5e8   :  { %v2383_v55 = vsel %vm195_vm0, %v2176_v0, %v5909_v34  ;;  %v2191_v12 = vadd.f32 %v3809_v28, %v3753_v11  ;;  %v5924_v0 = vld [vmem:[#allocation3_spill] sm:$0xff] }
 0x5e9   :  { %v2185_v42 = vpop.f32.mrf.mxu1  ;;  %3860 = vmatprep.mubr.msk.f32.mxu1 %vm606_vm6, %v2383_v55 }
 0x5ea   :  { %v2186_v5 = vadd.f32 %v2185_v42, %v1863_v63  ;;  %3861 = vmatmul.mubr.msk.f32.gmra.mxu1 %vm606_vm6, %v2384_v46  ;;  %v2386_v33 = vsel %vm195_vm0, %v2191_v12, %v5912_v4  ;;  %v5919_v63 = vld [vmem:[#allocation16_spill] sm:$0xff]  ;;  %v2863_v46 = vld [vmem:[%s5844_s5 + $0x18] sm:$0xff] }
 0x5eb   :  { %v3812_v16 = vpop.f32.mrf.mxu1  ;;  %v3781_v7 = vpop.f32.mrf.mxu0  ;;  %3881 = vmatprep.subr.mxu0 %v2863_v46  ;;  %3913 = vmatprep.subr.mxu1 %v2863_v46 }
 0x5ec   :  { %v2385_v35 = vsel %vm195_vm0, %v2186_v5, %v5911_v40  ;;  %v2201_v58 = vadd.f32 %v3812_v16, %v3756_v8  ;;  %v2862_v5 = vld [vmem:[%s5844_s5 + $0x10] sm:$0xff]  ;;  %3882 = vmatpush3.msra.mxu0 %v2863_v46  ;;  %v2861_v40 = vld [vmem:[%s5844_s5 + $0x8] sm:$0xff]  ;;  %3917 = vmatpush3.msra.mxu1 %v2863_v46 }
 0x5ed   :  { %v2195_v13 = vpop.f32.mrf.mxu1  ;;  %3863 = vmatprep.mubr.msk.f32.mxu1 %vm606_vm6, %v2385_v35  ;;  %v2024_v31 = vpop.f32.mrf.mxu0  ;;  %3883 = vmatprep.subr.mxu0 %v2862_v5 }
 0x5ee   :  { %v2196_v48 = vadd.f32 %v2195_v13, %v1873_v17  ;;  %3864 = vmatmul.mubr.msk.f32.gmra.mxu1 %vm606_vm6, %v2386_v33  ;;  %v2388_v24 = vsel %vm195_vm0, %v2201_v58, %v5914_v19  ;;  %3884 = vmatpush3.msra.mxu0 %v2862_v5  ;;  %v2860_v58 = vld [vmem:[%s5844_s5] sm:$0xff] }
 0x5ef   :  { %3885 = vmatprep.subr.mxu0 %v2861_v40  ;;  %3914 = vmatprep.subr.mxu1 %v2862_v5 }
 0x5f0   :  { %v2387_v62 = vsel %vm195_vm0, %v2196_v48, %v5913_v39  ;;  %3886 = vmatpush3.msra.mxu0 %v2861_v40  ;;  %3918 = vmatpush3.msra.mxu1 %v2862_v5 }
 0x5f1   :  { %3866 = vmatprep.mubr.msk.f32.mxu1 %vm606_vm6, %v2387_v62  ;;  %3887 = vmatprep.subr.mxu0 %v2860_v58 }
 0x5f2   :  { %3867 = vmatmul.mubr.msk.f32.gmra.mxu1 %vm606_vm6, %v2388_v24  ;;  %v3784_v29 = vpop.f32.mrf.mxu0  ;;  %3888 = vmatpush3.msra.mxu0 %v2860_v58 }
 0x5f3   :  { %3915 = vmatprep.subr.mxu1 %v2861_v40 }
 0x5f4   :  { %v2034_v15 = vpop.f32.mrf.mxu0  ;;  %3919 = vmatpush3.msra.mxu1 %v2861_v40 }
 0x5f5   :  { %3916 = vmatprep.subr.mxu1 %v2860_v58 }
 0x5f6   :  { %v3831_v38 = vpop.f32.mrf.mxu0  ;;  %3920 = vmatpush3.msra.mxu1 %v2860_v58 }
 0x5f7   :  { %v2332_v26 = vadd.f32 %v3831_v38, %v3775_v1 }
 0x5f8   :  { %v2326_v30 = vpop.f32.mrf.mxu0 }
 0x5f9   :  { %v2327_v61 = vadd.f32 %v2326_v30, %v2004_v14  ;;  %v2390_v22 = vsel %vm195_vm0, %v2332_v26, %v5916_v27  ;;  %v5921_v14 = vld [vmem:[#allocation13_spill] sm:$0xff] }
 0x5fa   :  { %v3834_v18 = vpop.f32.mrf.mxu0 }
 0x5fb   :  { %v2389_v10 = vsel %vm195_vm0, %v2327_v61, %v5915_v45  ;;  %v2342_v43 = vadd.f32 %v3834_v18, %v3778_v59  ;;  %v2622_v59 = vrot.slane %v2614_v60, %v5923_v54 }
 0x5fc   :  { %v2336_v32 = vpop.f32.mrf.mxu0  ;;  %3869 = vmatprep.mubr.msk.f32.mxu1 %vm606_vm6, %v2389_v10 }
 0x5fd   :  { %v2337_v20 = vadd.f32 %v2336_v32, %v2014_v51  ;;  %3870 = vmatmul.mubr.msk.f32.gmra.mxu1 %vm606_vm6, %v2390_v22  ;;  %v2392_v6 = vsel %vm195_vm0, %v2342_v43, %v5918_v44  ;;  %v2633_v28 = vrot.slane %v2622_v59, %v5924_v0  ;;  %v5925_v32 = vld [vmem:[#allocation27_spill] sm:$0xff] }
 0x5fe   :  { %v3837_v50 = vpop.f32.mrf.mxu0  ;;  %v3063_v27 = vrot.slane %v5925_v32, %v5923_v54 }
 0x5ff   :  { %v2391_v9 = vsel %vm195_vm0, %v2337_v20, %v5917_v53  ;;  %v2352_v52 = vadd.f32 %v3837_v50, %v3781_v7 }
 0x600   :  { %v2346_v37 = vpop.f32.mrf.mxu0  ;;  %3872 = vmatprep.mubr.msk.f32.mxu1 %vm606_vm6, %v2391_v9  ;;  %v3064_v9 = vcombine.high %v3063_v27, %v3063_v27 }
 0x601   :  { %v2347_v57 = vadd.f32 %v2346_v37, %v2024_v31  ;;  %3873 = vmatmul.mubr.msk.f32.gmra.mxu1 %vm606_vm6, %v2392_v6  ;;  %v2394_v41 = vsel %vm195_vm0, %v2352_v52, %v5920_v47  ;;  %v2615_v31 = vcombine.high %v2614_v60, %v2614_v60  ;;  %v5926_v6 = vld [vmem:[#allocation4_spill] sm:$0xff] }
 0x602   :  { %v3840_v11 = vpop.f32.mrf.mxu0  ;;  %v3078_v44 = vrot.slane %v3064_v9, %v5923_v54 }
 0x603   :  { %v2393_v8 = vsel %vm195_vm0, %v2347_v57, %v5919_v63  ;;  %v2362_v17 = vadd.f32 %v3840_v11, %v3784_v29  ;;  %v2629_v24 = vrot.slane %v2615_v31, %v5923_v54  ;;  %v3071_v63 = vrot.slane %v3063_v27, %v5923_v54 }
 0x604   :  { %v2356_v1 = vpop.f32.mrf.mxu0  ;;  %3875 = vmatprep.mubr.msk.f32.mxu1 %vm606_vm6, %v2393_v8  ;;  %v3086_v11 = vrot.slane %v3078_v44, %v5924_v0 }
 0x605   :  { %v2357_v36 = vadd.f32 %v2356_v1, %v2034_v15  ;;  %3876 = vmatmul.mubr.msk.f32.gmra.mxu1 %vm606_vm6, %v2394_v41  ;;  %v2396_v23 = vsel %vm195_vm0, %v2362_v17, %v5922_v3  ;;  %v2637_v29 = vrot.slane %v2629_v24, %v5924_v0  ;;  %v3082_v8 = vrot.slane %v3071_v63, %v5924_v0  ;;  %v5569_v17 = vld [vmem:[%s5845_s6] ss:$0 sm:$0xff]  ;;  %v5573_v1 = vpop.permute.xlu0 %2838 }
 0x607   :  { %v2395_v21 = vsel %vm195_vm0, %v2357_v36, %v5921_v14 }
 0x608   :  { %3878 = vmatprep.mubr.msk.f32.mxu1 %vm606_vm6, %v2395_v21 }
 0x609   :  { %3879 = vmatmul.mubr.msk.f32.gmra.mxu1 %vm606_vm6, %v2396_v23 }
 0x6a6   :  { %v3859_v34 = vpop.f32.mrf.mxu1 }
 0x6a7   :  { %v5478_v55 = vmul.f32 %v3859_v34, %v2633_v28 }
 0x6a8   :  { %v2519_v12 = vpop.f32.mrf.mxu1 }
 0x6a9   :  { %v5480_v42 = vmul.f32 %v2633_v28, %v2519_v12  ;;  %2674 = vrot.lane.b32.xlu1 %v5478_v55, %s4098_s2 }
 0x6aa   :  { %v3862_v2 = vpop.f32.mrf.mxu1 }
 0x6ab   :  { %v5487_v51 = vmul.f32 %v3862_v2, %v2633_v28  ;;  %2672 = vrot.lane.b32.xlu0 %v5480_v42, %s4098_s2 }
 0x6ac   :  { %v2529_v16 = vpop.f32.mrf.mxu1 }
 0x6ad   :  { %v5494_v7 = vmul.f32 %v2633_v28, %v2529_v16  ;;  %2678 = vrot.lane.b32.xlu1 %v5487_v51, %s4098_s2 }
 0x6ae   :  { %v3865_v35 = vpop.f32.mrf.mxu1 }
 0x6af   :  { %v5504_v13 = vmul.f32 %v3865_v35, %v2633_v28  ;;  %2676 = vrot.lane.b32.xlu0 %v5494_v7, %s4098_s2 }
 0x6b0   :  { %v2539_v4 = vpop.f32.mrf.mxu1 }
 0x6b1   :  { %v5508_v33 = vmul.f32 %v2633_v28, %v2539_v4  ;;  %2682 = vrot.lane.b32.xlu1 %v5504_v13, %s4098_s2 }
 0x6b2   :  { %v3868_v48 = vpop.f32.mrf.mxu1 }
 0x6b3   :  { %2680 = vrot.lane.b32.xlu0 %v5508_v33, %s4098_s2  ;;  %v5514_v62 = vmul.f32 %v3868_v48, %v2633_v28 }
 0x6b4   :  { %v2549_v39 = vpop.f32.mrf.mxu1 }
 0x6b5   :  { %v5516_v19 = vmul.f32 %v2633_v28, %v2549_v39 }
 0x6b7   :  { %2684 = vrot.lane.b32.xlu1 %v5516_v19, %s4098_s2  ;;  %2686 = vrot.lane.b32.xlu0 %v5514_v62, %s4098_s2 }
 0x6bd   :  { %v3871_v15 = vpop.f32.mrf.mxu1 }
 0x6be   :  { %v5524_v38 = vmul.f32 %v3871_v15, %v2637_v29 }
 0x6bf   :  { %v2559_v26 = vpop.f32.mrf.mxu1 }
 0x6c0   :  { %2690 = vrot.lane.b32.xlu1 %v5524_v38, %s4098_s2  ;;  %v5528_v61 = vmul.f32 %v2637_v29, %v2559_v26 }
 0x6c1   :  { %v3874_v30 = vpop.f32.mrf.mxu1 }
 0x6c2   :  { %v5542_v50 = vmul.f32 %v3874_v30, %v2637_v29 }
 0x6c3   :  { %v2569_v18 = vpop.f32.mrf.mxu1 }
 0x6c4   :  { %2688 = vrot.lane.b32.xlu1 %v5528_v61, %s4098_s2  ;;  %v5532_v10 = vmul.f32 %v2637_v29, %v2569_v18 }
 0x6c5   :  { %v3877_v45 = vpop.f32.mrf.mxu1 }
 0x6c6   :  { %v5534_v43 = vmul.f32 %v3877_v45, %v2637_v29 }
 0x6c7   :  { %v2579_v22 = vpop.f32.mrf.mxu1 }
 0x6c8   :  { %2698 = vrot.lane.b32.xlu0 %v5534_v43, %s4098_s2  ;;  %2692 = vrot.lane.b32.xlu1 %v5532_v10, %s4098_s2  ;;  %v5544_v53 = vmul.f32 %v2637_v29, %v2579_v22 }
 0x6c9   :  { %v3880_v20 = vpop.f32.mrf.mxu1 }
 0x6ca   :  { %v5557_v57 = vmul.f32 %v3880_v20, %v2637_v29 }
 0x6cb   :  { %v2589_v52 = vpop.f32.mrf.mxu1 }
 0x6cc   :  { %2696 = vrot.lane.b32.xlu0 %v5544_v53, %s4098_s2  ;;  %2694 = vrot.lane.b32.xlu1 %v5542_v50, %s4098_s2  ;;  %v5550_v37 = vmul.f32 %v2637_v29, %v2589_v52 }
 0x6d0   :  { %2700 = vrot.lane.b32.xlu0 %v5550_v37, %s4098_s2  ;;  %2840 = vrot.lane.b32.xlu1 %v5926_v6, %s4099_s15 }
 0x6d4   :  { %2702 = vrot.lane.b32.xlu0 %v5557_v57, %s4098_s2  ;;  %3089 = vrot.lane.b32.xlu1 %v3086_v11, %s4098_s2 }
 0x6d8   :  { %3087 = vrot.lane.b32.xlu0 %v3082_v8, %s4098_s2 }
 0x6dc   :  { %3109 = vrot.lane.b32.xlu0 %v5569_v17, %s4098_s2 }
 0x71b   :  { %v2675_v47 = vpop.permute.xlu1 %2674 }
 0x71c   :  { %v2721_v41 = vadd.f32 %v2675_v47, %v5478_v55 }
 0x71d   :  { %v2673_v36 = vpop.permute.xlu0 %2672 }
 0x71e   :  { %v2743_v14 = vadd.f32 %v5569_v17, %v2721_v41  ;;  %v2720_v21 = vadd.f32 %v2673_v36, %v5480_v42 }
 0x71f   :  { %v2679_v3 = vpop.permute.xlu1 %2678 }
 0x720   :  { %vm2759_vm7 = vcmp.ge.f32.partialorder %v2743_v14, 0.0  ;;  %v2775_v23 = vmul.f32 0.2, %v2743_v14  ;;  %v2742_v56 = vadd.f32 %v5569_v17, %v2720_v21  ;;  %v2723_v25 = vadd.f32 %v2679_v3, %v5487_v51 }
 0x721   :  { %v2677_v49 = vpop.permute.xlu0 %2676 }
 0x722   :  { %v5580_v54 = vsel %vm2759_vm7, %v2743_v14, %v2775_v23  ;;  %vm2758_vm8 = vcmp.ge.f32.partialorder %v2742_v56, 0.0  ;;  %v2774_v60 = vmul.f32 0.2, %v2742_v56  ;;  %v2745_v59 = vadd.f32 %v5569_v17, %v2723_v25 }
 0x723   :  { %v3362_v0 = vclamps-f32 %v5580_v54, 256.0  ;;  %v2722_v28 = vadd.f32 %v2677_v49, %v5494_v7  ;;  %v2683_v34 = vpop.permute.xlu1 %2682 }
 0x724   :  { %v5585_v55 = vsel %vm2758_vm8, %v2742_v56, %v2774_v60  ;;  %vm2761_vm9 = vcmp.ge.f32.partialorder %v2745_v59, 0.0  ;;  %v2777_v12 = vmul.f32 0.2, %v2745_v59  ;;  %v2725_v42 = vadd.f32 %v2683_v34, %v5504_v13 }
 0x725   :  { %v3361_v2 = vclamps-f32 %v5585_v55, 256.0  ;;  %v2744_v46 = vadd.f32 %v5569_v17, %v2722_v28  ;;  %v2681_v51 = vpop.permute.xlu0 %2680  ;;  %v2845_v7 = vmul.f32 %v3362_v0, %v5573_v1  ;;  %vm3208_vm8 = vcmask 285696  }
 0x726   :  { %v5590_v5 = vsel %vm2761_vm9, %v2745_v59, %v2777_v12  ;;  %v2747_v16 = vadd.f32 %v5569_v17, %v2725_v42  ;;  %v2724_v40 = vadd.f32 %v2681_v51, %v5508_v33 }
 0x727   :  { %vm2760_vm10 = vcmp.ge.f32.partialorder %v2744_v46, 0.0  ;;  %v2776_v35 = vmul.f32 0.2, %v2744_v46  ;;  %v2844_v58 = vmul.f32 %v3361_v2, %v5573_v1  ;;  %v3364_v13 = vclamps-f32 %v5590_v5, 256.0 }
 0x728   :  { %vm2763_vm11 = vcmp.ge.f32.partialorder %v2747_v16, 0.0  ;;  %v2779_v4 = vmul.f32 0.2, %v2747_v16  ;;  %v2746_v48 = vadd.f32 %v5569_v17, %v2724_v40 }
 0x729   :  { %v5602_v31 = vsel %vm2760_vm10, %v2744_v46, %v2776_v35  ;;  %v2685_v39 = vpop.permute.xlu1 %2684  ;;  %3889 = vmatprep.mubr.msk.f32.mxu0 %vm195_vm0, %v2844_v58  ;;  %v2687_v33 = vpop.permute.xlu0 %2686  ;;  %v2847_v32 = vmul.f32 %v3364_v13, %v5573_v1 }
 0x72a   :  { %v3363_v24 = vclamps-f32 %v5602_v31, 256.0  ;;  %v5606_v29 = vsel %vm2763_vm11, %v2747_v16, %v2779_v4  ;;  %vm2762_vm12 = vcmp.ge.f32.partialorder %v2746_v48, 0.0  ;;  %v2778_v15 = vmul.f32 0.2, %v2746_v48  ;;  %3890 = vmatmul.mubr.msk.f32.vlgmr.msra.gmra.mxu0 %vm195_vm0, %v2845_v7 }
 0x72b   :  { %v2726_v26 = vadd.f32 %v2685_v39, %v5516_v19  ;;  %v2727_v30 = vadd.f32 %v2687_v33, %v5514_v62  ;;  %v3366_v27 = vclamps-f32 %v5606_v29, 256.0 }
 0x72c   :  { %v5611_v18 = vsel %vm2762_vm12, %v2746_v48, %v2778_v15  ;;  %v2846_v45 = vmul.f32 %v3363_v24, %v5573_v1 }
 0x72d   :  { %v3365_v22 = vclamps-f32 %v5611_v18, 256.0  ;;  %v2748_v20 = vadd.f32 %v5569_v17, %v2726_v26  ;;  %v2749_v19 = vadd.f32 %v5569_v17, %v2727_v30  ;;  %v2849_v11 = vmul.f32 %v3366_v27, %v5573_v1 }
 0x72e   :  { %3892 = vmatprep.mubr.msk.f32.mxu0 %vm195_vm0, %v2846_v45 }
 0x72f   :  { %vm2764_vm13 = vcmp.ge.f32.partialorder %v2748_v20, 0.0  ;;  %v2780_v62 = vmul.f32 0.2, %v2748_v20  ;;  %vm2765_vm14 = vcmp.ge.f32.partialorder %v2749_v19, 0.0  ;;  %v2781_v9 = vmul.f32 0.2, %v2749_v19  ;;  %3893 = vmatmul.mubr.msk.f32.gmra.mxu0 %vm195_vm0, %v2847_v32 }
 0x730   :  { %v2848_v52 = vmul.f32 %v3365_v22, %v5573_v1 }
 0x731   :  { %v5628_v44 = vsel %vm2764_vm13, %v2748_v20, %v2780_v62  ;;  %v5630_v6 = vsel %vm2765_vm14, %v2749_v19, %v2781_v9 }
 0x732   :  { %v3367_v63 = vclamps-f32 %v5628_v44, 256.0  ;;  %v3368_v8 = vclamps-f32 %v5630_v6, 256.0  ;;  %3895 = vmatprep.mubr.msk.f32.mxu0 %vm195_vm0, %v2848_v52  ;;  %v2691_v47 = vpop.permute.xlu1 %2690 }
 0x733   :  { %3896 = vmatmul.mubr.msk.f32.gmra.mxu0 %vm195_vm0, %v2849_v11  ;;  %v2729_v41 = vadd.f32 %v2691_v47, %v5524_v38 }
 0x734   :  { %v2850_v36 = vmul.f32 %v3367_v63, %v5573_v1  ;;  %v2851_v14 = vmul.f32 %v3368_v8, %v5573_v1 }
 0x735   :  { %v2751_v21 = vadd.f32 %v5569_v17, %v2729_v41 }
 0x736   :  { %3898 = vmatprep.mubr.msk.f32.mxu0 %vm195_vm0, %v2850_v36  ;;  %v2689_v3 = vpop.permute.xlu1 %2688 }
 0x737   :  { %3899 = vmatmul.mubr.msk.f32.gmra.mxu0 %vm195_vm0, %v2851_v14  ;;  %v2728_v23 = vadd.f32 %v2689_v3, %v5528_v61  ;;  %vm2767_vm15 = vcmp.ge.f32.partialorder %v2751_v21, 0.0  ;;  %v2783_v38 = vmul.f32 0.2, %v2751_v21 }
 0x739   :  { %v2750_v56 = vadd.f32 %v5569_v17, %v2728_v23  ;;  %v5655_v12 = vsel %vm2767_vm15, %v2751_v21, %v2783_v38 }
 0x73a   :  { %v2693_v25 = vpop.permute.xlu1 %2692  ;;  %v2699_v49 = vpop.permute.xlu0 %2698 }
 0x73b   :  { %vm2766_vm1 = vcmp.ge.f32.partialorder %v2750_v56, 0.0  ;;  %v2782_v60 = vmul.f32 0.2, %v2750_v56  ;;  %v2730_v59 = vadd.f32 %v2693_v25, %v5532_v10  ;;  %v2733_v1 = vadd.f32 %v2699_v49, %v5534_v43 }
 0x73c   :  { %v3370_v43 = vclamps-f32 %v5655_v12, 256.0 }
 0x73d   :  { %v2752_v28 = vadd.f32 %v5569_v17, %v2730_v59  ;;  %v2755_v34 = vadd.f32 %v5569_v17, %v2733_v1  ;;  %v5657_v42 = vsel %vm2766_vm1, %v2750_v56, %v2782_v60 }
 0x73e   :  { %v2695_v61 = vpop.permute.xlu1 %2694  ;;  %v2697_v46 = vpop.permute.xlu0 %2696  ;;  %v3369_v7 = vclamps-f32 %v5657_v42, 256.0 }
 0x73f   :  { %vm2768_vm2 = vcmp.ge.f32.partialorder %v2752_v28, 0.0  ;;  %v2784_v51 = vmul.f32 0.2, %v2752_v28  ;;  %v2787_v16 = vmul.f32 0.2, %v2755_v34  ;;  %vm2771_vm3 = vcmp.ge.f32.partialorder %v2755_v34, 0.0 }
 0x740   :  { %v2731_v40 = vadd.f32 %v2695_v61, %v5542_v50  ;;  %v2732_v10 = vadd.f32 %v2697_v46, %v5544_v53 }
 0x741   :  { %v5663_v35 = vsel %vm2768_vm2, %v2752_v28, %v2784_v51  ;;  %v5668_v15 = vsel %vm2771_vm3, %v2755_v34, %v2787_v16 }
 0x742   :  { %v3371_v58 = vclamps-f32 %v5663_v35, 256.0  ;;  %v2753_v4 = vadd.f32 %v5569_v17, %v2731_v40  ;;  %v2754_v48 = vadd.f32 %v5569_v17, %v2732_v10  ;;  %v2841_v39 = vpop.permute.xlu1 %2840  ;;  %v2701_v33 = vpop.permute.xlu0 %2700  ;;  %v3374_v19 = vclamps-f32 %v5668_v15, 256.0 }
 0x743   :  { %v2734_v50 = vadd.f32 %v2701_v33, %v5550_v37  ;;  %v2852_v53 = vmul.f32 %v3369_v7, %v2841_v39  ;;  %v2853_v26 = vmul.f32 %v3370_v43, %v2841_v39 }
 0x744   :  { %vm2769_vm4 = vcmp.ge.f32.partialorder %v2753_v4, 0.0  ;;  %v2785_v30 = vmul.f32 0.2, %v2753_v4  ;;  %vm2770_vm5 = vcmp.ge.f32.partialorder %v2754_v48, 0.0  ;;  %v2786_v45 = vmul.f32 0.2, %v2754_v48 }
 0x745   :  { %v2756_v32 = vadd.f32 %v5569_v17, %v2734_v50  ;;  %3901 = vmatprep.mubr.msk.f32.mxu0 %vm195_vm0, %v2852_v53  ;;  %v2854_v20 = vmul.f32 %v3371_v58, %v2841_v39  ;;  %v2857_v56 = vmul.f32 %v3374_v19, %v2841_v39 }
 0x746   :  { %v5680_v37 = vsel %vm2769_vm4, %v2753_v4, %v2785_v30  ;;  %v5682_v62 = vsel %vm2770_vm5, %v2754_v48, %v2786_v45  ;;  %3902 = vmatmul.mubr.msk.f32.gmra.mxu0 %vm195_vm0, %v2853_v26  ;;  %v2703_v9 = vpop.permute.xlu0 %2702 }
 0x747   :  { %v3372_v52 = vclamps-f32 %v5680_v37, 256.0  ;;  %v3373_v11 = vclamps-f32 %v5682_v62, 256.0  ;;  %vm2772_vm6 = vcmp.ge.f32.partialorder %v2756_v32, 0.0  ;;  %v2788_v47 = vmul.f32 0.2, %v2756_v32  ;;  %3904 = vmatprep.mubr.msk.f32.mxu0 %vm195_vm0, %v2854_v20 }
 0x748   :  { %v2735_v41 = vadd.f32 %v2703_v9, %v5557_v57 }
 0x749   :  { %v5689_v36 = vsel %vm2772_vm6, %v2756_v32, %v2788_v47  ;;  %v2855_v14 = vmul.f32 %v3372_v52, %v2841_v39  ;;  %v2856_v21 = vmul.f32 %v3373_v11, %v2841_v39 }
 0x74a   :  { %v3375_v3 = vclamps-f32 %v5689_v36, 256.0  ;;  %v2757_v23 = vadd.f32 %v5569_v17, %v2735_v41  ;;  %v3088_v60 = vpop.permute.xlu0 %3087 }
 0x74b   :  { %3905 = vmatmul.mubr.msk.f32.gmra.mxu0 %vm195_vm0, %v2855_v14  ;;  %3907 = vmatprep.mubr.msk.f32.mxu1 %vm195_vm0, %v2856_v21  ;;  %v3090_v21 = vpop.permute.xlu1 %3089 }
 0x74c   :  { %vm2773_vm7 = vcmp.ge.f32.partialorder %v2757_v23, 0.0  ;;  %v2789_v57 = vmul.f32 0.2, %v2757_v23  ;;  %3908 = vmatmul.mubr.msk.f32.vlgmr.msra.gmra.mxu1 %vm195_vm0, %v2857_v56  ;;  %v2858_v38 = vmul.f32 %v3375_v3, %v2841_v39 }
 0x74e   :  { %v5704_v25 = vsel %vm2773_vm7, %v2757_v23, %v2789_v57  ;;  %3910 = vmatprep.mubr.msk.f32.mxu1 %vm195_vm0, %v2858_v38  ;;  %v3110_v1 = vpop.permute.xlu0 %3109 }
 0x74f   :  { %v3376_v17 = vclamps-f32 %v5704_v25, 256.0 }
 0x751   :  { %v2859_v49 = vmul.f32 %v3376_v17, %v2841_v39 }
 0x753   :  { %3911 = vmatmul.mubr.msk.f32.gmra.mxu1 %vm195_vm0, %v2859_v49 }
 0x7ea   :  { %v3891_v59 = vpop.f32.mrf.mxu0 }
 0x7eb   :  { %v3094_v28 = vmul.f32 %v3891_v59, %v3088_v60 }
 0x7ec   :  { %v2978_v34 = vpop.f32.mrf.mxu0 }
 0x7ed   :  { %v3093_v61 = vmul.f32 %v3088_v60, %v2978_v34  ;;  %v3113_v46 = vadd.f32 %v3110_v1, %v3094_v28 }
 0x7ef   :  { %v3894_v51 = vpop.f32.mrf.mxu0  ;;  %3146 = vrot.lane.b32.xlu0 %v3113_v46, %s4097_s14  ;;  %v3112_v16 = vadd.f32 %v3110_v1, %v3093_v61 }
 0x7f0   :  { %v3096_v40 = vmul.f32 %v3894_v51, %v3088_v60 }
 0x7f1   :  { %v2988_v10 = vpop.f32.mrf.mxu0  ;;  %3144 = vrot.lane.b32.xlu1 %v3112_v16, %s4097_s14 }
 0x7f2   :  { %v3115_v4 = vadd.f32 %v3110_v1, %v3096_v40  ;;  %v3095_v48 = vmul.f32 %v3088_v60, %v2988_v10 }
 0x7f3   :  { %v3897_v39 = vpop.f32.mrf.mxu0 }
 0x7f4   :  { %v3114_v33 = vadd.f32 %v3110_v1, %v3095_v48  ;;  %v3098_v50 = vmul.f32 %v3897_v39, %v3088_v60  ;;  %3150 = vrot.lane.b32.xlu0 %v3115_v4, %s4097_s14 }
 0x7f5   :  { %v2998_v53 = vpop.f32.mrf.mxu0 }
 0x7f6   :  { %v3117_v26 = vadd.f32 %v3110_v1, %v3098_v50  ;;  %v3097_v30 = vmul.f32 %v3088_v60, %v2998_v53  ;;  %3148 = vrot.lane.b32.xlu1 %v3114_v33, %s4097_s14 }
 0x7f7   :  { %v3900_v45 = vpop.f32.mrf.mxu0 }
 0x7f8   :  { %v3116_v32 = vadd.f32 %v3110_v1, %v3097_v30  ;;  %v3100_v20 = vmul.f32 %v3900_v45, %v3088_v60  ;;  %3154 = vrot.lane.b32.xlu0 %v3117_v26, %s4097_s14 }
 0x7f9   :  { %v3008_v9 = vpop.f32.mrf.mxu0 }
 0x7fa   :  { %v3119_v47 = vadd.f32 %v3110_v1, %v3100_v20  ;;  %v3099_v41 = vmul.f32 %v3088_v60, %v3008_v9  ;;  %3152 = vrot.lane.b32.xlu1 %v3116_v32, %s4097_s14 }
 0x7fc   :  { %v3118_v14 = vadd.f32 %v3110_v1, %v3099_v41  ;;  %3158 = vrot.lane.b32.xlu0 %v3119_v47, %s4097_s14 }
 0x7fe   :  { %3156 = vrot.lane.b32.xlu1 %v3118_v14, %s4097_s14 }
 0x806   :  { %v3903_v23 = vpop.f32.mrf.mxu0 }
 0x807   :  { %v3102_v56 = vmul.f32 %v3903_v23, %v3090_v21 }
 0x808   :  { %v3018_v57 = vpop.f32.mrf.mxu0 }
 0x809   :  { %v3121_v38 = vadd.f32 %v3110_v1, %v3102_v56  ;;  %v3101_v49 = vmul.f32 %v3090_v21, %v3018_v57 }
 0x80b   :  { %v3120_v59 = vadd.f32 %v3110_v1, %v3101_v49  ;;  %v3906_v28 = vpop.f32.mrf.mxu0  ;;  %3162 = vrot.lane.b32.xlu0 %v3121_v38, %s4097_s14 }
 0x80c   :  { %v3104_v34 = vmul.f32 %v3906_v28, %v3090_v21  ;;  %v3909_v61 = vpop.f32.mrf.mxu1 }
 0x80d   :  { %v3028_v60 = vpop.f32.mrf.mxu0  ;;  %3160 = vrot.lane.b32.xlu1 %v3120_v59, %s4097_s14  ;;  %v3106_v51 = vmul.f32 %v3909_v61, %v3090_v21 }
 0x80e   :  { %v3123_v46 = vadd.f32 %v3110_v1, %v3104_v34  ;;  %v3103_v16 = vmul.f32 %v3090_v21, %v3028_v60  ;;  %v3038_v40 = vpop.f32.mrf.mxu1 }
 0x80f   :  { %v3105_v4 = vmul.f32 %v3090_v21, %v3038_v40  ;;  %v3125_v48 = vadd.f32 %v3110_v1, %v3106_v51 }
 0x810   :  { %v3122_v10 = vadd.f32 %v3110_v1, %v3103_v16  ;;  %3166 = vrot.lane.b32.xlu0 %v3123_v46, %s4097_s14 }
 0x811   :  { %v3124_v33 = vadd.f32 %v3110_v1, %v3105_v4 }
 0x812   :  { %3164 = vrot.lane.b32.xlu1 %v3122_v10, %s4097_s14 }
 0x813   :  { %v3912_v39 = vpop.f32.mrf.mxu1 }
 0x814   :  { %v3108_v50 = vmul.f32 %v3912_v39, %v3090_v21  ;;  %3170 = vrot.lane.b32.xlu0 %v3125_v48, %s4097_s14 }
 0x815   :  { %v3048_v53 = vpop.f32.mrf.mxu1 }
 0x816   :  { %v3127_v26 = vadd.f32 %v3110_v1, %v3108_v50  ;;  %v3107_v30 = vmul.f32 %v3090_v21, %v3048_v53  ;;  %3168 = vrot.lane.b32.xlu1 %v3124_v33, %s4097_s14 }
 0x818   :  { %v3126_v45 = vadd.f32 %v3110_v1, %v3107_v30  ;;  %3174 = vrot.lane.b32.xlu0 %v3127_v26, %s4097_s14 }
 0x81a   :  { %3172 = vrot.lane.b32.xlu1 %v3126_v45, %s4097_s14 }
 0x861   :  { %v3147_v32 = vpop.permute.xlu0 %3146 }
 0x862   :  { %v3193_v20 = vsel %vm195_vm0, %v3362_v0, %v3147_v32 }
 0x863   :  { %3210 = vst.msk [vmem:[%s5846_s7 + $0x8] sm:$0xff] %vm3208_vm8, %v3193_v20  ;;  %v3145_v9 = vpop.permute.xlu1 %3144 }
 0x864   :  { %v3192_v1 = vsel %vm195_vm0, %v3361_v2, %v3145_v9 }
 0x865   :  { %3209 = vst.msk [vmem:[%s5846_s7] sm:$0xff] %vm3208_vm8, %v3192_v1 }
 0x866   :  { %v3151_v47 = vpop.permute.xlu0 %3150 }
 0x867   :  { %v3195_v54 = vsel %vm195_vm0, %v3364_v13, %v3151_v47 }
 0x868   :  { %3212 = vst.msk [vmem:[%s5846_s7 + $0x18] sm:$0xff] %vm3208_vm8, %v3195_v54  ;;  %v3149_v0 = vpop.permute.xlu1 %3148 }
 0x869   :  { %v3194_v55 = vsel %vm195_vm0, %v3363_v24, %v3149_v0 }
 0x86a   :  { %3211 = vst.msk [vmem:[%s5846_s7 + $0x10] sm:$0xff] %vm3208_vm8, %v3194_v55  ;;  %v3155_v2 = vpop.permute.xlu0 %3154 }
 0x86b   :  { %v3197_v5 = vsel %vm195_vm0, %v3366_v27, %v3155_v2 }
 0x86c   :  { %3214 = vst.msk [vmem:[%s5846_s7 + $0x28] sm:$0xff] %vm3208_vm8, %v3197_v5  ;;  %v3153_v13 = vpop.permute.xlu1 %3152 }
 0x86d   :  { %v3196_v31 = vsel %vm195_vm0, %v3365_v22, %v3153_v13 }
 0x86e   :  { %3213 = vst.msk [vmem:[%s5846_s7 + $0x20] sm:$0xff] %vm3208_vm8, %v3196_v31  ;;  %v3159_v24 = vpop.permute.xlu0 %3158 }
 0x86f   :  { %v3199_v29 = vsel %vm195_vm0, %v3368_v8, %v3159_v24 }
 0x870   :  { %3216 = vst.msk [vmem:[%s5846_s7 + $0x38] sm:$0xff] %vm3208_vm8, %v3199_v29  ;;  %v3157_v27 = vpop.permute.xlu1 %3156 }
 0x871   :  { %v3198_v18 = vsel %vm195_vm0, %v3367_v63, %v3157_v27 }
 0x872   :  { %3215 = vst.msk [vmem:[%s5846_s7 + $0x30] sm:$0xff] %vm3208_vm8, %v3198_v18 }
 0x87d   :  { %v3163_v22 = vpop.permute.xlu0 %3162 }
 0x87e   :  { %v3201_v6 = vsel %vm195_vm0, %v3370_v43, %v3163_v22 }
 0x87f   :  { %3218 = vst.msk [vmem:[%s5846_s7 + $0x48] sm:$0xff] %vm3208_vm8, %v3201_v6  ;;  %v3161_v8 = vpop.permute.xlu1 %3160 }
 0x880   :  { %v3200_v44 = vsel %vm195_vm0, %v3369_v7, %v3161_v8 }
 0x881   :  { %3217 = vst.msk [vmem:[%s5846_s7 + $0x40] sm:$0xff] %vm3208_vm8, %v3200_v44 }
 0x882   :  { %v3167_v63 = vpop.permute.xlu0 %3166 }
 0x883   :  { %v3203_v12 = vsel %vm195_vm0, %v3372_v52, %v3167_v63 }
 0x884   :  { %3220 = vst.msk [vmem:[%s5846_s7 + $0x58] sm:$0xff] %vm3208_vm8, %v3203_v12  ;;  %v3165_v43 = vpop.permute.xlu1 %3164 }
 0x885   :  { %v3202_v42 = vsel %vm195_vm0, %v3371_v58, %v3165_v43 }
 0x886   :  { %3219 = vst.msk [vmem:[%s5846_s7 + $0x50] sm:$0xff] %vm3208_vm8, %v3202_v42  ;;  %v3171_v7 = vpop.permute.xlu0 %3170 }
 0x887   :  { %v3205_v37 = vsel %vm195_vm0, %v3374_v19, %v3171_v7 }
 0x888   :  { %3222 = vst.msk [vmem:[%s5846_s7 + $0x68] sm:$0xff] %vm3208_vm8, %v3205_v37  ;;  %v3169_v52 = vpop.permute.xlu1 %3168 }
 0x889   :  { %v3204_v35 = vsel %vm195_vm0, %v3373_v11, %v3169_v52 }
 0x88a   :  { %3221 = vst.msk [vmem:[%s5846_s7 + $0x60] sm:$0xff] %vm3208_vm8, %v3204_v35  ;;  %v3175_v58 = vpop.permute.xlu0 %3174 }
 0x88b   :  { %v3207_v15 = vsel %vm195_vm0, %v3376_v17, %v3175_v58 }
 0x88c   :  { %3224 = vst.msk [vmem:[%s5846_s7 + $0x78] sm:$0xff] %vm3208_vm8, %v3207_v15  ;;  %v3173_v19 = vpop.permute.xlu1 %3172 }
 0x88d   :  { %v3206_v62 = vsel %vm195_vm0, %v3375_v3, %v3173_v19 }
 0x88e   :  { %3223 = vst.msk [vmem:[%s5846_s7 + $0x70] sm:$0xff] %vm3208_vm8, %v3206_v62 }

</bundles_post_ra>
